<compile_context>
chip_gen: v6e
topology: v6e:2x2x1
jax: 0.10.0
libtpu: 0.0.40
codegen_flags: <defaults>
</compile_context>

<pallas_src>
import functools

import jax
import jax.numpy as jnp
from jax import lax
from jax.experimental import pallas as pl
from jax.experimental.pallas import tpu as pltpu


# ---------------------------------------------------------------------------
# helpers
# ---------------------------------------------------------------------------
def _full_specs(shapes):
    """Full-array BlockSpecs for a grid of (1,)."""
    return [pl.BlockSpec(s, lambda i, _nd=len(s): (0,) * _nd) for s in shapes]


_ARB = pltpu.CompilerParams(dimension_semantics=("arbitrary",))


# ---------------------------------------------------------------------------
# Kernel 1: fused GNN stack (3x GCNConv + Linear position offset)
# ---------------------------------------------------------------------------
def _gnn_fused_kernel(a_ref, x_ref, w1_ref, b1_ref, w2_ref, b2_ref,
                      w3_ref, b3_ref, wl_ref, bl_ref, pos_ref,
                      feat_ref, tpos_ref):
    # A_norm and X live in VMEM once; the three GCN layers + Linear chain
    # without touching HBM.  MXU operands in bf16, accumulation/elementwise f32.
    a_bf = a_ref[...].astype(jnp.bfloat16)

    def gcn(h, w_ref, b_ref, relu):
        xw = jnp.dot(h.astype(jnp.bfloat16), w_ref[...].astype(jnp.bfloat16),
                     preferred_element_type=jnp.float32)
        out = jnp.dot(a_bf, xw.astype(jnp.bfloat16),
                      preferred_element_type=jnp.float32) + b_ref[...]
        return jnp.maximum(out, 0.0) if relu else out

    h = gcn(x_ref[...], w1_ref, b1_ref, True)
    h = gcn(h, w2_ref, b2_ref, True)
    feats = gcn(h, w3_ref, b3_ref, False)
    feat_ref[...] = feats

    # Position offset kept in f32: it feeds the ICP / Chamfer distance pipeline
    # (avoids near-tie nearest-neighbor flips from bf16 rounding).
    off = jnp.dot(feats, wl_ref[...], preferred_element_type=jnp.float32)
    tpos_ref[...] = pos_ref[...] + off + bl_ref[...]


def gnn_forward_fused(a_norm, x, params, pos):
    n = x.shape[0]
    out_c = params["w3"].shape[1]
    b1 = params["b1"].reshape(1, -1)
    b2 = params["b2"].reshape(1, -1)
    b3 = params["b3"].reshape(1, -1)
    bl = params["bl"].reshape(1, 3)
    ins = (a_norm, x, params["w1"], b1, params["w2"], b2,
           params["w3"], b3, params["wl"], bl, pos)
    return pl.pallas_call(
        _gnn_fused_kernel,
        grid=(1,),
        in_specs=_full_specs([a.shape for a in ins]),
        out_specs=(pl.BlockSpec((n, out_c), lambda i: (0, 0)),
                   pl.BlockSpec((n, 3), lambda i: (0, 0))),
        out_shape=(jax.ShapeDtypeStruct((n, out_c), jnp.float32),
                   jax.ShapeDtypeStruct((n, 3), jnp.float32)),
        compiler_params=_ARB,
    )(*ins)


# ---------------------------------------------------------------------------
# Kernel 2: one ICP iteration (transform + NN correspondences + 3x3 H)
# ---------------------------------------------------------------------------
def _icp_step_kernel(src_ref, tgt_ref, taug_ref, t2_ref, r_ref, t_ref, out_ref):
    # Apply the accumulated rigid transform in VMEM: s = src @ R^T + t
    s = lax.dot_general(src_ref[...], r_ref[...], (((1,), (1,)), ((), ())),
                        preferred_element_type=jnp.float32) + t_ref[...]   # (N,3)

    # Pairwise squared distances to the lane-padded target set (f32 on MXU).
    cross = lax.dot_general(s, tgt_ref[...], (((1,), (1,)), ((), ())),
                            preferred_element_type=jnp.float32)            # (N,Mpad)
    s2 = jnp.sum(s * s, axis=1, keepdims=True)                             # (N,1)
    d = jnp.maximum(s2 + t2_ref[...] - 2.0 * cross, 0.0)

    # One-hot row-argmin as a mask; correspondences via a single MXU matmul
    # against [tgt | valid] (last column counts ties; ties are averaged, which
    # equals tgt[argmin] whenever the minimum is unique).  Padded columns have
    # huge distance, so they never enter the mask.
    rmin = jnp.min(d, axis=1, keepdims=True)
    mask = (d <= rmin).astype(jnp.float32)
    corr_w = jnp.dot(mask, taug_ref[...], preferred_element_type=jnp.float32)  # (N,4)
    corr = corr_w[:, 0:3] / corr_w[:, 3:4]

    inv_n = 1.0 / s.shape[0]
    cs = jnp.sum(s, axis=0, keepdims=True) * inv_n                         # (1,3)
    ct = jnp.sum(corr, axis=0, keepdims=True) * inv_n                      # (1,3)
    h = lax.dot_general(s - cs, corr - ct, (((0,), (0,)), ((), ())),
                        preferred_element_type=jnp.float32)                # (3,3)

    out_ref[0:3, :] = h
    out_ref[3:4, :] = cs
    out_ref[4:5, :] = ct


def icp_step(src, tgt_pad, tgt_aug, t2_row, r_acc, t_acc):
    ins = (src, tgt_pad, tgt_aug, t2_row, r_acc, t_acc.reshape(1, 3))
    return pl.pallas_call(
        _icp_step_kernel,
        grid=(1,),
        in_specs=_full_specs([a.shape for a in ins]),
        out_specs=pl.BlockSpec((5, 3), lambda i: (0, 0)),
        out_shape=jax.ShapeDtypeStruct((5, 3), jnp.float32),
        compiler_params=_ARB,
    )(*ins)


# ---------------------------------------------------------------------------
# Kernel 3: final aligned positions + in-kernel symmetric Chamfer loss
# ---------------------------------------------------------------------------
def _chamfer_final_kernel(src_ref, tgt_ref, t2_ref, r_ref, t_ref,
                          apos_ref, loss_ref, *, m_valid):
    s = lax.dot_general(src_ref[...], r_ref[...], (((1,), (1,)), ((), ())),
                        preferred_element_type=jnp.float32) + t_ref[...]
    apos_ref[...] = s

    cross = lax.dot_general(s, tgt_ref[...], (((1,), (1,)), ((), ())),
                            preferred_element_type=jnp.float32)
    s2 = jnp.sum(s * s, axis=1, keepdims=True)
    d = jnp.maximum(s2 + t2_ref[...] - 2.0 * cross, 0.0)

    rmin = jnp.min(d, axis=1, keepdims=True)                               # (N,1)
    cmin = jnp.min(d, axis=0, keepdims=True)                               # (1,Mpad)
    valid = lax.broadcasted_iota(jnp.int32, cmin.shape, 1) < m_valid
    cmin = jnp.where(valid, cmin, 0.0)

    n = s.shape[0]
    loss_ref[...] = (jnp.sum(rmin, axis=0, keepdims=True) * (1.0 / n)
                     + jnp.sum(cmin, axis=1, keepdims=True) * (1.0 / m_valid))


def chamfer_final(src, tgt_pad, t2_row, r_acc, t_acc, m_valid):
    n = src.shape[0]
    ins = (src, tgt_pad, t2_row, r_acc, t_acc.reshape(1, 3))
    apos, loss = pl.pallas_call(
        functools.partial(_chamfer_final_kernel, m_valid=m_valid),
        grid=(1,),
        in_specs=_full_specs([a.shape for a in ins]),
        out_specs=(pl.BlockSpec((n, 3), lambda i: (0, 0)),
                   pl.BlockSpec((1, 1), lambda i: (0, 0))),
        out_shape=(jax.ShapeDtypeStruct((n, 3), jnp.float32),
                   jax.ShapeDtypeStruct((1, 1), jnp.float32)),
        compiler_params=_ARB,
    )(*ins)
    return apos, loss[0, 0]


# ---------------------------------------------------------------------------
# Plain-JAX glue (graph normalization, Kabsch SVD, ICP driver)
# ---------------------------------------------------------------------------
def gcn_norm_dense(edge_index, num_nodes):
    """Dense A_hat = D^{-1/2} (A + I) D^{-1/2}, PyG GCNConv convention:
    out[col] += norm * x[row]."""
    row, col = edge_index[0], edge_index[1]
    self_loops = jnp.arange(num_nodes, dtype=row.dtype)
    row = jnp.concatenate([row, self_loops])
    col = jnp.concatenate([col, self_loops])
    deg = jnp.zeros((num_nodes,), jnp.float32).at[col].add(1.0)
    dinv = jnp.where(deg > 0, 1.0 / jnp.sqrt(deg), 0.0)
    vals = dinv[row] * dinv[col]
    a = jnp.zeros((num_nodes, num_nodes), jnp.float32).at[col, row].add(vals)
    return a


def icp_align(src0, tgt, iters=10):
    """Point-to-point ICP (Kabsch).  Each iteration is one Pallas kernel that
    produces (H, cs, ct); only the 3x3 SVD / det / compose stay in XLA.  The
    accumulated (R, t) are the loop carry, so src0/tgt are never rewritten."""
    # TODO(synk): convergence_threshold early-exit of BatchedICP not implemented
    #             (fixed max_iterations=10 used).
    m = tgt.shape[0]
    m_pad = max(128, ((m + 127) // 128) * 128)

    # Pad targets to a lane-dense 128 with a far-away finite sentinel.
    pad = jnp.full((m_pad - m, 3), 1e6, jnp.float32)
    tgt_pad = jnp.concatenate([tgt, pad], axis=0)                          # (Mpad,3)
    valid_col = jnp.concatenate([jnp.ones((m, 1), jnp.float32),
                                 jnp.zeros((m_pad - m, 1), jnp.float32)], 0)
    tgt_aug = jnp.concatenate([tgt_pad, valid_col], axis=1)                # (Mpad,4)
    t2_row = jnp.sum(tgt_pad * tgt_pad, axis=1).reshape(1, m_pad)          # (1,Mpad)

    def body(_, carry):
        r_acc, t_acc = carry
        stats = icp_step(src0, tgt_pad, tgt_aug, t2_row, r_acc, t_acc)
        h, cs, ct = stats[0:3], stats[3], stats[4]
        u, _, vt = jnp.linalg.svd(h)
        sgn = jnp.sign(jnp.linalg.det(vt.T @ u.T))
        dd = jnp.concatenate([jnp.ones((2,), jnp.float32), sgn[None]])
        r_d = (vt.T * dd) @ u.T                       # vt.T @ diag(dd) @ u.T
        t_d = ct - r_d @ cs
        return r_d @ r_acc, r_d @ t_acc + t_d

    r0 = jnp.eye(3, dtype=jnp.float32)
    t0 = jnp.zeros((3,), jnp.float32)
    r_acc, t_acc = lax.fori_loop(0, iters, body, (r0, t0))
    return r_acc, t_acc, tgt_pad, t2_row


def init_params(key, in_c, hid_c, out_c):
    ks = jax.random.split(key, 8)

    def glorot(k, fan_in, fan_out):
        lim = jnp.sqrt(6.0 / (fan_in + fan_out))
        return jax.random.uniform(k, (fan_in, fan_out), jnp.float32, -lim, lim)

    lim_l = 1.0 / jnp.sqrt(float(out_c))
    return {
        "w1": glorot(ks[0], in_c, hid_c), "b1": jnp.zeros((hid_c,), jnp.float32),
        "w2": glorot(ks[1], hid_c, hid_c), "b2": jnp.zeros((hid_c,), jnp.float32),
        "w3": glorot(ks[2], hid_c, out_c), "b3": jnp.zeros((out_c,), jnp.float32),
        "wl": jax.random.uniform(ks[3], (out_c, 3), jnp.float32, -lim_l, lim_l),
        "bl": jax.random.uniform(ks[4], (3,), jnp.float32, -lim_l, lim_l),
    }


def spatial_gnn_forward(params, x, edge_index, pos):
    # batch=None path: all nodes belong to a single graph / point cloud.
    n = x.shape[0]
    a_norm = gcn_norm_dense(edge_index, n)

    # One fused kernel: 3x GCN + Linear offset + pos add.
    feats, transformed_pos = gnn_forward_fused(a_norm, x, params, pos)

    # ICP (10 iterations, one kernel + one 3x3 SVD each).
    r_acc, t_acc, tgt_pad, t2_row = icp_align(transformed_pos, pos, iters=10)

    # Final kernel: aligned positions + symmetric Chamfer loss (mean).
    aligned_pos, loss = chamfer_final(transformed_pos, tgt_pad, t2_row,
                                      r_acc, t_acc, m_valid=pos.shape[0])
    return feats, aligned_pos, loss


if __name__ == "__main__":
    key = jax.random.PRNGKey(0)
    ks = jax.random.split(key, 6)

    N, E = 64, 128
    in_c, hid_c, out_c = 4, 32, 16

    x = jax.random.normal(ks[0], (N, in_c), jnp.float32)
    pos = jax.random.normal(ks[1], (N, 3), jnp.float32)
    src = jax.random.randint(ks[2], (E,), 0, N, dtype=jnp.int32)
    dst = jax.random.randint(ks[3], (E,), 0, N, dtype=jnp.int32)
    edge_index = jnp.stack([jnp.concatenate([src, dst]),
                            jnp.concatenate([dst, src])])  # undirected graph

    params = init_params(ks[4], in_c, hid_c, out_c)

    fwd = jax.jit(spatial_gnn_forward)
    feats, aligned_pos, loss = fwd(params, x, edge_index, pos)
    jax.block_until_ready((feats, aligned_pos, loss))

    assert feats.shape == (N, out_c)
    assert aligned_pos.shape == (N, 3)
    assert loss.shape == ()
    assert bool(jnp.isfinite(loss))
    print("KERNEL_OK")
</pallas_src>

<mosaic_0001>
module attributes {stable_mosaic.version = 11 : i64} {
  func.func private @main(%arg0: i32) attributes {dimension_semantics = [#tpu.dimension_semantics<core_parallel>], iteration_bounds = array<i64: 2>, tpu.core_type = #tpu.core_type<sc_scalar_subcore>, window_params = []} {
    return
  }
}

module attributes {stable_mosaic.version = 11 : i64} {
  func.func private @main(%arg0: i32) attributes {dimension_semantics = [#tpu.dimension_semantics<core_parallel>], iteration_bounds = array<i64: 2>, tpu.core_type = #tpu.core_type<sc_scalar_subcore>, window_params = []} {
    return
  }
}

module attributes {stable_mosaic.version = 11 : i64} {
  func.func @_gnn_fused_kernel(%arg0: i32, %arg1: memref<64x64xf32, #tpu.memory_space<vmem>>, %arg2: memref<64x4xf32, #tpu.memory_space<vmem>>, %arg3: memref<4x32xf32, #tpu.memory_space<vmem>>, %arg4: memref<1x32xf32, #tpu.memory_space<vmem>>, %arg5: memref<32x32xf32, #tpu.memory_space<vmem>>, %arg6: memref<1x32xf32, #tpu.memory_space<vmem>>, %arg7: memref<32x16xf32, #tpu.memory_space<vmem>>, %arg8: memref<1x16xf32, #tpu.memory_space<vmem>>, %arg9: memref<16x3xf32, #tpu.memory_space<vmem>>, %arg10: memref<1x3xf32, #tpu.memory_space<vmem>>, %arg11: memref<64x3xf32, #tpu.memory_space<vmem>>, %arg12: memref<64x16xf32, #tpu.memory_space<vmem>>, %arg13: memref<64x3xf32, #tpu.memory_space<vmem>>) attributes {dimension_semantics = [#tpu.dimension_semantics<arbitrary>], iteration_bounds = array<i64: 1>, scalar_prefetch = 0 : i64, scratch_operands = 0 : i64, tpu.core_type = #tpu.core_type<tc>, window_params = [{pipeline_mode = #tpu.pipeline_mode<synchronous>, transform_indices = @transform_0, window_bounds = array<i64: 64, 64>}, {pipeline_mode = #tpu.pipeline_mode<synchronous>, transform_indices = @transform_1, window_bounds = array<i64: 64, 4>}, {pipeline_mode = #tpu.pipeline_mode<synchronous>, transform_indices = @transform_2, window_bounds = array<i64: 4, 32>}, {pipeline_mode = #tpu.pipeline_mode<synchronous>, transform_indices = @transform_3, window_bounds = array<i64: 1, 32>}, {pipeline_mode = #tpu.pipeline_mode<synchronous>, transform_indices = @transform_4, window_bounds = array<i64: 32, 32>}, {pipeline_mode = #tpu.pipeline_mode<synchronous>, transform_indices = @transform_5, window_bounds = array<i64: 1, 32>}, {pipeline_mode = #tpu.pipeline_mode<synchronous>, transform_indices = @transform_6, window_bounds = array<i64: 32, 16>}, {pipeline_mode = #tpu.pipeline_mode<synchronous>, transform_indices = @transform_7, window_bounds = array<i64: 1, 16>}, {pipeline_mode = #tpu.pipeline_mode<synchronous>, transform_indices = @transform_8, window_bounds = array<i64: 16, 3>}, {pipeline_mode = #tpu.pipeline_mode<synchronous>, transform_indices = @transform_9, window_bounds = array<i64: 1, 3>}, {pipeline_mode = #tpu.pipeline_mode<synchronous>, transform_indices = @transform_10, window_bounds = array<i64: 64, 3>}, {pipeline_mode = #tpu.pipeline_mode<synchronous>, transform_indices = @transform_11, window_bounds = array<i64: 64, 16>}, {pipeline_mode = #tpu.pipeline_mode<synchronous>, transform_indices = @transform_12, window_bounds = array<i64: 64, 3>}]} {
    %c0 = arith.constant 0 : index
    %c0_0 = arith.constant 0 : index
    %0 = vector.load %arg1[%c0, %c0_0] : memref<64x64xf32, #tpu.memory_space<vmem>>, vector<64x64xf32>
    %1 = arith.truncf %0 : vector<64x64xf32> to vector<64x64xbf16>
    %c0_1 = arith.constant 0 : index
    %c0_2 = arith.constant 0 : index
    %2 = vector.load %arg2[%c0_1, %c0_2] : memref<64x4xf32, #tpu.memory_space<vmem>>, vector<64x4xf32>
    %3 = arith.truncf %2 : vector<64x4xf32> to vector<64x4xbf16>
    %c0_3 = arith.constant 0 : index
    %c0_4 = arith.constant 0 : index
    %4 = vector.load %arg3[%c0_3, %c0_4] : memref<4x32xf32, #tpu.memory_space<vmem>>, vector<4x32xf32>
    %5 = arith.truncf %4 : vector<4x32xf32> to vector<4x32xbf16>
    %cst = arith.constant dense<0.000000e+00> : vector<64x32xf32>
    %6 = tpu.matmul %3, %5, %cst {dimension_numbers = #tpu.dot_dimension_numbers<[1], [0], [0], [1], [0, 0, 1, 1], [], []>} : vector<64x4xbf16>, vector<4x32xbf16>, vector<64x32xf32> -> vector<64x32xf32>
    %7 = arith.truncf %6 : vector<64x32xf32> to vector<64x32xbf16>
    %cst_5 = arith.constant dense<0.000000e+00> : vector<64x32xf32>
    %8 = tpu.matmul %1, %7, %cst_5 {dimension_numbers = #tpu.dot_dimension_numbers<[1], [0], [0], [1], [0, 0, 1, 1], [], []>} : vector<64x64xbf16>, vector<64x32xbf16>, vector<64x32xf32> -> vector<64x32xf32>
    %c0_6 = arith.constant 0 : index
    %c0_7 = arith.constant 0 : index
    %9 = vector.load %arg4[%c0_6, %c0_7] : memref<1x32xf32, #tpu.memory_space<vmem>>, vector<1x32xf32>
    %10 = vector.broadcast %9 : vector<1x32xf32> to vector<64x32xf32>
    %11 = arith.addf %8, %10 : vector<64x32xf32>
    %cst_8 = arith.constant 0.000000e+00 : f32
    %12 = vector.broadcast %cst_8 : f32 to vector<64x32xf32>
    %13 = arith.maximumf %11, %12 : vector<64x32xf32>
    %14 = arith.truncf %13 : vector<64x32xf32> to vector<64x32xbf16>
    %c0_9 = arith.constant 0 : index
    %c0_10 = arith.constant 0 : index
    %15 = vector.load %arg5[%c0_9, %c0_10] : memref<32x32xf32, #tpu.memory_space<vmem>>, vector<32x32xf32>
    %16 = arith.truncf %15 : vector<32x32xf32> to vector<32x32xbf16>
    %cst_11 = arith.constant dense<0.000000e+00> : vector<64x32xf32>
    %17 = tpu.matmul %14, %16, %cst_11 {dimension_numbers = #tpu.dot_dimension_numbers<[1], [0], [0], [1], [0, 0, 1, 1], [], []>} : vector<64x32xbf16>, vector<32x32xbf16>, vector<64x32xf32> -> vector<64x32xf32>
    %18 = arith.truncf %17 : vector<64x32xf32> to vector<64x32xbf16>
    %cst_12 = arith.constant dense<0.000000e+00> : vector<64x32xf32>
    %19 = tpu.matmul %1, %18, %cst_12 {dimension_numbers = #tpu.dot_dimension_numbers<[1], [0], [0], [1], [0, 0, 1, 1], [], []>} : vector<64x64xbf16>, vector<64x32xbf16>, vector<64x32xf32> -> vector<64x32xf32>
    %c0_13 = arith.constant 0 : index
    %c0_14 = arith.constant 0 : index
    %20 = vector.load %arg6[%c0_13, %c0_14] : memref<1x32xf32, #tpu.memory_space<vmem>>, vector<1x32xf32>
    %21 = vector.broadcast %20 : vector<1x32xf32> to vector<64x32xf32>
    %22 = arith.addf %19, %21 : vector<64x32xf32>
    %cst_15 = arith.constant 0.000000e+00 : f32
    %23 = vector.broadcast %cst_15 : f32 to vector<64x32xf32>
    %24 = arith.maximumf %22, %23 : vector<64x32xf32>
    %25 = arith.truncf %24 : vector<64x32xf32> to vector<64x32xbf16>
    %c0_16 = arith.constant 0 : index
    %c0_17 = arith.constant 0 : index
    %26 = vector.load %arg7[%c0_16, %c0_17] : memref<32x16xf32, #tpu.memory_space<vmem>>, vector<32x16xf32>
    %27 = arith.truncf %26 : vector<32x16xf32> to vector<32x16xbf16>
    %cst_18 = arith.constant dense<0.000000e+00> : vector<64x16xf32>
    %28 = tpu.matmul %25, %27, %cst_18 {dimension_numbers = #tpu.dot_dimension_numbers<[1], [0], [0], [1], [0, 0, 1, 1], [], []>} : vector<64x32xbf16>, vector<32x16xbf16>, vector<64x16xf32> -> vector<64x16xf32>
    %29 = arith.truncf %28 : vector<64x16xf32> to vector<64x16xbf16>
    %cst_19 = arith.constant dense<0.000000e+00> : vector<64x16xf32>
    %30 = tpu.matmul %1, %29, %cst_19 {dimension_numbers = #tpu.dot_dimension_numbers<[1], [0], [0], [1], [0, 0, 1, 1], [], []>} : vector<64x64xbf16>, vector<64x16xbf16>, vector<64x16xf32> -> vector<64x16xf32>
    %c0_20 = arith.constant 0 : index
    %c0_21 = arith.constant 0 : index
    %31 = vector.load %arg8[%c0_20, %c0_21] : memref<1x16xf32, #tpu.memory_space<vmem>>, vector<1x16xf32>
    %32 = vector.broadcast %31 : vector<1x16xf32> to vector<64x16xf32>
    %33 = arith.addf %30, %32 : vector<64x16xf32>
    %c0_22 = arith.constant 0 : index
    %c0_23 = arith.constant 0 : index
    %34 = vector.load %arg12[%c0_22, %c0_23] : memref<64x16xf32, #tpu.memory_space<vmem>>, vector<64x16xf32>
    tpu.vector_store %arg12[%c0_22, %c0_23], %33 {strides = array<i32>} : memref<64x16xf32, #tpu.memory_space<vmem>>, vector<64x16xf32>,
    %c0_24 = arith.constant 0 : index
    %c0_25 = arith.constant 0 : index
    %35 = vector.load %arg9[%c0_24, %c0_25] : memref<16x3xf32, #tpu.memory_space<vmem>>, vector<16x3xf32>
    %cst_26 = arith.constant dense<0.000000e+00> : vector<64x3xf32>
    %36 = tpu.matmul %33, %35, %cst_26 {dimension_numbers = #tpu.dot_dimension_numbers<[1], [0], [0], [1], [0, 0, 1, 1], [], []>} : vector<64x16xf32>, vector<16x3xf32>, vector<64x3xf32> -> vector<64x3xf32>
    %c0_27 = arith.constant 0 : index
    %c0_28 = arith.constant 0 : index
    %37 = vector.load %arg11[%c0_27, %c0_28] : memref<64x3xf32, #tpu.memory_space<vmem>>, vector<64x3xf32>
    %38 = arith.addf %37, %36 : vector<64x3xf32>
    %c0_29 = arith.constant 0 : index
    %c0_30 = arith.constant 0 : index
    %39 = vector.load %arg10[%c0_29, %c0_30] : memref<1x3xf32, #tpu.memory_space<vmem>>, vector<1x3xf32>
    %40 = vector.broadcast %39 : vector<1x3xf32> to vector<64x3xf32>
    %41 = arith.addf %38, %40 : vector<64x3xf32>
    %c0_31 = arith.constant 0 : index
    %c0_32 = arith.constant 0 : index
    %42 = vector.load %arg13[%c0_31, %c0_32] : memref<64x3xf32, #tpu.memory_space<vmem>>, vector<64x3xf32>
    tpu.vector_store %arg13[%c0_31, %c0_32], %41 {strides = array<i32>} : memref<64x3xf32, #tpu.memory_space<vmem>>, vector<64x3xf32>,
    return
  }
  func.func @transform_0(%arg0: i32) -> (i32, i32) {
    %c0_i32 = arith.constant 0 : i32
    %c0_i32_0 = arith.constant 0 : i32
    %c0_i32_1 = arith.constant 0 : i32
    return %c0_i32, %c0_i32_0 : i32, i32
  }
  func.func @transform_1(%arg0: i32) -> (i32, i32) {
    %c0_i32 = arith.constant 0 : i32
    %c0_i32_0 = arith.constant 0 : i32
    %c0_i32_1 = arith.constant 0 : i32
    return %c0_i32, %c0_i32_0 : i32, i32
  }
  func.func @transform_2(%arg0: i32) -> (i32, i32) {
    %c0_i32 = arith.constant 0 : i32
    %c0_i32_0 = arith.constant 0 : i32
    %c0_i32_1 = arith.constant 0 : i32
    return %c0_i32, %c0_i32_0 : i32, i32
  }
  func.func @transform_3(%arg0: i32) -> (i32, i32) {
    %c0_i32 = arith.constant 0 : i32
    %c0_i32_0 = arith.constant 0 : i32
    %c0_i32_1 = arith.constant 0 : i32
    return %c0_i32, %c0_i32_0 : i32, i32
  }
  func.func @transform_4(%arg0: i32) -> (i32, i32) {
    %c0_i32 = arith.constant 0 : i32
    %c0_i32_0 = arith.constant 0 : i32
    %c0_i32_1 = arith.constant 0 : i32
    return %c0_i32, %c0_i32_0 : i32, i32
  }
  func.func @transform_5(%arg0: i32) -> (i32, i32) {
    %c0_i32 = arith.constant 0 : i32
    %c0_i32_0 = arith.constant 0 : i32
    %c0_i32_1 = arith.constant 0 : i32
    return %c0_i32, %c0_i32_0 : i32, i32
  }
  func.func @transform_6(%arg0: i32) -> (i32, i32) {
    %c0_i32 = arith.constant 0 : i32
    %c0_i32_0 = arith.constant 0 : i32
    %c0_i32_1 = arith.constant 0 : i32
    return %c0_i32, %c0_i32_0 : i32, i32
  }
  func.func @transform_7(%arg0: i32) -> (i32, i32) {
    %c0_i32 = arith.constant 0 : i32
    %c0_i32_0 = arith.constant 0 : i32
    %c0_i32_1 = arith.constant 0 : i32
    return %c0_i32, %c0_i32_0 : i32, i32
  }
  func.func @transform_8(%arg0: i32) -> (i32, i32) {
    %c0_i32 = arith.constant 0 : i32
    %c0_i32_0 = arith.constant 0 : i32
    %c0_i32_1 = arith.constant 0 : i32
    return %c0_i32, %c0_i32_0 : i32, i32
  }
  func.func @transform_9(%arg0: i32) -> (i32, i32) {
    %c0_i32 = arith.constant 0 : i32
    %c0_i32_0 = arith.constant 0 : i32
    %c0_i32_1 = arith.constant 0 : i32
    return %c0_i32, %c0_i32_0 : i32, i32
  }
  func.func @transform_10(%arg0: i32) -> (i32, i32) {
    %c0_i32 = arith.constant 0 : i32
    %c0_i32_0 = arith.constant 0 : i32
    %c0_i32_1 = arith.constant 0 : i32
    return %c0_i32, %c0_i32_0 : i32, i32
  }
  func.func @transform_11(%arg0: i32) -> (i32, i32) {
    %c0_i32 = arith.constant 0 : i32
    %c0_i32_0 = arith.constant 0 : i32
    %c0_i32_1 = arith.constant 0 : i32
    return %c0_i32, %c0_i32_0 : i32, i32
  }
  func.func @transform_12(%arg0: i32) -> (i32, i32) {
    %c0_i32 = arith.constant 0 : i32
    %c0_i32_0 = arith.constant 0 : i32
    %c0_i32_1 = arith.constant 0 : i32
    return %c0_i32, %c0_i32_0 : i32, i32
  }
}

module attributes {stable_mosaic.version = 11 : i64} {
  func.func @_icp_step_kernel(%arg0: i32, %arg1: memref<64x3xf32, #tpu.memory_space<vmem>>, %arg2: memref<128x3xf32, #tpu.memory_space<vmem>>, %arg3: memref<128x4xf32, #tpu.memory_space<vmem>>, %arg4: memref<1x128xf32, #tpu.memory_space<vmem>>, %arg5: memref<3x3xf32, #tpu.memory_space<vmem>>, %arg6: memref<1x3xf32, #tpu.memory_space<vmem>>, %arg7: memref<5x3xf32, #tpu.memory_space<vmem>>) attributes {dimension_semantics = [#tpu.dimension_semantics<arbitrary>], iteration_bounds = array<i64: 1>, scalar_prefetch = 0 : i64, scratch_operands = 0 : i64, tpu.core_type = #tpu.core_type<tc>, window_params = [{pipeline_mode = #tpu.pipeline_mode<synchronous>, transform_indices = @transform_0, window_bounds = array<i64: 64, 3>}, {pipeline_mode = #tpu.pipeline_mode<synchronous>, transform_indices = @transform_1, window_bounds = array<i64: 128, 3>}, {pipeline_mode = #tpu.pipeline_mode<synchronous>, transform_indices = @transform_2, window_bounds = array<i64: 128, 4>}, {pipeline_mode = #tpu.pipeline_mode<synchronous>, transform_indices = @transform_3, window_bounds = array<i64: 1, 128>}, {pipeline_mode = #tpu.pipeline_mode<synchronous>, transform_indices = @transform_4, window_bounds = array<i64: 3, 3>}, {pipeline_mode = #tpu.pipeline_mode<synchronous>, transform_indices = @transform_5, window_bounds = array<i64: 1, 3>}, {pipeline_mode = #tpu.pipeline_mode<synchronous>, transform_indices = @transform_6, window_bounds = array<i64: 5, 3>}]} {
    %c0 = arith.constant 0 : index
    %c0_0 = arith.constant 0 : index
    %0 = vector.load %arg1[%c0, %c0_0] : memref<64x3xf32, #tpu.memory_space<vmem>>, vector<64x3xf32>
    %c0_1 = arith.constant 0 : index
    %c0_2 = arith.constant 0 : index
    %1 = vector.load %arg5[%c0_1, %c0_2] : memref<3x3xf32, #tpu.memory_space<vmem>>, vector<3x3xf32>
    %cst = arith.constant dense<0.000000e+00> : vector<64x3xf32>
    %2 = tpu.matmul %0, %1, %cst {dimension_numbers = #tpu.dot_dimension_numbers<[1], [1], [0], [0], [0, 0, 1, 0], [], []>} : vector<64x3xf32>, vector<3x3xf32>, vector<64x3xf32> -> vector<64x3xf32>
    %c0_3 = arith.constant 0 : index
    %c0_4 = arith.constant 0 : index
    %3 = vector.load %arg6[%c0_3, %c0_4] : memref<1x3xf32, #tpu.memory_space<vmem>>, vector<1x3xf32>
    %4 = vector.broadcast %3 : vector<1x3xf32> to vector<64x3xf32>
    %5 = arith.addf %2, %4 : vector<64x3xf32>
    %c0_5 = arith.constant 0 : index
    %c0_6 = arith.constant 0 : index
    %6 = vector.load %arg2[%c0_5, %c0_6] : memref<128x3xf32, #tpu.memory_space<vmem>>, vector<128x3xf32>
    %cst_7 = arith.constant dense<0.000000e+00> : vector<64x128xf32>
    %7 = tpu.matmul %5, %6, %cst_7 {dimension_numbers = #tpu.dot_dimension_numbers<[1], [1], [0], [0], [0, 0, 1, 0], [], []>} : vector<64x3xf32>, vector<128x3xf32>, vector<64x128xf32> -> vector<64x128xf32>
    %8 = arith.mulf %5, %5 : vector<64x3xf32>
    %cst_8 = arith.constant dense<0.000000e+00> : vector<64xf32>
    %9 = vector.multi_reduction <add>, %8, %cst_8 [1] : vector<64x3xf32> to vector<64xf32>
    %10 = vector.shape_cast %9 : vector<64xf32> to vector<64x1xf32>
    %c0_9 = arith.constant 0 : index
    %c0_10 = arith.constant 0 : index
    %11 = vector.load %arg4[%c0_9, %c0_10] : memref<1x128xf32, #tpu.memory_space<vmem>>, vector<1x128xf32>
    %12 = vector.broadcast %10 : vector<64x1xf32> to vector<64x128xf32>
    %13 = vector.broadcast %11 : vector<1x128xf32> to vector<64x128xf32>
    %14 = arith.addf %12, %13 : vector<64x128xf32>
    %cst_11 = arith.constant 2.000000e+00 : f32
    %15 = vector.broadcast %cst_11 : f32 to vector<64x128xf32>
    %16 = arith.mulf %15, %7 : vector<64x128xf32>
    %17 = arith.subf %14, %16 : vector<64x128xf32>
    %cst_12 = arith.constant 0.000000e+00 : f32
    %18 = vector.broadcast %cst_12 : f32 to vector<64x128xf32>
    %19 = arith.maximumf %17, %18 : vector<64x128xf32>
    %cst_13 = arith.constant dense<0x7F800000> : vector<64xf32>
    %20 = vector.multi_reduction <minimumf>, %19, %cst_13 [1] : vector<64x128xf32> to vector<64xf32>
    %21 = vector.shape_cast %20 : vector<64xf32> to vector<64x1xf32>
    %22 = vector.broadcast %21 : vector<64x1xf32> to vector<64x128xf32>
    %23 = arith.cmpf ole, %19, %22 : vector<64x128xf32>
    %24 = arith.extui %23 : vector<64x128xi1> to vector<64x128xi32>
    %25 = arith.sitofp %24 : vector<64x128xi32> to vector<64x128xf32>
    %c0_14 = arith.constant 0 : index
    %c0_15 = arith.constant 0 : index
    %26 = vector.load %arg3[%c0_14, %c0_15] : memref<128x4xf32, #tpu.memory_space<vmem>>, vector<128x4xf32>
    %cst_16 = arith.constant dense<0.000000e+00> : vector<64x4xf32>
    %27 = tpu.matmul %25, %26, %cst_16 {dimension_numbers = #tpu.dot_dimension_numbers<[1], [0], [0], [1], [0, 0, 1, 1], [], []>} : vector<64x128xf32>, vector<128x4xf32>, vector<64x4xf32> -> vector<64x4xf32>
    %28 = vector.extract_strided_slice %27 {offsets = [0, 0], sizes = [64, 3], strides = [1, 1]} : vector<64x4xf32> to vector<64x3xf32>
    %29 = vector.extract_strided_slice %27 {offsets = [0, 3], sizes = [64, 1], strides = [1, 1]} : vector<64x4xf32> to vector<64x1xf32>
    %30 = vector.broadcast %29 : vector<64x1xf32> to vector<64x3xf32>
    %31 = arith.divf %28, %30 : vector<64x3xf32>
    %cst_17 = arith.constant dense<0.000000e+00> : vector<3xf32>
    %32 = vector.multi_reduction <add>, %5, %cst_17 [0] : vector<64x3xf32> to vector<3xf32>
    %33 = vector.shape_cast %32 : vector<3xf32> to vector<1x3xf32>
    %cst_18 = arith.constant 1.562500e-02 : f32
    %34 = vector.broadcast %cst_18 : f32 to vector<1x3xf32>
    %35 = arith.mulf %33, %34 : vector<1x3xf32>
    %cst_19 = arith.constant dense<0.000000e+00> : vector<3xf32>
    %36 = vector.multi_reduction <add>, %31, %cst_19 [0] : vector<64x3xf32> to vector<3xf32>
    %37 = vector.shape_cast %36 : vector<3xf32> to vector<1x3xf32>
    %cst_20 = arith.constant 1.562500e-02 : f32
    %38 = vector.broadcast %cst_20 : f32 to vector<1x3xf32>
    %39 = arith.mulf %37, %38 : vector<1x3xf32>
    %40 = vector.broadcast %35 : vector<1x3xf32> to vector<64x3xf32>
    %41 = arith.subf %5, %40 : vector<64x3xf32>
    %42 = vector.broadcast %39 : vector<1x3xf32> to vector<64x3xf32>
    %43 = arith.subf %31, %42 : vector<64x3xf32>
    %cst_21 = arith.constant dense<0.000000e+00> : vector<3x3xf32>
    %44 = tpu.matmul %41, %43, %cst_21 {dimension_numbers = #tpu.dot_dimension_numbers<[0], [0], [1], [1], [0, 1, 1, 1], [], []>} : vector<64x3xf32>, vector<64x3xf32>, vector<3x3xf32> -> vector<3x3xf32>
    %c0_22 = arith.constant 0 : index
    %c0_23 = arith.constant 0 : index
    %45 = vector.load %arg7[%c0_22, %c0_23] : memref<5x3xf32, #tpu.memory_space<vmem>>, vector<3x3xf32>
    tpu.vector_store %arg7[%c0_22, %c0_23], %44 {strides = array<i32>} : memref<5x3xf32, #tpu.memory_space<vmem>>, vector<3x3xf32>,
    %c3 = arith.constant 3 : index
    %c0_24 = arith.constant 0 : index
    %46 = vector.load %arg7[%c3, %c0_24] : memref<5x3xf32, #tpu.memory_space<vmem>>, vector<1x3xf32>
    tpu.vector_store %arg7[%c3, %c0_24], %35 {strides = array<i32>} : memref<5x3xf32, #tpu.memory_space<vmem>>, vector<1x3xf32>,
    %c4 = arith.constant 4 : index
    %c0_25 = arith.constant 0 : index
    %47 = vector.load %arg7[%c4, %c0_25] : memref<5x3xf32, #tpu.memory_space<vmem>>, vector<1x3xf32>
    tpu.vector_store %arg7[%c4, %c0_25], %39 {strides = array<i32>} : memref<5x3xf32, #tpu.memory_space<vmem>>, vector<1x3xf32>,
    return
  }
  func.func @transform_0(%arg0: i32) -> (i32, i32) {
    %c0_i32 = arith.constant 0 : i32
    %c0_i32_0 = arith.constant 0 : i32
    %c0_i32_1 = arith.constant 0 : i32
    return %c0_i32, %c0_i32_0 : i32, i32
  }
  func.func @transform_1(%arg0: i32) -> (i32, i32) {
    %c0_i32 = arith.constant 0 : i32
    %c0_i32_0 = arith.constant 0 : i32
    %c0_i32_1 = arith.constant 0 : i32
    return %c0_i32, %c0_i32_0 : i32, i32
  }
  func.func @transform_2(%arg0: i32) -> (i32, i32) {
    %c0_i32 = arith.constant 0 : i32
    %c0_i32_0 = arith.constant 0 : i32
    %c0_i32_1 = arith.constant 0 : i32
    return %c0_i32, %c0_i32_0 : i32, i32
  }
  func.func @transform_3(%arg0: i32) -> (i32, i32) {
    %c0_i32 = arith.constant 0 : i32
    %c0_i32_0 = arith.constant 0 : i32
    %c0_i32_1 = arith.constant 0 : i32
    return %c0_i32, %c0_i32_0 : i32, i32
  }
  func.func @transform_4(%arg0: i32) -> (i32, i32) {
    %c0_i32 = arith.constant 0 : i32
    %c0_i32_0 = arith.constant 0 : i32
    %c0_i32_1 = arith.constant 0 : i32
    return %c0_i32, %c0_i32_0 : i32, i32
  }
  func.func @transform_5(%arg0: i32) -> (i32, i32) {
    %c0_i32 = arith.constant 0 : i32
    %c0_i32_0 = arith.constant 0 : i32
    %c0_i32_1 = arith.constant 0 : i32
    return %c0_i32, %c0_i32_0 : i32, i32
  }
  func.func @transform_6(%arg0: i32) -> (i32, i32) {
    %c0_i32 = arith.constant 0 : i32
    %c0_i32_0 = arith.constant 0 : i32
    %c0_i32_1 = arith.constant 0 : i32
    return %c0_i32, %c0_i32_0 : i32, i32
  }
}

module attributes {stable_mosaic.version = 11 : i64} {
  func.func @_chamfer_final_kernel(%arg0: i32, %arg1: memref<64x3xf32, #tpu.memory_space<vmem>>, %arg2: memref<128x3xf32, #tpu.memory_space<vmem>>, %arg3: memref<1x128xf32, #tpu.memory_space<vmem>>, %arg4: memref<3x3xf32, #tpu.memory_space<vmem>>, %arg5: memref<1x3xf32, #tpu.memory_space<vmem>>, %arg6: memref<64x3xf32, #tpu.memory_space<vmem>>, %arg7: memref<1x1xf32, #tpu.memory_space<vmem>>) attributes {dimension_semantics = [#tpu.dimension_semantics<arbitrary>], iteration_bounds = array<i64: 1>, scalar_prefetch = 0 : i64, scratch_operands = 0 : i64, tpu.core_type = #tpu.core_type<tc>, window_params = [{pipeline_mode = #tpu.pipeline_mode<synchronous>, transform_indices = @transform_0, window_bounds = array<i64: 64, 3>}, {pipeline_mode = #tpu.pipeline_mode<synchronous>, transform_indices = @transform_1, window_bounds = array<i64: 128, 3>}, {pipeline_mode = #tpu.pipeline_mode<synchronous>, transform_indices = @transform_2, window_bounds = array<i64: 1, 128>}, {pipeline_mode = #tpu.pipeline_mode<synchronous>, transform_indices = @transform_3, window_bounds = array<i64: 3, 3>}, {pipeline_mode = #tpu.pipeline_mode<synchronous>, transform_indices = @transform_4, window_bounds = array<i64: 1, 3>}, {pipeline_mode = #tpu.pipeline_mode<synchronous>, transform_indices = @transform_5, window_bounds = array<i64: 64, 3>}, {pipeline_mode = #tpu.pipeline_mode<synchronous>, transform_indices = @transform_6, window_bounds = array<i64: 1, 1>}]} {
    %c0 = arith.constant 0 : index
    %c0_0 = arith.constant 0 : index
    %0 = vector.load %arg1[%c0, %c0_0] : memref<64x3xf32, #tpu.memory_space<vmem>>, vector<64x3xf32>
    %c0_1 = arith.constant 0 : index
    %c0_2 = arith.constant 0 : index
    %1 = vector.load %arg4[%c0_1, %c0_2] : memref<3x3xf32, #tpu.memory_space<vmem>>, vector<3x3xf32>
    %cst = arith.constant dense<0.000000e+00> : vector<64x3xf32>
    %2 = tpu.matmul %0, %1, %cst {dimension_numbers = #tpu.dot_dimension_numbers<[1], [1], [0], [0], [0, 0, 1, 0], [], []>} : vector<64x3xf32>, vector<3x3xf32>, vector<64x3xf32> -> vector<64x3xf32>
    %c0_3 = arith.constant 0 : index
    %c0_4 = arith.constant 0 : index
    %3 = vector.load %arg5[%c0_3, %c0_4] : memref<1x3xf32, #tpu.memory_space<vmem>>, vector<1x3xf32>
    %4 = vector.broadcast %3 : vector<1x3xf32> to vector<64x3xf32>
    %5 = arith.addf %2, %4 : vector<64x3xf32>
    %c0_5 = arith.constant 0 : index
    %c0_6 = arith.constant 0 : index
    %6 = vector.load %arg6[%c0_5, %c0_6] : memref<64x3xf32, #tpu.memory_space<vmem>>, vector<64x3xf32>
    tpu.vector_store %arg6[%c0_5, %c0_6], %5 {strides = array<i32>} : memref<64x3xf32, #tpu.memory_space<vmem>>, vector<64x3xf32>,
    %c0_7 = arith.constant 0 : index
    %c0_8 = arith.constant 0 : index
    %7 = vector.load %arg2[%c0_7, %c0_8] : memref<128x3xf32, #tpu.memory_space<vmem>>, vector<128x3xf32>
    %cst_9 = arith.constant dense<0.000000e+00> : vector<64x128xf32>
    %8 = tpu.matmul %5, %7, %cst_9 {dimension_numbers = #tpu.dot_dimension_numbers<[1], [1], [0], [0], [0, 0, 1, 0], [], []>} : vector<64x3xf32>, vector<128x3xf32>, vector<64x128xf32> -> vector<64x128xf32>
    %9 = arith.mulf %5, %5 : vector<64x3xf32>
    %cst_10 = arith.constant dense<0.000000e+00> : vector<64xf32>
    %10 = vector.multi_reduction <add>, %9, %cst_10 [1] : vector<64x3xf32> to vector<64xf32>
    %11 = vector.shape_cast %10 : vector<64xf32> to vector<64x1xf32>
    %c0_11 = arith.constant 0 : index
    %c0_12 = arith.constant 0 : index
    %12 = vector.load %arg3[%c0_11, %c0_12] : memref<1x128xf32, #tpu.memory_space<vmem>>, vector<1x128xf32>
    %13 = vector.broadcast %11 : vector<64x1xf32> to vector<64x128xf32>
    %14 = vector.broadcast %12 : vector<1x128xf32> to vector<64x128xf32>
    %15 = arith.addf %13, %14 : vector<64x128xf32>
    %cst_13 = arith.constant 2.000000e+00 : f32
    %16 = vector.broadcast %cst_13 : f32 to vector<64x128xf32>
    %17 = arith.mulf %16, %8 : vector<64x128xf32>
    %18 = arith.subf %15, %17 : vector<64x128xf32>
    %cst_14 = arith.constant 0.000000e+00 : f32
    %19 = vector.broadcast %cst_14 : f32 to vector<64x128xf32>
    %20 = arith.maximumf %18, %19 : vector<64x128xf32>
    %cst_15 = arith.constant dense<0x7F800000> : vector<64xf32>
    %21 = vector.multi_reduction <minimumf>, %20, %cst_15 [1] : vector<64x128xf32> to vector<64xf32>
    %22 = vector.shape_cast %21 : vector<64xf32> to vector<64x1xf32>
    %cst_16 = arith.constant dense<0x7F800000> : vector<128xf32>
    %23 = vector.multi_reduction <minimumf>, %20, %cst_16 [0] : vector<64x128xf32> to vector<128xf32>
    %24 = vector.shape_cast %23 : vector<128xf32> to vector<1x128xf32>
    %25 = tpu.iota {dimensions = array<i32: 1>} : vector<1x128xi32>
    %c64_i32 = arith.constant 64 : i32
    %26 = vector.broadcast %c64_i32 : i32 to vector<1x128xi32>
    %27 = arith.cmpi slt, %25, %26 : vector<1x128xi32>
    %cst_17 = arith.constant 0.000000e+00 : f32
    %28 = vector.broadcast %cst_17 : f32 to vector<1x128xf32>
    %29 = arith.select %27, %24, %28 : vector<1x128xi1>, vector<1x128xf32>
    %cst_18 = arith.constant dense<0.000000e+00> : vector<1xf32>
    %30 = vector.multi_reduction <add>, %22, %cst_18 [0] : vector<64x1xf32> to vector<1xf32>
    %31 = vector.shape_cast %30 : vector<1xf32> to vector<1x1xf32>
    %cst_19 = arith.constant 1.562500e-02 : f32
    %32 = vector.broadcast %cst_19 : f32 to vector<1x1xf32>
    %33 = arith.mulf %31, %32 : vector<1x1xf32>
    %cst_20 = arith.constant dense<0.000000e+00> : vector<1xf32>
    %34 = vector.multi_reduction <add>, %29, %cst_20 [1] : vector<1x128xf32> to vector<1xf32>
    %35 = vector.shape_cast %34 : vector<1xf32> to vector<1x1xf32>
    %cst_21 = arith.constant 1.562500e-02 : f32
    %36 = vector.broadcast %cst_21 : f32 to vector<1x1xf32>
    %37 = arith.mulf %35, %36 : vector<1x1xf32>
    %38 = arith.addf %33, %37 : vector<1x1xf32>
    %c0_22 = arith.constant 0 : index
    %c0_23 = arith.constant 0 : index
    %39 = vector.load %arg7[%c0_22, %c0_23] : memref<1x1xf32, #tpu.memory_space<vmem>>, vector<1x1xf32>
    tpu.vector_store %arg7[%c0_22, %c0_23], %38 {strides = array<i32>} : memref<1x1xf32, #tpu.memory_space<vmem>>, vector<1x1xf32>,
    return
  }
  func.func @transform_0(%arg0: i32) -> (i32, i32) {
    %c0_i32 = arith.constant 0 : i32
    %c0_i32_0 = arith.constant 0 : i32
    %c0_i32_1 = arith.constant 0 : i32
    return %c0_i32, %c0_i32_0 : i32, i32
  }
  func.func @transform_1(%arg0: i32) -> (i32, i32) {
    %c0_i32 = arith.constant 0 : i32
    %c0_i32_0 = arith.constant 0 : i32
    %c0_i32_1 = arith.constant 0 : i32
    return %c0_i32, %c0_i32_0 : i32, i32
  }
  func.func @transform_2(%arg0: i32) -> (i32, i32) {
    %c0_i32 = arith.constant 0 : i32
    %c0_i32_0 = arith.constant 0 : i32
    %c0_i32_1 = arith.constant 0 : i32
    return %c0_i32, %c0_i32_0 : i32, i32
  }
  func.func @transform_3(%arg0: i32) -> (i32, i32) {
    %c0_i32 = arith.constant 0 : i32
    %c0_i32_0 = arith.constant 0 : i32
    %c0_i32_1 = arith.constant 0 : i32
    return %c0_i32, %c0_i32_0 : i32, i32
  }
  func.func @transform_4(%arg0: i32) -> (i32, i32) {
    %c0_i32 = arith.constant 0 : i32
    %c0_i32_0 = arith.constant 0 : i32
    %c0_i32_1 = arith.constant 0 : i32
    return %c0_i32, %c0_i32_0 : i32, i32
  }
  func.func @transform_5(%arg0: i32) -> (i32, i32) {
    %c0_i32 = arith.constant 0 : i32
    %c0_i32_0 = arith.constant 0 : i32
    %c0_i32_1 = arith.constant 0 : i32
    return %c0_i32, %c0_i32_0 : i32, i32
  }
  func.func @transform_6(%arg0: i32) -> (i32, i32) {
    %c0_i32 = arith.constant 0 : i32
    %c0_i32_0 = arith.constant 0 : i32
    %c0_i32_1 = arith.constant 0 : i32
    return %c0_i32, %c0_i32_0 : i32, i32
  }
}

</mosaic_0001>

<bundles_post_ra>
// kernel: custom-call.49
= control target key start
LH: loop header
LB: loop body
LE: loop exit
PB: predicated region body
PF: predicated region fallthrough
CT: control target
= control target key end

     0   :  { %s6_s0 = inlined_call_operand.vmem [shape: f32[3], index: 0, kind: output, shape index: {}]  }

// kernel: spatial_gnn_forward.2
= control target key start
LH: loop header
LB: loop body
LE: loop exit
PB: predicated region body
PF: predicated region fallthrough
CT: control target
= control target key end

     0   :  { %18 = vsyncpa [#allocation3], 0  ;;  %s995_s21 = smov [#allocation2]   ;;  %s1275_s0 = inlined_call_operand.hbm [shape: f32[64,64], index: 0, kind: input, shape index: {}]   ;;  %s1276_s1 = inlined_call_operand.vmem [shape: f32[64,4], index: 1, kind: input, shape index: {}]   ;;  %s1277_s2 = inlined_call_operand.vmem [shape: f32[4,32], index: 2, kind: input, shape index: {}]   ;;  %s1278_s3 = inlined_call_operand.vmem [shape: f32[1,32], index: 3, kind: input, shape index: {}]   ;;  %s1279_s4 = inlined_call_operand.vmem [shape: f32[32,32], index: 4, kind: input, shape index: {}]   ;;  %s1280_s5 = inlined_call_operand.vmem [shape: f32[1,32], index: 5, kind: input, shape index: {}]   ;;  %s1281_s6 = inlined_call_operand.vmem [shape: f32[32,16], index: 6, kind: input, shape index: {}]   ;;  %s1282_s7 = inlined_call_operand.vmem [shape: f32[1,16], index: 7, kind: input, shape index: {}]   ;;  %s1283_s8 = inlined_call_operand.vmem [shape: f32[16,3], index: 8, kind: input, shape index: {}]   ;;  %s1284_s9 = inlined_call_operand.vmem [shape: f32[1,3], index: 9, kind: input, shape index: {}]   ;;  %s1285_s10 = inlined_call_operand.vmem [shape: f32[64,3], index: 10, kind: input, shape index: {}]   ;;  %s1286_s11 = inlined_call_operand.vmem [shape: f32[64,16], index: 11, kind: output, shape index: {0}]   ;;  %s1287_s12 = inlined_call_operand.vmem [shape: f32[64,3], index: 12, kind: output, shape index: {1}]  }
   0x1   :  { %s24_s22 = sshll.u32 %s995_s21, 4  ;;  %s25_s22 = int_to_ptr.vmem [resolvable:$true] %s24_s22 }
   0x2   :  { %s981_s23 = scalar_lea.vmem %s25_s22, 1024  ;;  %p986_p1 = scmp.lt.s32.totalorder %s25_s22, %s25_s22 }
   0x3   :  { %p982_p0 = scmp.ne.s32.totalorder %s25_s22, %s981_s23  ;;  %p987_p2 = scmp.lt.s32.totalorder %s981_s23, %s981_s23 }
   0x5   :  { %p988_p3 = por %p987_p2, %p986_p1 }
   0x7   :  { %p989_p4 = pnand %p988_p3, %p982_p0 }
   0x9   :  { %992 = shalt.err (!%p989_p4)
}
   0xa   :  { %s996_s24 = smov 128   ;;  %s997_s25 = smov 8  }
   0xb   :  { %30 = dma.hbm_to_vmem [thread:$0]  %s1275_s0, 1024, %s25_s22, [#allocation3], %s996_s24, %s996_s24, %s997_s25  }
   0xc   :  { %993 = dma.done.wait [#allocation3], 1024  }
   0xd   :  { %994 = vsyncadd [#allocation3], 4294966272  ;;  %v79_v0 = vld [vmem:[%s1277_s2] sm:$0xf]  ;;  %vm94_vm0 = vcmask 1041408   ;;  %v68_v2 = vld [vmem:[%s1276_s1 + $0x8] sm:$0xff] }
   0xe   :  { %v67_v1 = vld [vmem:[%s1276_s1] sm:$0xff]  ;;  %vm81_vm1 = vcmask 31744   ;;  %v80_v3 = vpack.c.bf16 %v79_v0, %v79_v0  ;;  %v69_v5 = vld [vmem:[%s1276_s1 + $0x10] sm:$0xff]  ;;  %v70_v6 = vld [vmem:[%s1276_s1 + $0x18] sm:$0xff]  ;;  %vm174_vm2 = vcmask 523264   ;;  %vm270_vm3 = vcmask 261120  }
   0xf   :  { %v75_v4 = vpack.c.bf16 %v68_v2, %v67_v1  ;;  %v71_v7 = vld [vmem:[%s1276_s1 + $0x20] sm:$0xff]  ;;  %v72_v8 = vld [vmem:[%s1276_s1 + $0x28] sm:$0xff]  ;;  %v76_v10 = vpack.c.bf16 %v70_v6, %v69_v5  ;;  %v73_v12 = vld [vmem:[%s1276_s1 + $0x30] sm:$0xff]  ;;  %vm595_vm4 = vcmask 130048   ;;  %vm766_vm5 = vcmask 23552  }
  0x10   :  { %969 = vmatprep.subr.msk.bf16.mxu0 %vm94_vm0, %v80_v3  ;;  %v96_v9 = vsel %vm94_vm0, %v80_v3, 0  ;;  %v77_v11 = vpack.c.bf16 %v72_v8, %v71_v7  ;;  %v74_v13 = vld [vmem:[%s1276_s1 + $0x38] sm:$0xff]  ;;  %v55_v15 = vld [vmem:[#allocation2] sm:$0xff]  ;;  %v56_v16 = vld [vmem:[#allocation2 + $0x8] sm:$0xff] }
  0x11   :  { %873 = vmatprep.mubr.msk.bf16.mxu0 %vm81_vm1, %v75_v4  ;;  %872 = vmatpush3.bf16.msra.mxu0 %v96_v9  ;;  %v78_v14 = vpack.c.bf16 %v74_v13, %v73_v12  ;;  %v1097_v17 = vpack.c.bf16 %v56_v16, %v55_v15  ;;  %v266_v18 = vld [vmem:[%s1279_s4 + $0x10] sm:$0xff]  ;;  %v267_v19 = vld [vmem:[%s1279_s4 + $0x18] sm:$0xff]  ;;  %v59_v35 = vld [vmem:[#allocation2 + $0x20] sm:$0xff] }
  0x12   :  { %v269_v20 = vpack.c.bf16 %v267_v19, %v266_v18  ;;  %v57_v33 = vld [vmem:[#allocation2 + $0x10] sm:$0xff]  ;;  %v58_v34 = vld [vmem:[#allocation2 + $0x18] sm:$0xff]  ;;  %v60_v36 = vld [vmem:[#allocation2 + $0x28] sm:$0xff] }
  0x13   :  { %889 = vmatprep.mubr.msk.bf16.mxu1 %vm174_vm2, %v1097_v17  ;;  %v1107_v37 = vpack.c.bf16 %v58_v34, %v57_v33  ;;  %v1109_v38 = vpack.c.bf16 %v60_v36, %v59_v35  ;;  %v61_v39 = vld [vmem:[#allocation2 + $0x30] sm:$0xff]  ;;  %v62_v40 = vld [vmem:[#allocation2 + $0x38] sm:$0xff]  ;;  %v264_v42 = vld [vmem:[%s1279_s4] sm:$0xff] }
  0x14   :  { %874 = vmatmul.mubr.msk.bf16.vlgmr.msra.gmra.mxu0 %vm81_vm1, %v76_v10  ;;  %897 = vmatprep.subr.bf16.mxu0 %v269_v20  ;;  %v1115_v41 = vpack.c.bf16 %v62_v40, %v61_v39  ;;  %v265_v43 = vld [vmem:[%s1279_s4 + $0x8] sm:$0xff]  ;;  %v788_v47 = vld [vmem:[%s1278_s3] ss:$0 sm:$0xff]  ;;  %v438_v10 = vld [vmem:[%s1281_s6 + $0x10] sm:$0xff] }
  0x15   :  { %877 = vmatprep.mubr.msk.bf16.mxu0 %vm81_vm1, %v77_v11  ;;  %898 = vmatpush3.bf16.msra.mxu0 %v269_v20  ;;  %v268_v44 = vpack.c.bf16 %v265_v43, %v264_v42  ;;  %v439_v11 = vld [vmem:[%s1281_s6 + $0x18] sm:$0xff] }
  0x16   :  { %v441_v12 = vpack.c.bf16 %v439_v11, %v438_v10  ;;  %v806_v10 = vld [vmem:[%s1282_s7] ss:$0 sm:$0xff] }
  0x17   :  { %899 = vmatprep.subr.bf16.mxu0 %v268_v44 }
  0x19   :  { %900 = vmatpush3.bf16.msra.mxu0 %v268_v44 }
  0x1a   :  { %925 = vmatprep.subr.bf16.mxu0 %v441_v12 }
  0x1c   :  { %878 = vmatmul.mubr.msk.bf16.gmra.mxu0 %vm81_vm1, %v78_v14 }
  0xd4   :  { %v875_v21 = vpop.f32.mrf.mxu0 }
  0xd6   :  { %v132_v22 = vpop.f32.mrf.mxu0 }
  0xd8   :  { %v876_v23 = vpop.f32.mrf.mxu0 }
  0xd9   :  { %v164_v31 = vpack.c.bf16 %v876_v23, %v875_v21 }
  0xda   :  { %v135_v24 = vpop.f32.mrf.mxu0 }
  0xdb   :  { %v163_v32 = vpack.c.bf16 %v135_v24, %v132_v22 }
  0xdc   :  { %v879_v25 = vpop.f32.mrf.mxu0 }
  0xde   :  { %v148_v26 = vpop.f32.mrf.mxu0 }
  0xe0   :  { %v880_v27 = vpop.f32.mrf.mxu0 }
  0xe1   :  { %v166_v28 = vpack.c.bf16 %v880_v27, %v879_v25  ;;  %v437_v27 = vld [vmem:[%s1281_s6 + $0x8] sm:$0xff] }
  0xe2   :  { %v151_v29 = vpop.f32.mrf.mxu0 }
  0xe3   :  { %v165_v30 = vpack.c.bf16 %v151_v29, %v148_v26  ;;  %881 = vmatprep.subr.bf16.mxu1 %v166_v28  ;;  %v436_v26 = vld [vmem:[%s1281_s6] sm:$0xff] }
  0xe4   :  { %882 = vmatpush3.bf16.msra.mxu1 %v166_v28  ;;  %v440_v28 = vpack.c.bf16 %v437_v27, %v436_v26  ;;  %v819_v27 = vld [vmem:[%s1284_s9] ss:$0 sm:$0xff] }
  0xe5   :  { %883 = vmatprep.subr.bf16.mxu1 %v165_v30 }
  0xe8   :  { %884 = vmatpush3.bf16.msra.mxu1 %v165_v30 }
  0xe9   :  { %885 = vmatprep.subr.bf16.mxu1 %v164_v31 }
  0xec   :  { %886 = vmatpush3.bf16.msra.mxu1 %v164_v31  ;;  %v797_v31 = vld [vmem:[%s1280_s5] ss:$0 sm:$0xff] }
  0xed   :  { %887 = vmatprep.subr.bf16.mxu1 %v163_v32 }
  0xf0   :  { %888 = vmatpush3.bf16.msra.mxu1 %v163_v32 }
  0xf3   :  { %890 = vmatmul.mubr.msk.bf16.vlgmr.msra.gmra.mxu1 %vm174_vm2, %v1107_v37 }
  0xf4   :  { %893 = vmatprep.mubr.msk.bf16.mxu1 %vm174_vm2, %v1109_v38 }
  0xfb   :  { %894 = vmatmul.mubr.msk.bf16.gmra.mxu1 %vm174_vm2, %v1115_v41 }
  0xfc   :  { %917 = vmatprep.mubr.msk.bf16.mxu1 %vm174_vm2, %v1097_v17 }
 0x1b3   :  { %v891_v45 = vpop.f32.mrf.mxu1 }
 0x1b4   :  { %v230_v51 = vadd.f32 %v891_v45, %v788_v47 }
 0x1b5   :  { %v221_v46 = vpop.f32.mrf.mxu1 }
 0x1b6   :  { %v222_v49 = vadd.f32 %v788_v47, %v221_v46  ;;  %v254_v58 = vmax.f32 %v230_v51, 0.0 }
 0x1b7   :  { %v892_v48 = vpop.f32.mrf.mxu1 }
 0x1b8   :  { %v233_v50 = vadd.f32 %v892_v48, %v788_v47  ;;  %v252_v56 = vmax.f32 %v222_v49, 0.0 }
 0x1b9   :  { %v224_v52 = vpop.f32.mrf.mxu1 }
 0x1ba   :  { %v225_v53 = vadd.f32 %v788_v47, %v224_v52  ;;  %v255_v54 = vmax.f32 %v233_v50, 0.0 }
 0x1bb   :  { %v895_v55 = vpop.f32.mrf.mxu1 }
 0x1bc   :  { %v253_v57 = vmax.f32 %v225_v53, 0.0  ;;  %v261_v61 = vpack.c.bf16 %v255_v54, %v254_v58  ;;  %v246_v1 = vadd.f32 %v895_v55, %v788_v47 }
 0x1bd   :  { %v237_v59 = vpop.f32.mrf.mxu1 }
 0x1be   :  { %v260_v60 = vpack.c.bf16 %v253_v57, %v252_v56  ;;  %v238_v63 = vadd.f32 %v788_v47, %v237_v59  ;;  %v258_v7 = vmax.f32 %v246_v1, 0.0 }
 0x1bf   :  { %v896_v62 = vpop.f32.mrf.mxu1 }
 0x1c0   :  { %v249_v0 = vadd.f32 %v896_v62, %v788_v47  ;;  %901 = vmatprep.mubr.msk.bf16.mxu0 %vm270_vm3, %v260_v60  ;;  %v256_v5 = vmax.f32 %v238_v63, 0.0  ;;  %v605_v60 = vld [vmem:[%s1283_s8 + $0x8] sm:$0xff] }
 0x1c1   :  { %v240_v2 = vpop.f32.mrf.mxu1  ;;  %902 = vmatmul.mubr.msk.bf16.vlgmr.msra.gmra.mxu0 %vm270_vm3, %v261_v61 }
 0x1c2   :  { %v241_v3 = vadd.f32 %v788_v47, %v240_v2  ;;  %v259_v4 = vmax.f32 %v249_v0, 0.0  ;;  %926 = vmatpush3.bf16.msra.mxu0 %v441_v12 }
 0x1c3   :  { %927 = vmatprep.subr.bf16.mxu0 %v440_v28 }
 0x1c4   :  { %v257_v6 = vmax.f32 %v241_v3, 0.0  ;;  %v263_v9 = vpack.c.bf16 %v259_v4, %v258_v7 }
 0x1c6   :  { %v262_v8 = vpack.c.bf16 %v257_v6, %v256_v5  ;;  %928 = vmatpush3.bf16.msra.mxu0 %v440_v28  ;;  %v735_v28 = vld [vmem:[%s1285_s10] sm:$0xff] }
 0x1c7   :  { %953 = vmatprep.subr.mxu0 %v605_v60 }
 0x1c8   :  { %905 = vmatprep.mubr.msk.bf16.mxu0 %vm270_vm3, %v262_v8 }
 0x1c9   :  { %906 = vmatmul.mubr.msk.bf16.gmra.mxu0 %vm270_vm3, %v263_v9  ;;  %v604_v9 = vld [vmem:[%s1283_s8] sm:$0xff] }
 0x281   :  { %v903_v13 = vpop.f32.mrf.mxu0 }
 0x283   :  { %v317_v14 = vpop.f32.mrf.mxu0 }
 0x285   :  { %v904_v15 = vpop.f32.mrf.mxu0 }
 0x286   :  { %v349_v24 = vpack.c.bf16 %v904_v15, %v903_v13 }
 0x287   :  { %v320_v16 = vpop.f32.mrf.mxu0 }
 0x288   :  { %v348_v25 = vpack.c.bf16 %v320_v16, %v317_v14 }
 0x289   :  { %v907_v18 = vpop.f32.mrf.mxu0 }
 0x28b   :  { %v333_v19 = vpop.f32.mrf.mxu0 }
 0x28d   :  { %v908_v20 = vpop.f32.mrf.mxu0 }
 0x28e   :  { %v351_v21 = vpack.c.bf16 %v908_v20, %v907_v18 }
 0x28f   :  { %v336_v22 = vpop.f32.mrf.mxu0 }
 0x290   :  { %v350_v23 = vpack.c.bf16 %v336_v22, %v333_v19  ;;  %909 = vmatprep.subr.bf16.mxu1 %v351_v21 }
 0x291   :  { %910 = vmatpush3.bf16.msra.mxu1 %v351_v21 }
 0x292   :  { %911 = vmatprep.subr.bf16.mxu1 %v350_v23 }
 0x295   :  { %912 = vmatpush3.bf16.msra.mxu1 %v350_v23 }
 0x296   :  { %913 = vmatprep.subr.bf16.mxu1 %v349_v24 }
 0x299   :  { %914 = vmatpush3.bf16.msra.mxu1 %v349_v24 }
 0x29a   :  { %915 = vmatprep.subr.bf16.mxu1 %v348_v25 }
 0x29d   :  { %916 = vmatpush3.bf16.msra.mxu1 %v348_v25  ;;  %v736_v25 = vld [vmem:[%s1285_s10 + $0x8] sm:$0xff] }
 0x2a0   :  { %918 = vmatmul.mubr.msk.bf16.vlgmr.msra.gmra.mxu1 %vm174_vm2, %v1107_v37 }
 0x2a1   :  { %921 = vmatprep.mubr.msk.bf16.mxu1 %vm174_vm2, %v1109_v38 }
 0x2a8   :  { %922 = vmatmul.mubr.msk.bf16.gmra.mxu1 %vm174_vm2, %v1115_v41 }
 0x2a9   :  { %945 = vmatprep.mubr.msk.bf16.mxu1 %vm174_vm2, %v1097_v17 }
 0x360   :  { %v919_v29 = vpop.f32.mrf.mxu1 }
 0x361   :  { %v402_v34 = vadd.f32 %v919_v29, %v797_v31 }
 0x362   :  { %v393_v30 = vpop.f32.mrf.mxu1 }
 0x363   :  { %v394_v33 = vadd.f32 %v797_v31, %v393_v30  ;;  %v426_v44 = vmax.f32 %v402_v34, 0.0  ;;  %v737_v34 = vld [vmem:[%s1285_s10 + $0x10] sm:$0xff] }
 0x364   :  { %v920_v32 = vpop.f32.mrf.mxu1 }
 0x365   :  { %v405_v17 = vadd.f32 %v920_v32, %v797_v31  ;;  %v424_v42 = vmax.f32 %v394_v33, 0.0 }
 0x366   :  { %v396_v35 = vpop.f32.mrf.mxu1 }
 0x367   :  { %v397_v36 = vadd.f32 %v797_v31, %v396_v35  ;;  %v427_v39 = vmax.f32 %v405_v17, 0.0 }
 0x368   :  { %v923_v40 = vpop.f32.mrf.mxu1 }
 0x369   :  { %v425_v43 = vmax.f32 %v397_v36, 0.0  ;;  %v433_v47 = vpack.c.bf16 %v427_v39, %v426_v44  ;;  %v418_v51 = vadd.f32 %v923_v40, %v797_v31  ;;  %v740_v40 = vld [vmem:[%s1285_s10 + $0x28] sm:$0xff] }
 0x36a   :  { %v409_v45 = vpop.f32.mrf.mxu1 }
 0x36b   :  { %v432_v46 = vpack.c.bf16 %v425_v43, %v424_v42  ;;  %v410_v49 = vadd.f32 %v797_v31, %v409_v45  ;;  %v430_v57 = vmax.f32 %v418_v51, 0.0  ;;  %v739_v45 = vld [vmem:[%s1285_s10 + $0x20] sm:$0xff] }
 0x36c   :  { %v924_v48 = vpop.f32.mrf.mxu1 }
 0x36d   :  { %v421_v50 = vadd.f32 %v924_v48, %v797_v31  ;;  %929 = vmatprep.mubr.msk.bf16.mxu0 %vm270_vm3, %v432_v46  ;;  %v428_v55 = vmax.f32 %v410_v49, 0.0  ;;  %v742_v49 = vld [vmem:[%s1285_s10 + $0x38] sm:$0xff] }
 0x36e   :  { %v412_v52 = vpop.f32.mrf.mxu1  ;;  %930 = vmatmul.mubr.msk.bf16.vlgmr.msra.gmra.mxu0 %vm270_vm3, %v433_v47 }
 0x36f   :  { %v413_v53 = vadd.f32 %v797_v31, %v412_v52  ;;  %v431_v54 = vmax.f32 %v421_v50, 0.0  ;;  %954 = vmatpush3.msra.mxu0 %v605_v60  ;;  %v738_v31 = vld [vmem:[%s1285_s10 + $0x18] sm:$0xff] }
 0x370   :  { %955 = vmatprep.subr.mxu0 %v604_v9 }
 0x371   :  { %v429_v56 = vmax.f32 %v413_v53, 0.0  ;;  %v435_v59 = vpack.c.bf16 %v431_v54, %v430_v57  ;;  %956 = vmatpush3.msra.mxu0 %v604_v9  ;;  %v741_v53 = vld [vmem:[%s1285_s10 + $0x30] sm:$0xff] }
 0x373   :  { %v434_v58 = vpack.c.bf16 %v429_v56, %v428_v55 }
 0x375   :  { %933 = vmatprep.mubr.msk.bf16.mxu0 %vm270_vm3, %v434_v58 }
 0x376   :  { %934 = vmatmul.mubr.msk.bf16.gmra.mxu0 %vm270_vm3, %v435_v59 }
 0x42e   :  { %v931_v61 = vpop.f32.mrf.mxu0 }
 0x430   :  { %v488_v62 = vpop.f32.mrf.mxu0 }
 0x432   :  { %v932_v63 = vpop.f32.mrf.mxu0 }
 0x433   :  { %v520_v7 = vpack.c.bf16 %v932_v63, %v931_v61 }
 0x434   :  { %v491_v0 = vpop.f32.mrf.mxu0 }
 0x435   :  { %v519_v8 = vpack.c.bf16 %v491_v0, %v488_v62 }
 0x436   :  { %v935_v1 = vpop.f32.mrf.mxu0 }
 0x438   :  { %v504_v2 = vpop.f32.mrf.mxu0 }
 0x43a   :  { %v936_v3 = vpop.f32.mrf.mxu0 }
 0x43b   :  { %v522_v4 = vpack.c.bf16 %v936_v3, %v935_v1 }
 0x43c   :  { %v507_v5 = vpop.f32.mrf.mxu0 }
 0x43d   :  { %v521_v6 = vpack.c.bf16 %v507_v5, %v504_v2  ;;  %937 = vmatprep.subr.bf16.mxu1 %v522_v4 }
 0x43e   :  { %938 = vmatpush3.bf16.msra.mxu1 %v522_v4 }
 0x43f   :  { %939 = vmatprep.subr.bf16.mxu1 %v521_v6 }
 0x442   :  { %940 = vmatpush3.bf16.msra.mxu1 %v521_v6 }
 0x443   :  { %941 = vmatprep.subr.bf16.mxu1 %v520_v7 }
 0x446   :  { %942 = vmatpush3.bf16.msra.mxu1 %v520_v7 }
 0x447   :  { %943 = vmatprep.subr.bf16.mxu1 %v519_v8 }
 0x44a   :  { %944 = vmatpush3.bf16.msra.mxu1 %v519_v8 }
 0x44d   :  { %946 = vmatmul.mubr.msk.bf16.vlgmr.msra.gmra.mxu1 %vm174_vm2, %v1107_v37 }
 0x44e   :  { %949 = vmatprep.mubr.msk.bf16.mxu1 %vm174_vm2, %v1109_v38 }
 0x455   :  { %950 = vmatmul.mubr.msk.bf16.gmra.mxu1 %vm174_vm2, %v1115_v41 }
 0x50d   :  { %v947_v11 = vpop.f32.mrf.mxu1 }
 0x50e   :  { %v573_v12 = vadd.f32 %v947_v11, %v806_v10 }
 0x50f   :  { %v564_v37 = vpop.f32.mrf.mxu1 }
 0x510   :  { %598 = vst.msk [vmem:[%s1286_s11 + $0x10] sm:$0xff] %vm595_vm4, %v573_v12  ;;  %v565_v38 = vadd.f32 %v806_v10, %v564_v37 }
 0x511   :  { %v948_v41 = vpop.f32.mrf.mxu1 }
 0x512   :  { %596 = vst.msk [vmem:[%s1286_s11] sm:$0xff] %vm595_vm4, %v565_v38  ;;  %v576_v13 = vadd.f32 %v948_v41, %v806_v10  ;;  %957 = vmatprep.mubr.msk.f32.mxu0 %vm595_vm4, %v565_v38 }
 0x513   :  { %v567_v14 = vpop.f32.mrf.mxu1 }
 0x514   :  { %599 = vst.msk [vmem:[%s1286_s11 + $0x18] sm:$0xff] %vm595_vm4, %v576_v13  ;;  %v568_v15 = vadd.f32 %v806_v10, %v567_v14 }
 0x515   :  { %v951_v16 = vpop.f32.mrf.mxu1 }
 0x516   :  { %597 = vst.msk [vmem:[%s1286_s11 + $0x8] sm:$0xff] %vm595_vm4, %v568_v15  ;;  %v589_v18 = vadd.f32 %v951_v16, %v806_v10  ;;  %958 = vmatmul.mubr.msk.f32.vlgmr.msra.gmra.mxu0 %vm595_vm4, %v568_v15 }
 0x517   :  { %v580_v19 = vpop.f32.mrf.mxu1  ;;  %960 = vmatprep.mubr.msk.f32.mxu0 %vm595_vm4, %v573_v12 }
 0x518   :  { %602 = vst.msk [vmem:[%s1286_s11 + $0x30] sm:$0xff] %vm595_vm4, %v589_v18  ;;  %v581_v20 = vadd.f32 %v806_v10, %v580_v19 }
 0x519   :  { %v952_v21 = vpop.f32.mrf.mxu1 }
 0x51a   :  { %600 = vst.msk [vmem:[%s1286_s11 + $0x20] sm:$0xff] %vm595_vm4, %v581_v20  ;;  %v592_v22 = vadd.f32 %v952_v21, %v806_v10  ;;  %961 = vmatmul.mubr.msk.f32.gmra.mxu0 %vm595_vm4, %v576_v13 }
 0x51b   :  { %v583_v23 = vpop.f32.mrf.mxu1  ;;  %963 = vmatprep.mubr.msk.f32.mxu0 %vm595_vm4, %v581_v20 }
 0x51c   :  { %603 = vst.msk [vmem:[%s1286_s11 + $0x38] sm:$0xff] %vm595_vm4, %v592_v22  ;;  %v584_v24 = vadd.f32 %v806_v10, %v583_v23 }
 0x51e   :  { %601 = vst.msk [vmem:[%s1286_s11 + $0x28] sm:$0xff] %vm595_vm4, %v584_v24  ;;  %964 = vmatmul.mubr.msk.f32.gmra.mxu0 %vm595_vm4, %v584_v24 }
 0x51f   :  { %966 = vmatprep.mubr.msk.f32.mxu0 %vm595_vm4, %v589_v18 }
 0x522   :  { %967 = vmatmul.mubr.msk.f32.gmra.mxu0 %vm595_vm4, %v592_v22 }
 0x5d6   :  { %v959_v26 = vpop.f32.mrf.mxu0 }
 0x5d7   :  { %v744_v29 = vadd.f32 %v959_v26, %v736_v25 }
 0x5d8   :  { %v696_v30 = vpop.f32.mrf.mxu0 }
 0x5d9   :  { %v759_v32 = vadd.f32 %v819_v27, %v744_v29  ;;  %v743_v33 = vadd.f32 %v735_v28, %v696_v30 }
 0x5da   :  { %v962_v17 = vpop.f32.mrf.mxu0 }
 0x5db   :  { %768 = vst.msk [vmem:[%s1287_s12 + $0x8] sm:$0xff] %vm766_vm5, %v759_v32  ;;  %v758_v35 = vadd.f32 %v819_v27, %v743_v33  ;;  %v746_v36 = vadd.f32 %v962_v17, %v738_v31 }
 0x5dc   :  { %v706_v39 = vpop.f32.mrf.mxu0 }
 0x5dd   :  { %767 = vst.msk [vmem:[%s1287_s12] sm:$0xff] %vm766_vm5, %v758_v35  ;;  %v761_v42 = vadd.f32 %v819_v27, %v746_v36  ;;  %v745_v43 = vadd.f32 %v737_v34, %v706_v39 }
 0x5de   :  { %v965_v44 = vpop.f32.mrf.mxu0 }
 0x5df   :  { %770 = vst.msk [vmem:[%s1287_s12 + $0x18] sm:$0xff] %vm766_vm5, %v761_v42  ;;  %v760_v46 = vadd.f32 %v819_v27, %v745_v43  ;;  %v748_v47 = vadd.f32 %v965_v44, %v740_v40 }
 0x5e0   :  { %v716_v48 = vpop.f32.mrf.mxu0 }
 0x5e1   :  { %769 = vst.msk [vmem:[%s1287_s12 + $0x10] sm:$0xff] %vm766_vm5, %v760_v46  ;;  %v763_v50 = vadd.f32 %v819_v27, %v748_v47  ;;  %v747_v51 = vadd.f32 %v739_v45, %v716_v48 }
 0x5e2   :  { %v968_v52 = vpop.f32.mrf.mxu0 }
 0x5e3   :  { %772 = vst.msk [vmem:[%s1287_s12 + $0x28] sm:$0xff] %vm766_vm5, %v763_v50  ;;  %v762_v54 = vadd.f32 %v819_v27, %v747_v51  ;;  %v750_v55 = vadd.f32 %v968_v52, %v742_v49 }
 0x5e4   :  { %v726_v56 = vpop.f32.mrf.mxu0 }
 0x5e5   :  { %771 = vst.msk [vmem:[%s1287_s12 + $0x20] sm:$0xff] %vm766_vm5, %v762_v54  ;;  %v765_v57 = vadd.f32 %v819_v27, %v750_v55  ;;  %v749_v58 = vadd.f32 %v741_v53, %v726_v56 }
 0x5e7   :  { %774 = vst.msk [vmem:[%s1287_s12 + $0x38] sm:$0xff] %vm766_vm5, %v765_v57  ;;  %v764_v59 = vadd.f32 %v819_v27, %v749_v58 }
 0x5e9   :  { %773 = vst.msk [vmem:[%s1287_s12 + $0x30] sm:$0xff] %vm766_vm5, %v764_v59 }
 0x5ea   :  { %783 = vsyncpa [#allocation3], 1 }

// kernel: custom-call.74
= control target key start
LH: loop header
LB: loop body
LE: loop exit
PB: predicated region body
PF: predicated region fallthrough
CT: control target
= control target key end

     0   :  { %v327_v1 = vmov 0.0   ;;  %s347_s11 = smov 0   ;;  %s403_s0 = inlined_call_operand.vmem [shape: f32[6,3], index: 0, kind: input, shape index: {}]   ;;  %s404_s1 = inlined_call_operand.vmem [shape: f32[6,3], index: 1, kind: output, shape index: {0}]   ;;  %s405_s2 = inlined_call_operand.vmem [shape: f32[3], index: 2, kind: output, shape index: {1}]  }
   0x1   :  { %v32_v0 = vld [vmem:[%s403_s0] sm:$0xff]  ;;  %39 = vst [vmem:[#allocation2] sm:$0x1] %v327_v1 }
   0x2   :  { %38 = vst [vmem:[#allocation1] sm:$0xff] %v32_v0 }
   0x3 LB: > { %v47_v2 = vlaneseq  ;;  %v356_v4 = vstv %s325_s11  ;;  %s74_s0 = scalar_lea.vmem [#allocation1], %s325_s11  ;;  %s110_s12 = smov [#allocation1]  ;;  %v328_v58 = vmov 1.0   ;;  %s325_s11 = sphi %s347_s11, %s45_s11  }
   0x4   : > { %s132_s13 = scalar_lea.vmem [#allocation4], %s325_s11  ;;  %s148_s14 = smov [#allocation1] }
   0x5   : > { %v353_v3 = vshrl.u32 %v47_v2, 7  ;;  %v126_v47 = vand.u32 127, %v47_v2  ;;  %s149_s15 = smov [#allocation4] }
   0x7   : > { %vm51_vm0 = vcmp.gt.s32.totalorder %v353_v3, %v356_v4  ;;  %vm52_vm1 = vcmp.lt.s32.totalorder %v353_v3, 6  ;;  %v113_v3 = vmov %v353_v3  ;;  %vm371_vm12 = vcmp.eq.s32.totalorder %v126_v47, %v356_v4 }
   0x8   : > { %vm53_vm2 = vmand %vm51_vm0, %vm52_vm1  ;;  %vm117_vm9 = vcmp.gt.s32.totalorder %v113_v3, %v356_v4  ;;  %vm118_vm10 = vcmp.lt.s32.totalorder %v113_v3, 6  ;;  %v145_v59 = vld [vmem:[#allocation2] ss:$0 sm:$0xff]  ;;  %v152_v3 = vmov %v353_v3  ;;  %vm178_vm15 = vcmp.gt.s32.totalorder %v126_v47, %v356_v4 }
   0x9   : > { %v46_v5 = vld [vmem:[#allocation1] sm:$0xff]  ;;  %vm119_vm11 = vmand %vm117_vm9, %vm118_vm10  ;;  %vm157_vm13 = vcmp.lt.s32.totalorder %v152_v3, 6  ;;  %v169_v3 = vmov %v353_v3 }
   0xa   : > { %v54_v6 = vsel %vm53_vm2, %v46_v5, 0.0  ;;  %v75_v14 = vld [vmem:[%s74_s0] ss:$0 sm:$0xff]  ;;  %vm186_vm14 = vcmp.ge.s32.totalorder %v169_v3, %v356_v4 }
   0xb   : > { %v55_v7 = vmul.f32 %v54_v6, %v54_v6  ;;  %v76_v15 = vand.u32 2147483647, %v75_v14  ;;  %vm101_vm8 = vcmp.lt.f32.partialorder %v75_v14, 0.0  ;;  %v114_v44 = vld [vmem:[%s110_s12] sm:$0xff]  ;;  %vm187_vm0 = vmand %vm371_vm12, %vm186_vm14 }
   0xc   : > { %v120_v48 = vsel %vm119_vm11, %v114_v44, 0.0  ;;  %v155_v62 = vld [vmem:[%s148_s14] sm:$0xff]  ;;  %s165_s14 = smov %s148_s14 }
   0xd   : > { %v56_v8 = vrot.slane %v55_v7, 4  ;;  %v77_v20 = vmax.f32 %v76_v15, 0.0  ;;  %s190_s16 = scalar_lea.vmem %s165_s14, %s325_s11  ;;  %s45_s11 = sadd.s32 1, %s325_s11  }
   0xe   : > { %p42_p0 = scmp.ge.s32.totalorder %s45_s11, 3  }
   0xf   : > { %v57_v9 = vadd.f32 %v56_v8, %v55_v7 }
  0x11   : > { %v58_v10 = vrot.slane %v57_v9, 2 }
  0x13   : > { %v59_v11 = vadd.f32 %v58_v10, %v57_v9 }
  0x15   : > { %v60_v12 = vrot.slane %v59_v11, 1 }
  0x17   : > { %v61_v13 = vadd.f32 %v60_v12, %v59_v11  ;;  %v176_v12 = vld [vmem:[%s165_s14] sm:$0xff] }
  0x19   : > { %309 = vrsqrt.f32 %v61_v13  ;;  %vm64_vm3 = vcmp.eq.f32.partialorder %v61_v13, inf  ;;  %v67_v17 = vand.u32 2147483648, %v61_v13  ;;  %vm66_vm4 = vcmp.eq.f32.partialorder %v61_v13, 0.0 }
  0x26   : > { %v310_v16 = vpop.eup %309 }
  0x27   : > { %v63_v18 = vmul.f32 %v310_v16, %v61_v13 }
  0x29   : > { %v65_v19 = vsel %vm64_vm3, %v61_v13, %v63_v18 }
  0x2a   : > { %v68_v21 = vsel %vm66_vm4, %v67_v17, %v65_v19 }
  0x2b   : > { %v78_v22 = vand.u32 2147483647, %v68_v21 }
  0x2d   : > { %v79_v23 = vmax.f32 %v77_v20, %v78_v22 }
  0x2f   : > { %311 = vrcp.f32 %v79_v23  ;;  %vm91_vm7 = vcmp.eq.f32.partialorder %v79_v23, 0.0 }
  0x3c   : > { %v312_v24 = vpop.eup %311 }
  0x3d   : > { %v81_v25 = vmul.f32 %v312_v24, %v76_v15  ;;  %v84_v26 = vmul.f32 0.0, %v312_v24  ;;  %v88_v27 = vmul.f32 %v312_v24, %v78_v22 }
  0x3f   : > { %v82_v28 = vmul.f32 %v81_v25, %v81_v25  ;;  %v85_v29 = vmul.f32 %v84_v26, %v84_v26  ;;  %v89_v30 = vmul.f32 %v88_v27, %v88_v27 }
  0x41   : > { %v86_v31 = vadd.f32 %v85_v29, %v82_v28 }
  0x43   : > { %v90_v32 = vadd.f32 %v89_v30, %v86_v31 }
  0x45   : > { %313 = vrsqrt.f32 %v90_v32  ;;  %vm94_vm5 = vcmp.eq.f32.partialorder %v90_v32, inf  ;;  %v97_v34 = vand.u32 2147483648, %v90_v32  ;;  %vm96_vm6 = vcmp.eq.f32.partialorder %v90_v32, 0.0 }
  0x52   : > { %v314_v33 = vpop.eup %313 }
  0x53   : > { %v93_v35 = vmul.f32 %v314_v33, %v90_v32 }
  0x55   : > { %v95_v36 = vsel %vm94_vm5, %v90_v32, %v93_v35 }
  0x56   : > { %v98_v37 = vsel %vm96_vm6, %v97_v34, %v95_v36 }
  0x57   : > { %v99_v38 = vmul.f32 %v98_v37, %v79_v23 }
  0x59   : > { %v100_v39 = vsel %vm91_vm7, 0.0, %v99_v38 }
  0x5a   : > { %v102_v40 = vxor.u32 2147483648, %v100_v39 }
  0x5c   : > { %v103_v41 = vsel %vm101_vm8, %v100_v39, %v102_v40 }
  0x5d   : > { %v364_v42 = vsel %vm66_vm4, %v75_v14, %v103_v41  ;;  %315 = vrcp.f32 %v103_v41  ;;  %v104_v45 = vsub.f32 %v103_v41, %v75_v14 }
  0x5e   : > { %v109_v43 = vsub.f32 %v75_v14, %v364_v42 }
  0x60   : > { %317 = vrcp.f32 %v109_v43 }
  0x6a   : > { %v316_v46 = vpop.eup %315 }
  0x6b   : > { %v106_v49 = vmul.f32 %v316_v46, %v104_v45 }
  0x6d   : > { %v318_v50 = vpop.eup %317  ;;  %v108_v54 = vsel %vm66_vm4, 0.0, %v106_v49 }
  0x6e   : > { %v122_v51 = vmul.f32 %v318_v50, %v120_v48  ;;  %v138_v56 = vsel %vm371_vm12, %v108_v54, 0.0 }
  0x70   : > { %v123_v53 = vsel %vm66_vm4, 0.0, %v122_v51 }
  0x71   : > { %v128_v55 = vsel %vm371_vm12, %v123_v53, 0.0 }
  0x72   : > { %129 = vadd.xlane.f32.xlu0 %v128_v55 }
  0x76   : > { %139 = vadd.xlane.f32.xlu0 %v138_v56 }
  0xfb   : > { %v130_v57 = vpop.xlane.xlu0 %129 }
  0xfc   : > { %131 = vst [vmem:[#allocation4] sm:$0xff] %v130_v57 }
  0xfd   : > { %133 = vst [vmem:[%s132_s13] sm:$0x1] %v328_v58 }
  0xff   : > { %v140_v60 = vpop.xlane.xlu0 %139 }
 0x100   : > { %v146_v61 = vsel %vm371_vm12, %v140_v60, %v145_v59 }
 0x101   : > { %147 = vst [vmem:[#allocation2] sm:$0x1] %v146_v61 }
 0x104   : > { %v154_v63 = vld [vmem:[%s149_s15] sm:$0xff]  ;;  %s166_s15 = smov %s149_s15 }
 0x105   : > { %v156_v0 = vmul.f32 %v155_v62, %v154_v63  ;;  %v174_v11 = vld [vmem:[%s166_s15] sm:$0xff] }
 0x107   : > { %v158_v1 = vsel %vm157_vm13, %v156_v0, 0.0 }
 0x108   : > { %v159_v2 = vrot.slane %v158_v1, 4  ;;  %v202_v3 = vld [vmem:[#allocation2] sm:$0x1] (%p42_p0) }
 0x109   :  { %205 = vst [vmem:[#allocation3] sm:$0x1] (%p42_p0), %v202_v3 }
 0x10a   : > { %v160_v5 = vadd.f32 %v159_v2, %v158_v1 }
 0x10c   : > { %v161_v6 = vrot.slane %v160_v5, 2 }
 0x10e   : > { %v162_v7 = vadd.f32 %v161_v6, %v160_v5 }
 0x110   : > { %v163_v8 = vrot.slane %v162_v7, 1  ;;  %v257_v19 = vld [vmem:[#allocation3] sm:$0x1] (%p42_p0) }
 0x111   :  { %258 = vst [vmem:[%s405_s2] sm:$0x1] (%p42_p0), %v257_v19 }
 0x112   : > { %v164_v9 = vadd.f32 %v163_v8, %v162_v7 }
 0x114   : > { %v170_v10 = vmul.f32 %v164_v9, %v140_v60 }
 0x116   : > { %v175_v13 = vmul.f32 %v174_v11, %v170_v10 }
 0x118   : > { %v179_v14 = vsub.f32 %v176_v12, %v175_v13 }
 0x11a   : > { %v180_v15 = vsel %vm178_vm15, %v179_v14, %v176_v12 }
 0x11b   : > { %v188_v16 = vsel %vm187_vm0, %v174_v11, %v180_v15 }
 0x11c   : > { %189 = vst [vmem:[%s165_s14] sm:$0xff] %v188_v16 }
 0x121   :  { %44 = sbr.rel (!%p42_p0) target bundleno = 3 (0x3), region = 139 }
 0x123   : > { %v191_v17 = vld [vmem:[%s190_s16] ss:$0 sm:$0xff] }
 0x124   : > { %v196_v18 = vsel %vm371_vm12, %v364_v42, %v191_v17 }
 0x125   : > { %197 = vst [vmem:[%s190_s16] sm:$0x1] %v196_v18 }
 0x12c   :  { %v234_v4 = vld [vmem:[#allocation1] sm:$0xff] }
 0x12d   :  { %235 = vst [vmem:[%s404_s1] sm:$0xff] %v234_v4 }

// kernel: custom-call.75
= control target key start
LH: loop header
LB: loop body
LE: loop exit
PB: predicated region body
PF: predicated region fallthrough
CT: control target
= control target key end

     0   :  { %v70_v1 = vlaneseq  ;;  %vm84_vm1 = vcmask 23552   ;;  %s243_s0 = inlined_call_operand.vmem [shape: f32[3,3], index: 0, kind: input, shape index: {}]   ;;  %s244_s1 = inlined_call_operand.vmem [shape: f32[3,3], index: 1, kind: output, shape index: {}]  }
   0x1   :  { %v63_v0 = vld [vmem:[%s243_s0] sm:$0xf] }
   0x2   :  { %64 = vst [vmem:[#allocation1] sm:$0xf] %v63_v0  ;;  %v71_v3 = vand.u32 127, %v70_v1  ;;  %v73_v4 = vshrl.u32 %v70_v1, 7 }
   0x4   :  { %vm79_vm0 = vcmp.eq.s32.totalorder %v71_v3, 0  ;;  %vm75_vm2 = vcmp.eq.s32.totalorder %v71_v3, %v73_v4  ;;  %vm88_vm3 = vcmp.eq.s32.totalorder %v71_v3, 1  ;;  %vm99_vm4 = vcmp.eq.s32.totalorder %v71_v3, 2 }
   0x9   :  { %v68_v2 = vld [vmem:[#allocation1] sm:$0xf] }
   0xa   :  { %69 = vst [vmem:[#allocation0] sm:$0xf] %v68_v2 }
  0x11   :  { %v76_v5 = vld [vmem:[#allocation0] sm:$0xff] }
  0x12   :  { %v83_v6 = vld [vmem:[#allocation0 + $0x1] ss:$0 sm:$0xff]  ;;  %v80_v7 = vsel %vm79_vm0, %v76_v5, 1.0  ;;  %v94_v11 = vld [vmem:[#allocation0 + $0x2] ss:$0 sm:$0xff] }
  0x13   :  { %v85_v8 = vsel %vm84_vm1, %v83_v6, 0.0  ;;  %v81_v9 = vsel %vm75_vm2, %v80_v7, 0.0  ;;  %v96_v12 = vsel %vm84_vm1, %v94_v11, 0.0 }
  0x14   :  { %v89_v10 = vmul.f32 %v85_v8, %v81_v9 }
  0x16   :  { %90 = vadd.xlane.f32.xlu0 %v89_v10 }
  0x9f   :  { %v91_v13 = vpop.xlane.xlu0 %90 }
  0xa0   :  { %v92_v14 = vsel %vm88_vm3, %v91_v13, %v81_v9 }
  0xa1   :  { %v100_v15 = vmul.f32 %v96_v12, %v92_v14 }
  0xa3   :  { %101 = vadd.xlane.f32.xlu0 %v100_v15 }
 0x12c   :  { %v102_v16 = vpop.xlane.xlu0 %101 }
 0x12d   :  { %v103_v17 = vsel %vm99_vm4, %v102_v16, %v92_v14 }
 0x12e   :  { %104 = vst [vmem:[#allocation2] sm:$0xff] %v103_v17 }
 0x135   :  { %v109_v18 = vld [vmem:[#allocation2] sm:$0xf] }
 0x136   :  { %112 = vst [vmem:[#allocation3] sm:$0xf] %v109_v18 }
 0x13d   :  { %v174_v19 = vld [vmem:[#allocation3] sm:$0xf] }
 0x13e   :  { %175 = vst [vmem:[%s244_s1] sm:$0xf] %v174_v19 }

// kernel: closed_call.18
= control target key start
LH: loop header
LB: loop body
LE: loop exit
PB: predicated region body
PF: predicated region fallthrough
CT: control target
= control target key end

     0   :  { %vm39_vm0 = vcmask 23552   ;;  %vm821_vm1 = vcmask 16384   ;;  %vm1092_vm10 = vmmov 0   ;;  %vm745_vm11 = vcmask 523264   ;;  %s1446_s4 = inlined_call_operand.vmem [shape: f32[3,3], index: 4, kind: input, shape index: {}]   ;;  %s1447_s0 = inlined_call_operand.vmem [shape: f32[64,3], index: 0, kind: input, shape index: {}]   ;;  %s1448_s1 = inlined_call_operand.vmem [shape: f32[128,3], index: 1, kind: input, shape index: {}]   ;;  %s1449_s5 = inlined_call_operand.vmem [shape: f32[1,3], index: 5, kind: input, shape index: {}]   ;;  %s1450_s6 = inlined_call_operand.vmem [shape: f32[5,3], index: 6, kind: output, shape index: {}]   ;;  %s1451_s2 = inlined_call_operand.vmem [shape: f32[128,4], index: 2, kind: input, shape index: {}]   ;;  %s1452_s3 = inlined_call_operand.vmem [shape: f32[1,128], index: 3, kind: input, shape index: {}]  }
   0x1   :  { %v31_v0 = vld [vmem:[%s1446_s4] sm:$0x7]  ;;  %v24_v2 = vld [vmem:[%s1447_s0 + $0x8] sm:$0xff]  ;;  %v25_v3 = vld [vmem:[%s1447_s0 + $0x10] sm:$0xff]  ;;  %vm819_vm12 = vcmask 18432  }
   0x2   :  { %v23_v1 = vld [vmem:[%s1447_s0] sm:$0xff]  ;;  %946 = vmatprep.subr.msk.mxu0 %vm39_vm0, %v31_v0  ;;  %v187_v4 = vld [vmem:[%s1448_s1 + $0x78] sm:$0xff]  ;;  %v186_v5 = vld [vmem:[%s1448_s1 + $0x70] sm:$0xff] }
   0x3   :  { %948 = vmatprep.mubr.msk.f32.mxu0 %vm39_vm0, %v23_v1  ;;  %947 = vmatpush3.xpose.msk.msra.mxu0 %vm39_vm0, %v31_v0  ;;  %v26_v6 = vld [vmem:[%s1447_s0 + $0x18] sm:$0xff]  ;;  %v27_v7 = vld [vmem:[%s1447_s0 + $0x20] sm:$0xff]  ;;  %v185_v8 = vld [vmem:[%s1448_s1 + $0x68] sm:$0xff] }
   0x4   :  { %960 = vmatprep.subr.msk.mxu1 %vm39_vm0, %v187_v4  ;;  %v28_v9 = vld [vmem:[%s1447_s0 + $0x28] sm:$0xff]  ;;  %v29_v10 = vld [vmem:[%s1447_s0 + $0x30] sm:$0xff]  ;;  %v184_v11 = vld [vmem:[%s1448_s1 + $0x60] sm:$0xff] }
   0x5   :  { %961 = vmatpush3.xpose.msk.msra.mxu1 %vm39_vm0, %v187_v4  ;;  %v30_v12 = vld [vmem:[%s1447_s0 + $0x38] sm:$0xff]  ;;  %v182_v14 = vld [vmem:[%s1448_s1 + $0x50] sm:$0xff]  ;;  %v181_v15 = vld [vmem:[%s1448_s1 + $0x48] sm:$0xff] }
   0x6   :  { %949 = vmatmul.mubr.msk.f32.vlgmr.msra.gmra.mxu0 %vm39_vm0, %v24_v2  ;;  %962 = vmatprep.subr.msk.mxu1 %vm39_vm0, %v186_v5  ;;  %v183_v13 = vld [vmem:[%s1448_s1 + $0x58] sm:$0xff]  ;;  %v180_v16 = vld [vmem:[%s1448_s1 + $0x40] sm:$0xff]  ;;  %v178_v18 = vld [vmem:[%s1448_s1 + $0x30] sm:$0xff] }
   0x7   :  { %951 = vmatprep.mubr.msk.f32.mxu0 %vm39_vm0, %v25_v3  ;;  %v179_v17 = vld [vmem:[%s1448_s1 + $0x38] sm:$0xff]  ;;  %v177_v19 = vld [vmem:[%s1448_s1 + $0x28] sm:$0xff]  ;;  %v176_v20 = vld [vmem:[%s1448_s1 + $0x20] sm:$0xff] }
   0x8   :  { %v175_v21 = vld [vmem:[%s1448_s1 + $0x18] sm:$0xff]  ;;  %v174_v22 = vld [vmem:[%s1448_s1 + $0x10] sm:$0xff]  ;;  %v173_v23 = vld [vmem:[%s1448_s1 + $0x8] sm:$0xff] }
   0x9   :  { %963 = vmatpush3.xpose.msk.msra.mxu1 %vm39_vm0, %v186_v5  ;;  %v172_v24 = vld [vmem:[%s1448_s1] sm:$0xff] }
   0xa   :  { %952 = vmatmul.mubr.msk.f32.gmra.mxu0 %vm39_vm0, %v26_v6  ;;  %964 = vmatprep.subr.msk.mxu1 %vm39_vm0, %v185_v8  ;;  %v828_v25 = vld [vmem:[%s1449_s5] ss:$0 sm:$0xff] }
   0xb   :  { %954 = vmatprep.mubr.msk.f32.mxu0 %vm39_vm0, %v27_v7 }
   0xd   :  { %965 = vmatpush3.xpose.msk.msra.mxu1 %vm39_vm0, %v185_v8 }
   0xe   :  { %955 = vmatmul.mubr.msk.f32.gmra.mxu0 %vm39_vm0, %v28_v9  ;;  %966 = vmatprep.subr.msk.mxu1 %vm39_vm0, %v184_v11 }
   0xf   :  { %957 = vmatprep.mubr.msk.f32.mxu0 %vm39_vm0, %v29_v10 }
  0x11   :  { %967 = vmatpush3.xpose.msk.msra.mxu1 %vm39_vm0, %v184_v11 }
  0x12   :  { %958 = vmatmul.mubr.msk.f32.gmra.mxu0 %vm39_vm0, %v30_v12  ;;  %968 = vmatprep.subr.msk.mxu1 %vm39_vm0, %v183_v13 }
  0x15   :  { %969 = vmatpush3.xpose.msk.msra.mxu1 %vm39_vm0, %v183_v13 }
  0x16   :  { %970 = vmatprep.subr.msk.mxu1 %vm39_vm0, %v182_v14 }
  0x19   :  { %971 = vmatpush3.xpose.msk.msra.mxu1 %vm39_vm0, %v182_v14 }
  0x1a   :  { %972 = vmatprep.subr.msk.mxu1 %vm39_vm0, %v181_v15 }
  0x1d   :  { %973 = vmatpush3.xpose.msk.msra.mxu1 %vm39_vm0, %v181_v15 }
  0x1e   :  { %974 = vmatprep.subr.msk.mxu1 %vm39_vm0, %v180_v16 }
  0x21   :  { %975 = vmatpush3.xpose.msk.msra.mxu1 %vm39_vm0, %v180_v16 }
  0x22   :  { %976 = vmatprep.subr.msk.mxu1 %vm39_vm0, %v179_v17 }
  0x25   :  { %977 = vmatpush3.xpose.msk.msra.mxu1 %vm39_vm0, %v179_v17 }
  0x26   :  { %978 = vmatprep.subr.msk.mxu1 %vm39_vm0, %v178_v18 }
  0x29   :  { %979 = vmatpush3.xpose.msk.msra.mxu1 %vm39_vm0, %v178_v18 }
  0x2a   :  { %980 = vmatprep.subr.msk.mxu1 %vm39_vm0, %v177_v19 }
  0x2d   :  { %981 = vmatpush3.xpose.msk.msra.mxu1 %vm39_vm0, %v177_v19 }
  0x2e   :  { %982 = vmatprep.subr.msk.mxu1 %vm39_vm0, %v176_v20 }
  0x31   :  { %983 = vmatpush3.xpose.msk.msra.mxu1 %vm39_vm0, %v176_v20 }
  0x32   :  { %984 = vmatprep.subr.msk.mxu1 %vm39_vm0, %v175_v21 }
  0x35   :  { %985 = vmatpush3.xpose.msk.msra.mxu1 %vm39_vm0, %v175_v21 }
  0x36   :  { %986 = vmatprep.subr.msk.mxu1 %vm39_vm0, %v174_v22 }
  0x39   :  { %987 = vmatpush3.xpose.msk.msra.mxu1 %vm39_vm0, %v174_v22 }
  0x3a   :  { %988 = vmatprep.subr.msk.mxu1 %vm39_vm0, %v173_v23 }
  0x3d   :  { %989 = vmatpush3.xpose.msk.msra.mxu1 %vm39_vm0, %v173_v23 }
  0x3e   :  { %990 = vmatprep.subr.msk.mxu1 %vm39_vm0, %v172_v24 }
  0x41   :  { %991 = vmatpush3.xpose.msk.msra.mxu1 %vm39_vm0, %v172_v24  ;;  %v491_v24 = vld [vmem:[%s1451_s2 + $0x78] sm:$0xff] }
  0x42   :  { %1004 = vmatprep.subr.mxu0 %v491_v24 }
  0x43   :  { %1005 = vmatpush3.msra.mxu0 %v491_v24 }
  0xc6   :  { %v950_v26 = vpop.f32.mrf.mxu0 }
  0xc7   :  { %v1248_v27 = vadd.f32 %v950_v26, %v828_v25  ;;  %v489_v26 = vld [vmem:[%s1451_s2 + $0x68] sm:$0xff] }
  0xc8   :  { %v133_v28 = vpop.f32.mrf.mxu0 }
  0xc9   :  { %v1250_v29 = vadd.f32 %v828_v25, %v133_v28  ;;  %v366_v34 = vmul.f32 %v1248_v27, %v1248_v27  ;;  %v654_v35 = vsel %vm39_vm0, %v1248_v27, 0.0  ;;  %v488_v28 = vld [vmem:[%s1451_s2 + $0x60] sm:$0xff] }
  0xca   :  { %v953_v30 = vpop.f32.mrf.mxu0 }
  0xcb   :  { %v653_v31 = vsel %vm39_vm0, %v1250_v29, 0.0  ;;  %992 = vmatprep.mubr.msk.f32.mxu1 %vm39_vm0, %v1250_v29  ;;  %v365_v32 = vmul.f32 %v1250_v29, %v1250_v29  ;;  %v1264_v36 = vadd.f32 %v953_v30, %v828_v25  ;;  %v376_v46 = vsel %vm39_vm0, %v366_v34, 0.0  ;;  %v487_v30 = vld [vmem:[%s1451_s2 + $0x58] sm:$0xff] }
  0xcc   :  { %v143_v33 = vpop.f32.mrf.mxu0  ;;  %993 = vmatmul.mubr.msk.f32.vlgmr.msra.gmra.mxu1 %vm39_vm0, %v1248_v27  ;;  %v655_v39 = vadd.f32 %v654_v35, %v653_v31  ;;  %v486_v31 = vld [vmem:[%s1451_s2 + $0x50] sm:$0xff]  ;;  %v483_v34 = vld [vmem:[%s1451_s2 + $0x38] sm:$0xff] }
  0xcd   :  { %v1266_v37 = vadd.f32 %v828_v25, %v143_v33  ;;  %v373_v38 = vsel %vm39_vm0, %v365_v32, 0.0  ;;  %v658_v47 = vsel %vm39_vm0, %v1264_v36, 0.0  ;;  %v368_v50 = vmul.f32 %v1264_v36, %v1264_v36  ;;  %v485_v32 = vld [vmem:[%s1451_s2 + $0x48] sm:$0xff]  ;;  %v484_v33 = vld [vmem:[%s1451_s2 + $0x40] sm:$0xff]  ;;  %v482_v35 = vld [vmem:[%s1451_s2 + $0x30] sm:$0xff] }
  0xce   :  { %v956_v40 = vpop.f32.mrf.mxu0  ;;  %374 = vadd.xlane.f32.xlu0 %v373_v38  ;;  %v481_v38 = vld [vmem:[%s1451_s2 + $0x28] sm:$0xff] }
  0xcf   :  { %v656_v41 = vsel %vm39_vm0, %v1266_v37, 0.0  ;;  %v1271_v42 = vadd.f32 %v956_v40, %v828_v25  ;;  %995 = vmatprep.mubr.msk.f32.mxu1 %vm39_vm0, %v1266_v37  ;;  %v367_v43 = vmul.f32 %v1266_v37, %v1266_v37  ;;  %v382_v60 = vsel %vm39_vm0, %v368_v50, 0.0  ;;  %v479_v40 = vld [vmem:[%s1451_s2 + $0x18] sm:$0xff] }
  0xd0   :  { %v657_v44 = vadd.f32 %v656_v41, %v655_v39  ;;  %v153_v45 = vpop.f32.mrf.mxu0  ;;  %996 = vmatmul.mubr.msk.f32.gmra.mxu1 %vm39_vm0, %v1264_v36  ;;  %v480_v39 = vld [vmem:[%s1451_s2 + $0x20] sm:$0xff]  ;;  %v478_v41 = vld [vmem:[%s1451_s2 + $0x10] sm:$0xff] }
  0xd1   :  { %v1282_v48 = vadd.f32 %v828_v25, %v153_v45  ;;  %v379_v49 = vsel %vm39_vm0, %v367_v43, 0.0  ;;  %v662_v53 = vsel %vm39_vm0, %v1271_v42, 0.0  ;;  %v370_v62 = vmul.f32 %v1271_v42, %v1271_v42 }
  0xd2   :  { %v659_v51 = vadd.f32 %v658_v47, %v657_v44  ;;  %v959_v52 = vpop.f32.mrf.mxu0  ;;  %380 = vadd.xlane.f32.xlu1 %v379_v49  ;;  %377 = vadd.xlane.f32.xlu0 %v376_v46  ;;  %v862_v47 = vld [vmem:[%s1452_s3] ss:$0 sm:$0xff] }
  0xd3   :  { %v660_v54 = vsel %vm39_vm0, %v1282_v48, 0.0  ;;  %v1291_v55 = vadd.f32 %v959_v52, %v828_v25  ;;  %998 = vmatprep.mubr.msk.f32.mxu1 %vm39_vm0, %v1282_v48  ;;  %v369_v56 = vmul.f32 %v1282_v48, %v1282_v48  ;;  %v388_v5 = vsel %vm39_vm0, %v370_v62, 0.0 }
  0xd4   :  { %v661_v57 = vadd.f32 %v660_v54, %v659_v51  ;;  %v163_v58 = vpop.f32.mrf.mxu0  ;;  %999 = vmatmul.mubr.msk.f32.gmra.mxu1 %vm39_vm0, %v1271_v42 }
  0xd5   :  { %v1299_v59 = vadd.f32 %v828_v25, %v163_v58  ;;  %v385_v61 = vsel %vm39_vm0, %v369_v56, 0.0  ;;  %v666_v0 = vsel %vm39_vm0, %v1291_v55, 0.0  ;;  %v372_v2 = vmul.f32 %v1291_v55, %v1291_v55  ;;  %v490_v25 = vld [vmem:[%s1451_s2 + $0x70] sm:$0xff] }
  0xd6   :  { %v663_v63 = vadd.f32 %v662_v53, %v661_v57  ;;  %383 = vadd.xlane.f32.xlu1 %v382_v60  ;;  %386 = vadd.xlane.f32.xlu0 %v385_v61 }
  0xd7   :  { %v664_v1 = vsel %vm39_vm0, %v1299_v59, 0.0  ;;  %1001 = vmatprep.mubr.msk.f32.mxu1 %vm39_vm0, %v1299_v59  ;;  %v371_v3 = vmul.f32 %v1299_v59, %v1299_v59  ;;  %v394_v8 = vsel %vm39_vm0, %v372_v2, 0.0  ;;  %1006 = vmatprep.subr.mxu0 %v490_v25 }
  0xd8   :  { %v665_v4 = vadd.f32 %v664_v1, %v663_v63  ;;  %1002 = vmatmul.mubr.msk.f32.gmra.mxu1 %vm39_vm0, %v1291_v55  ;;  %1007 = vmatpush3.msra.mxu0 %v490_v25 }
  0xd9   :  { %v391_v6 = vsel %vm39_vm0, %v371_v3, 0.0  ;;  %1008 = vmatprep.subr.mxu0 %v489_v26 }
  0xda   :  { %v667_v7 = vadd.f32 %v666_v0, %v665_v4  ;;  %389 = vadd.xlane.f32.xlu1 %v388_v5  ;;  %392 = vadd.xlane.f32.xlu0 %v391_v6 }
  0xdb   :  { %1009 = vmatpush3.msra.mxu0 %v489_v26 }
  0xdc   :  { %v668_v9 = vrot.slane %v667_v7, 4  ;;  %1010 = vmatprep.subr.mxu0 %v488_v28 }
  0xdd   :  { %1011 = vmatpush3.msra.mxu0 %v488_v28 }
  0xde   :  { %v669_v10 = vadd.f32 %v668_v9, %v667_v7  ;;  %395 = vadd.xlane.f32.xlu1 %v394_v8  ;;  %1012 = vmatprep.subr.mxu0 %v487_v30 }
  0xdf   :  { %1013 = vmatpush3.msra.mxu0 %v487_v30 }
  0xe0   :  { %v670_v11 = vrot.slane %v669_v10, 2  ;;  %1014 = vmatprep.subr.mxu0 %v486_v31 }
  0xe1   :  { %1015 = vmatpush3.msra.mxu0 %v486_v31 }
  0xe2   :  { %v671_v12 = vadd.f32 %v670_v11, %v669_v10  ;;  %1016 = vmatprep.subr.mxu0 %v485_v32 }
  0xe3   :  { %1017 = vmatpush3.msra.mxu0 %v485_v32 }
  0xe4   :  { %v672_v13 = vrot.slane %v671_v12, 1  ;;  %1018 = vmatprep.subr.mxu0 %v484_v33 }
  0xe5   :  { %1019 = vmatpush3.msra.mxu0 %v484_v33 }
  0xe6   :  { %v673_v14 = vadd.f32 %v672_v13, %v671_v12  ;;  %1020 = vmatprep.subr.mxu0 %v483_v34 }
  0xe7   :  { %1021 = vmatpush3.msra.mxu0 %v483_v34 }
  0xe8   :  { %v1320_v15 = vmul.f32 0.015625, %v673_v14  ;;  %1022 = vmatprep.subr.mxu0 %v482_v35 }
  0xe9   :  { %1023 = vmatpush3.msra.mxu0 %v482_v35 }
  0xea   :  { %v697_v16 = vsub.f32 %v1250_v29, %v1320_v15  ;;  %v698_v17 = vsub.f32 %v1248_v27, %v1320_v15  ;;  %v699_v18 = vsub.f32 %v1266_v37, %v1320_v15  ;;  %v700_v19 = vsub.f32 %v1264_v36, %v1320_v15  ;;  %822 = vst.msk [vmem:[%s1450_s6 + $0x3] sm:$0x1] %vm821_vm1, %v1320_v15 }
  0xeb   :  { %v701_v20 = vsub.f32 %v1282_v48, %v1320_v15  ;;  %v702_v21 = vsub.f32 %v1271_v42, %v1320_v15  ;;  %v703_v22 = vsub.f32 %v1299_v59, %v1320_v15  ;;  %v704_v23 = vsub.f32 %v1291_v55, %v1320_v15  ;;  %1024 = vmatprep.subr.mxu0 %v481_v38 }
  0xec   :  { %1025 = vmatpush3.msra.mxu0 %v481_v38 }
  0xed   :  { %1026 = vmatprep.subr.mxu0 %v480_v39 }
  0xee   :  { %1027 = vmatpush3.msra.mxu0 %v480_v39 }
  0xef   :  { %1028 = vmatprep.subr.mxu0 %v479_v40 }
  0xf0   :  { %1029 = vmatpush3.msra.mxu0 %v479_v40 }
  0xf1   :  { %1030 = vmatprep.subr.mxu0 %v478_v41 }
  0xf2   :  { %1031 = vmatpush3.msra.mxu0 %v478_v41  ;;  %v477_v41 = vld [vmem:[%s1451_s2 + $0x8] sm:$0xff] }
  0xf3   :  { %1032 = vmatprep.subr.mxu0 %v477_v41 }
  0xf4   :  { %1033 = vmatpush3.msra.mxu0 %v477_v41 }
 0x157   :  { %v375_v43 = vpop.xlane.xlu0 %374 }
 0x158   :  { %v404_v53 = vadd.f32 %v862_v47, %v375_v43 }
 0x15b   :  { %v381_v44 = vpop.xlane.xlu1 %380  ;;  %v378_v45 = vpop.xlane.xlu0 %377 }
 0x15c   :  { %v405_v50 = vadd.f32 %v862_v47, %v378_v45  ;;  %v406_v1 = vadd.f32 %v862_v47, %v381_v44  ;;  %v476_v45 = vld [vmem:[%s1451_s2] sm:$0xff] }
 0x15d   :  { %1034 = vmatprep.subr.mxu0 %v476_v45 }
 0x15e   :  { %1035 = vmatpush3.msra.mxu0 %v476_v45 }
 0x15f   :  { %v384_v46 = vpop.xlane.xlu1 %383  ;;  %v387_v5 = vpop.xlane.xlu0 %386 }
 0x160   :  { %v407_v60 = vadd.f32 %v862_v47, %v384_v46  ;;  %v408_v13 = vadd.f32 %v862_v47, %v387_v5 }
 0x163   :  { %v390_v57 = vpop.xlane.xlu1 %389  ;;  %v393_v26 = vpop.xlane.xlu0 %392 }
 0x164   :  { %v409_v7 = vadd.f32 %v862_v47, %v390_v57  ;;  %v410_v35 = vadd.f32 %v862_v47, %v393_v26 }
 0x167   :  { %v396_v11 = vpop.xlane.xlu1 %395 }
 0x168   :  { %v411_v30 = vadd.f32 %v862_v47, %v396_v11  ;;  %v1089_v47 = vmov 3  }
 0x169   :  { %1072 = vset.pattern.permute.xlu1 %v1089_v47  ;;  %1071 = vset.pattern.permute.xlu0 %v1089_v47 }
 0x18c   :  { %v994_v49 = vpop.f32.mrf.mxu1 }
 0x18d   :  { %v413_v51 = vmul.f32 2.0, %v994_v49 }
 0x18e   :  { %v326_v52 = vpop.f32.mrf.mxu1 }
 0x18f   :  { %v412_v54 = vmul.f32 2.0, %v326_v52  ;;  %v421_v56 = vsub.f32 %v405_v50, %v413_v51  ;;  %v1090_v51 = vmov 1.0  }
 0x190   :  { %v997_v58 = vpop.f32.mrf.mxu1 }
 0x191   :  { %v415_v61 = vmul.f32 2.0, %v997_v58  ;;  %v429_v62 = vmax.f32 %v421_v56, 0.0  ;;  %v420_v63 = vsub.f32 %v404_v53, %v412_v54 }
 0x192   :  { %v336_v0 = vpop.f32.mrf.mxu1 }
 0x193   :  { %v414_v2 = vmul.f32 2.0, %v336_v0  ;;  %438 = vmin.xlane.f32.xlu1 %v429_v62  ;;  %v428_v3 = vmax.f32 %v420_v63, 0.0  ;;  %v423_v4 = vsub.f32 %v407_v60, %v415_v61 }
 0x194   :  { %v1000_v6 = vpop.f32.mrf.mxu1 }
 0x195   :  { %v417_v8 = vmul.f32 2.0, %v1000_v6  ;;  %436 = vmin.xlane.f32.xlu0 %v428_v3  ;;  %v431_v9 = vmax.f32 %v423_v4, 0.0  ;;  %v422_v10 = vsub.f32 %v406_v1, %v414_v2  ;;  %v1091_v4 = vmov 0.0  }
 0x196   :  { %v346_v12 = vpop.f32.mrf.mxu1  ;;  %1048 = vmatprep.subr.mxu0 %v1091_v4 }
 0x197   :  { %v416_v14 = vmul.f32 2.0, %v346_v12  ;;  %442 = vmin.xlane.f32.xlu1 %v431_v9  ;;  %v430_v24 = vmax.f32 %v422_v10, 0.0  ;;  %v425_v25 = vsub.f32 %v409_v7, %v417_v8 }
 0x198   :  { %v1003_v28 = vpop.f32.mrf.mxu1 }
 0x199   :  { %v419_v31 = vmul.f32 2.0, %v1003_v28  ;;  %440 = vmin.xlane.f32.xlu0 %v430_v24  ;;  %v433_v32 = vmax.f32 %v425_v25, 0.0  ;;  %v424_v33 = vsub.f32 %v408_v13, %v416_v14 }
 0x19a   :  { %v356_v34 = vpop.f32.mrf.mxu1 }
 0x19b   :  { %v418_v38 = vmul.f32 2.0, %v356_v34  ;;  %446 = vmin.xlane.f32.xlu1 %v433_v32  ;;  %v432_v39 = vmax.f32 %v424_v33, 0.0  ;;  %v427_v40 = vsub.f32 %v411_v30, %v419_v31 }
 0x19d   :  { %v426_v43 = vsub.f32 %v410_v35, %v418_v38  ;;  %444 = vmin.xlane.f32.xlu0 %v432_v39  ;;  %v435_v44 = vmax.f32 %v427_v40, 0.0 }
 0x19f   :  { %450 = vmin.xlane.f32.xlu1 %v435_v44  ;;  %v434_v46 = vmax.f32 %v426_v43, 0.0 }
 0x1a1   :  { %448 = vmin.xlane.f32.xlu0 %v434_v46 }
 0x21c   :  { %v439_v49 = vpop.xlane.xlu1 %438 }
 0x21d   :  { %vm453_vm3 = vcmp.le.f32.partialorder %v429_v62, %v439_v49 }
 0x21e   :  { %v437_v50 = vpop.xlane.xlu0 %436 }
 0x21f   :  { %vm452_vm2 = vcmp.le.f32.partialorder %v428_v3, %v437_v50 }
 0x220   :  { %1036 = vmatprep.mubr.msk.f32.mxu0 %vm452_vm2, %v1090_v51  ;;  %v443_v52 = vpop.xlane.xlu1 %442 }
 0x221   :  { %1037 = vmatmul.mubr.msk.f32.vlgmr.msra.gmra.mxu0 %vm453_vm3, %v1090_v51  ;;  %vm455_vm5 = vcmp.le.f32.partialorder %v431_v9, %v443_v52 }
 0x222   :  { %v441_v53 = vpop.xlane.xlu0 %440 }
 0x223   :  { %vm454_vm4 = vcmp.le.f32.partialorder %v430_v24, %v441_v53 }
 0x224   :  { %1039 = vmatprep.mubr.msk.f32.mxu0 %vm454_vm4, %v1090_v51  ;;  %v447_v54 = vpop.xlane.xlu1 %446 }
 0x225   :  { %1040 = vmatmul.mubr.msk.f32.gmra.mxu0 %vm455_vm5, %v1090_v51  ;;  %vm457_vm7 = vcmp.le.f32.partialorder %v433_v32, %v447_v54 }
 0x226   :  { %v445_v56 = vpop.xlane.xlu0 %444 }
 0x227   :  { %vm456_vm6 = vcmp.le.f32.partialorder %v432_v39, %v445_v56 }
 0x228   :  { %1042 = vmatprep.mubr.msk.f32.mxu0 %vm456_vm6, %v1090_v51  ;;  %v451_v57 = vpop.xlane.xlu1 %450 }
 0x229   :  { %1043 = vmatmul.mubr.msk.f32.gmra.mxu0 %vm457_vm7, %v1090_v51  ;;  %vm459_vm9 = vcmp.le.f32.partialorder %v435_v44, %v451_v57 }
 0x22a   :  { %v449_v58 = vpop.xlane.xlu0 %448 }
 0x22b   :  { %vm458_vm8 = vcmp.le.f32.partialorder %v434_v46, %v449_v58 }
 0x22c   :  { %1045 = vmatprep.mubr.msk.f32.mxu0 %vm458_vm8, %v1090_v51 }
 0x22d   :  { %1046 = vmatmul.mubr.msk.f32.gmra.mxu0 %vm459_vm9, %v1090_v51 }
 0x22e   :  { %1064 = vmatprep.mubr.msk.f32.mxu0 %vm1092_vm10, %v1091_v4 }
 0x2e1   :  { %v1038_v60 = vpop.f32.mrf.mxu0 }
 0x2e2   :  { %604 = vperm.xlu1 %1072, %v1038_v60  }
 0x2e3   :  { %v558_v61 = vpop.f32.mrf.mxu0 }
 0x2e4   :  { %599 = vperm.xlu0 %1071, %v558_v61  }
 0x2e5   :  { %v1041_v62 = vpop.f32.mrf.mxu0 }
 0x2e6   :  { %614 = vperm.xlu1 %1072, %v1041_v62  }
 0x2e7   :  { %v568_v63 = vpop.f32.mrf.mxu0 }
 0x2e9   :  { %v1044_v0 = vpop.f32.mrf.mxu0 }
 0x2ea   :  { %609 = vperm.xlu1 %1072, %v568_v63  }
 0x2eb   :  { %v578_v1 = vpop.f32.mrf.mxu0 }
 0x2ed   :  { %v1047_v2 = vpop.f32.mrf.mxu0 }
 0x2ee   :  { %624 = vperm.xlu1 %1072, %v1044_v0  }
 0x2ef   :  { %v588_v3 = vpop.f32.mrf.mxu0 }
 0x2f2   :  { %619 = vperm.xlu1 %1072, %v578_v1  }
 0x2f6   :  { %629 = vperm.xlu1 %1072, %v588_v3  }
 0x2fa   :  { %634 = vperm.xlu1 %1072, %v1047_v2  }
 0x323   :  { %713 = vxpose.xlu1.b32.start [1/8] (short) (narrow) %v697_v16, 8 }
 0x327   :  { %714 = vxpose.xlu1.b32.cont [2/8] (short) (narrow) %v698_v17, 8 }
 0x32b   :  { %715 = vxpose.xlu1.b32.cont [3/8] (short) (narrow) %v699_v18, 8 }
 0x32f   :  { %716 = vxpose.xlu1.b32.cont [4/8] (short) (narrow) %v700_v19, 8 }
 0x333   :  { %717 = vxpose.xlu1.b32.cont [5/8] (short) (narrow) %v701_v20, 8 }
 0x337   :  { %718 = vxpose.xlu1.b32.cont [6/8] (short) (narrow) %v702_v21, 8 }
 0x33b   :  { %719 = vxpose.xlu1.b32.cont [7/8] (short) (narrow) %v703_v22, 8 }
 0x33f   :  { %720 = vxpose.xlu1.b32.end [8/8] (short) (narrow) %v704_v23, 8 }
 0x35d   :  { %v605_v27 = vpop.permute.xlu1 %604 }
 0x35f   :  { %v600_v29 = vpop.permute.xlu0 %599 }
 0x360   :  { %1073 = vrcp.f32 %v600_v29 }
 0x361   :  { %v615_v36 = vpop.permute.xlu1 %614  ;;  %1075 = vrcp.f32 %v605_v27 }
 0x365   :  { %v610_v37 = vpop.permute.xlu1 %609 }
 0x366   :  { %1077 = vrcp.f32 %v610_v37 }
 0x367   :  { %1079 = vrcp.f32 %v615_v36 }
 0x369   :  { %v625_v48 = vpop.permute.xlu1 %624 }
 0x36a   :  { %1081 = vrcp.f32 %v625_v48 }
 0x36d   :  { %v1074_v42 = vpop.eup %1073  ;;  %v620_v16 = vpop.permute.xlu1 %619 }
 0x36e   :  { %1083 = vrcp.f32 %v620_v16  ;;  %v1076_v17 = vpop.eup %1075  ;;  %v1420_v59 = vmul.f32 %v1074_v42, %v558_v61 }
 0x36f   :  { %v640_v19 = vmul.f32 %v1076_v17, %v1038_v60 }
 0x370   :  { %v675_v15 = vsel %vm39_vm0, %v1420_v59, 0.0 }
 0x371   :  { %v630_v18 = vpop.permute.xlu1 %629  ;;  %v676_v23 = vsel %vm39_vm0, %v640_v19, 0.0 }
 0x372   :  { %1085 = vrcp.f32 %v630_v18  ;;  %v677_v6 = vadd.f32 %v676_v23, %v675_v15 }
 0x373   :  { %v1078_v55 = vpop.eup %1077 }
 0x374   :  { %v642_v20 = vmul.f32 %v1078_v55, %v568_v63  ;;  %v1080_v21 = vpop.eup %1079 }
 0x375   :  { %v635_v22 = vpop.permute.xlu1 %634  ;;  %v644_v7 = vmul.f32 %v1080_v21, %v1041_v62 }
 0x376   :  { %v678_v5 = vsel %vm39_vm0, %v642_v20, 0.0  ;;  %1087 = vrcp.f32 %v635_v22 }
 0x377   :  { %v1082_v8 = vpop.eup %1081  ;;  %v679_v9 = vadd.f32 %v678_v5, %v677_v6  ;;  %v680_v11 = vsel %vm39_vm0, %v644_v7, 0.0 }
 0x378   :  { %v648_v12 = vmul.f32 %v1082_v8, %v1044_v0 }
 0x379   :  { %v681_v14 = vadd.f32 %v680_v11, %v679_v9 }
 0x37a   :  { %v684_v28 = vsel %vm39_vm0, %v648_v12, 0.0 }
 0x37b   :  { %v1084_v10 = vpop.eup %1083 }
 0x37c   :  { %v646_v13 = vmul.f32 %v1084_v10, %v578_v1 }
 0x37e   :  { %v682_v24 = vsel %vm39_vm0, %v646_v13, 0.0 }
 0x37f   :  { %v1086_v25 = vpop.eup %1085  ;;  %v683_v26 = vadd.f32 %v682_v24, %v681_v14 }
 0x380   :  { %v650_v30 = vmul.f32 %v1086_v25, %v588_v3 }
 0x381   :  { %v685_v31 = vadd.f32 %v684_v28, %v683_v26 }
 0x382   :  { %v686_v32 = vsel %vm39_vm0, %v650_v30, 0.0 }
 0x383   :  { %v1088_v33 = vpop.eup %1087  ;;  %v687_v35 = vadd.f32 %v686_v32, %v685_v31 }
 0x384   :  { %v652_v34 = vmul.f32 %v1088_v33, %v1047_v2 }
 0x386   :  { %v688_v38 = vsel %vm39_vm0, %v652_v34, 0.0 }
 0x387   :  { %v689_v39 = vadd.f32 %v688_v38, %v687_v35 }
 0x389   :  { %v690_v40 = vrot.slane %v689_v39, 4 }
 0x38b   :  { %v691_v41 = vadd.f32 %v690_v40, %v689_v39 }
 0x38d   :  { %v692_v43 = vrot.slane %v691_v41, 2 }
 0x38f   :  { %v693_v44 = vadd.f32 %v692_v43, %v691_v41 }
 0x391   :  { %v694_v45 = vrot.slane %v693_v44, 1 }
 0x393   :  { %v695_v46 = vadd.f32 %v694_v45, %v693_v44 }
 0x395   :  { %v696_v47 = vmul.f32 0.015625, %v695_v46 }
 0x397   :  { %v712_v49 = vsub.f32 %v652_v34, %v696_v47  ;;  %823 = vst.msk [vmem:[%s1450_s6 + $0x4] sm:$0x1] %vm821_vm1, %v696_v47  ;;  %v711_v50 = vsub.f32 %v650_v30, %v696_v47  ;;  %v710_v51 = vsub.f32 %v648_v12, %v696_v47  ;;  %v709_v52 = vsub.f32 %v646_v13, %v696_v47 }
 0x398   :  { %v708_v53 = vsub.f32 %v644_v7, %v696_v47  ;;  %v707_v54 = vsub.f32 %v642_v20, %v696_v47  ;;  %v706_v56 = vsub.f32 %v640_v19, %v696_v47  ;;  %v705_v58 = vsub.f32 %v1420_v59, %v696_v47 }
 0x399   :  { %1049 = vmatpush3.msra.mxu0 %v712_v49 }
 0x39a   :  { %1050 = vmatprep.subr.mxu0 %v1091_v4 }
 0x39b   :  { %1051 = vmatpush3.msra.mxu0 %v711_v50 }
 0x39c   :  { %1052 = vmatprep.subr.mxu0 %v1091_v4 }
 0x39d   :  { %1053 = vmatpush3.msra.mxu0 %v710_v51 }
 0x39e   :  { %1054 = vmatprep.subr.mxu0 %v1091_v4 }
 0x39f   :  { %1055 = vmatpush3.msra.mxu0 %v709_v52  ;;  %v729_v57 = vpop.trf.xlu1 }
 0x3a0   :  { %1056 = vmatprep.subr.mxu0 %v1091_v4 }
 0x3a1   :  { %1057 = vmatpush3.msra.mxu0 %v708_v53 }
 0x3a2   :  { %1058 = vmatprep.subr.mxu0 %v1091_v4 }
 0x3a3   :  { %1059 = vmatpush3.msra.mxu0 %v707_v54 }
 0x3a4   :  { %1060 = vmatprep.subr.mxu0 %v1091_v4 }
 0x3a5   :  { %1061 = vmatpush3.msra.mxu0 %v706_v56 }
 0x3a6   :  { %1062 = vmatprep.subr.mxu0 %v1091_v4 }
 0x3a7   :  { %1063 = vmatpush3.msra.mxu0 %v705_v58 }
 0x3a8   :  { %1065 = vmatmul.mubr.msk.f32.vlgmr.msra.gmra.mxu0 %vm745_vm11, %v729_v57 }
 0x468   :  { %v815_v60 = vpop.f32.mrf.mxu0 }
 0x469   :  { %820 = vst.msk [vmem:[%s1450_s6] sm:$0x7] %vm819_vm12, %v815_v60 }
 0x46a   :  { %v1066_v61 = vpop.f32.mrf.mxu0 }

// kernel: custom-call.76
= control target key start
LH: loop header
LB: loop body
LE: loop exit
PB: predicated region body
PF: predicated region fallthrough
CT: control target
= control target key end

     0   :  { %v159_v0 = vmov 0.0   ;;  %vm41_vm0 = vcmask 7168   ;;  %vm59_vm1 = vcmask 15368   ;;  %vm76_vm2 = vcmask 1047553   ;;  %s176_s0 = inlined_call_operand.vmem [shape: f32[3,3], index: 0, kind: input, shape index: {}]   ;;  %s177_s1 = inlined_call_operand.vmem [shape: f32[3,3], index: 1, kind: output, shape index: {}]  }
   0x1   :  { %40 = vst [vmem:[#allocation2] sm:$0xff] %v159_v0  ;;  %v18_v1 = vld [vmem:[%s176_s0] sm:$0xf]  ;;  %vm77_vm3 = vmand %vm59_vm1, %vm76_vm2  ;;  %vm81_vm4 = vcmask 23568   ;;  %vm98_vm5 = vcmask 1047554  }
   0x2   :  { %19 = vst [vmem:[#allocation1] sm:$0xf] %v18_v1  ;;  %vm99_vm6 = vmand %vm81_vm4, %vm98_vm5 }
   0x8   :  { %v42_v2 = vld [vmem:[#allocation2] ss:$0 sm:$0xff] }
   0x9   :  { %v44_v3 = vmul.f32 %v42_v2, %v42_v2  ;;  %v51_v4 = vmul.f32 0.0, %v42_v2  ;;  %v38_v5 = vld [vmem:[#allocation1] sm:$0xf] }
   0xa   :  { %39 = vst [vmem:[#allocation0] sm:$0xf] %v38_v5 }
   0xb   :  { %45 = vadd.xlane.f32.xlu0 %v44_v3 }
   0xf   :  { %52 = vadd.xlane.f32.xlu0 %v51_v4 }
  0x11   :  { %v43_v6 = vld [vmem:[#allocation0] ss:$0 sm:$0xff]  ;;  %v63_v18 = vld [vmem:[#allocation0 + $0x1] ss:$0 sm:$0xff]  ;;  %v85_v30 = vld [vmem:[#allocation0 + $0x2] ss:$0 sm:$0xff] }
  0x12   :  { %v49_v10 = vld [vmem:[#allocation0] sm:$0xff] }
  0x94   :  { %v46_v7 = vpop.xlane.xlu0 %45 }
  0x95   :  { %v47_v8 = vsub.f32 %v43_v6, %v46_v7 }
  0x97   :  { %153 = vrsqrt.f32 %v47_v8 }
  0x98   :  { %v53_v9 = vpop.xlane.xlu0 %52 }
  0x99   :  { %v54_v11 = vsub.f32 %v49_v10, %v53_v9 }
  0xa4   :  { %v154_v12 = vpop.eup %153 }
  0xa5   :  { %v55_v13 = vmul.f32 %v154_v12, %v54_v11 }
  0xa7   :  { %v56_v14 = vsel %vm41_vm0, %v55_v13, 0.0 }
  0xa8   :  { %58 = vst [vmem:[#allocation2] sm:$0xff] %v56_v14 }
  0xaf   :  { %v61_v15 = vld [vmem:[#allocation2 + $0x1] ss:$0 sm:$0xff] }
  0xb0   :  { %v64_v16 = vmul.f32 %v61_v15, %v61_v15  ;;  %v71_v17 = vmul.f32 %v61_v15, %v56_v14 }
  0xb2   :  { %65 = vadd.xlane.f32.xlu1 %v64_v16 }
  0xb6   :  { %72 = vadd.xlane.f32.xlu1 %v71_v17 }
 0x13b   :  { %v66_v19 = vpop.xlane.xlu1 %65 }
 0x13c   :  { %v67_v20 = vsub.f32 %v63_v18, %v66_v19 }
 0x13e   :  { %155 = vrsqrt.f32 %v67_v20 }
 0x13f   :  { %v73_v21 = vpop.xlane.xlu1 %72 }
 0x140   :  { %v74_v22 = vsub.f32 %v49_v10, %v73_v21 }
 0x14b   :  { %v156_v23 = vpop.eup %155 }
 0x14c   :  { %v75_v24 = vmul.f32 %v156_v23, %v74_v22 }
 0x14e   :  { %v78_v25 = vsel %vm77_vm3, %v75_v24, 0.0 }
 0x14f   :  { %v79_v26 = vadd.f32 %v78_v25, %v56_v14 }
 0x151   :  { %80 = vst [vmem:[#allocation2] sm:$0xff] %v79_v26 }
 0x158   :  { %v83_v27 = vld [vmem:[#allocation2 + $0x2] ss:$0 sm:$0xff] }
 0x159   :  { %v93_v28 = vmul.f32 %v83_v27, %v79_v26  ;;  %v86_v29 = vmul.f32 %v83_v27, %v83_v27 }
 0x15b   :  { %94 = vadd.xlane.f32.xlu1 %v93_v28  ;;  %87 = vadd.xlane.f32.xlu0 %v86_v29 }
 0x1e4   :  { %v88_v31 = vpop.xlane.xlu0 %87  ;;  %v95_v33 = vpop.xlane.xlu1 %94 }
 0x1e5   :  { %v89_v32 = vsub.f32 %v85_v30, %v88_v31  ;;  %v96_v34 = vsub.f32 %v49_v10, %v95_v33 }
 0x1e7   :  { %157 = vrsqrt.f32 %v89_v32 }
 0x1f4   :  { %v158_v35 = vpop.eup %157 }
 0x1f5   :  { %v97_v36 = vmul.f32 %v158_v35, %v96_v34 }
 0x1f7   :  { %v100_v37 = vsel %vm99_vm6, %v97_v36, 0.0 }
 0x1f8   :  { %v101_v38 = vadd.f32 %v100_v37, %v79_v26 }
 0x1fa   :  { %102 = vst [vmem:[#allocation2] sm:$0xff] %v101_v38 }
 0x201   :  { %v107_v39 = vld [vmem:[#allocation2] sm:$0xf] }
 0x202   :  { %110 = vst [vmem:[#allocation3] sm:$0xf] %v107_v39 }
 0x209   :  { %v127_v40 = vld [vmem:[#allocation3] sm:$0xf] }
 0x20a   :  { %128 = vst [vmem:[%s177_s1] sm:$0xf] %v127_v40 }

// kernel: custom-call.77
= control target key start
LH: loop header
LB: loop body
LE: loop exit
PB: predicated region body
PF: predicated region fallthrough
CT: control target
= control target key end

     0   :  { %v40_v1 = vlaneseq  ;;  %v145_v11 = vmov -1.0   ;;  %s162_s0 = inlined_call_operand.vmem [shape: f32[1,3,3], index: 0, kind: input, shape index: {}]   ;;  %s163_s1 = inlined_call_operand.vmem [shape: f32[1,3,3], index: 1, kind: output, shape index: {}]  }
   0x1   :  { %v18_v0 = vld [vmem:[%s162_s0] sm:$0xf] }
   0x2   :  { %19 = vst [vmem:[#allocation1] sm:$0xf] %v18_v0  ;;  %v41_v3 = vand.u32 127, %v40_v1  ;;  %v44_v4 = vshrl.u32 %v40_v1, 7 }
   0x4   :  { %vm42_vm0 = vcmp.lt.s32.totalorder %v41_v3, 3  ;;  %vm51_vm1 = vcmp.ge.s32.totalorder %v44_v4, %v41_v3  ;;  %vm46_vm2 = vcmp.eq.s32.totalorder %v44_v4, %v41_v3  ;;  %vm65_vm4 = vcmp.eq.s32.totalorder %v41_v3, 0 }
   0x5   :  { %vm52_vm3 = vmand %vm51_vm1, %vm42_vm0  ;;  %vm62_vm5 = vcmp.eq.s32.totalorder %v41_v3, %v44_v4  ;;  %v66_v12 = vsel %vm65_vm4, 1.0, %v145_v11  ;;  %vm73_vm6 = vcmp.eq.s32.totalorder %v41_v3, 1  ;;  %vm83_vm7 = vcmp.eq.s32.totalorder %v41_v3, 2 }
   0x6   :  { %v67_v13 = vsel %vm62_vm5, %v66_v12, 0.0 }
   0x9   :  { %v38_v2 = vld [vmem:[#allocation1] sm:$0xf] }
   0xa   :  { %39 = vst [vmem:[#allocation0] sm:$0xf] %v38_v2 }
  0x11   :  { %v47_v5 = vld [vmem:[#allocation0] sm:$0xff] }
  0x12   :  { %v48_v6 = vsel %vm46_vm2, %v47_v5, 0.0  ;;  %v53_v7 = vsel %vm52_vm3, %v47_v5, 0.0 }
  0x13   :  { %49 = vadd.xlane.f32.xlu0 %v48_v6 }
  0x9c   :  { %v50_v8 = vpop.xlane.xlu0 %49 }
  0x9d   :  { %143 = vrcp.f32 %v50_v8  ;;  %vm90_vm8 = vweird.f32 %v50_v8 }
  0xaa   :  { %v144_v9 = vpop.eup %143 }
  0xab   :  { %v55_v10 = vmul.f32 %v144_v9, %v53_v7 }
  0xad   :  { %56 = vst [vmem:[#allocation4] sm:$0xff] %v55_v10 }
  0xb4   :  { %v69_v14 = vld [vmem:[#allocation4 + $0x1] ss:$0 sm:$0xff]  ;;  %v79_v17 = vld [vmem:[#allocation4 + $0x2] ss:$0 sm:$0xff] }
  0xb5   :  { %v70_v15 = vxor.u32 2147483648, %v69_v14  ;;  %v80_v19 = vxor.u32 2147483648, %v79_v17 }
  0xb7   :  { %v74_v16 = vmul.f32 %v70_v15, %v67_v13 }
  0xb9   :  { %75 = vadd.xlane.f32.xlu0 %v74_v16 }
 0x142   :  { %v76_v18 = vpop.xlane.xlu0 %75 }
 0x143   :  { %v77_v20 = vsel %vm73_vm6, %v76_v18, %v67_v13 }
 0x144   :  { %v84_v21 = vmul.f32 %v80_v19, %v77_v20 }
 0x146   :  { %85 = vadd.xlane.f32.xlu1 %v84_v21 }
 0x1cf   :  { %v86_v22 = vpop.xlane.xlu1 %85 }
 0x1d0   :  { %v87_v23 = vsel %vm83_vm7, %v86_v22, %v77_v20 }
 0x1d1   :  { %v89_v24 = vmul.f32 %v144_v9, %v87_v23 }
 0x1d3   :  { %v91_v25 = vsel %vm90_vm8, %v87_v23, %v89_v24 }
 0x1d4   :  { %92 = vst [vmem:[#allocation2] sm:$0xff] %v91_v25 }
 0x1db   :  { %v97_v26 = vld [vmem:[#allocation2] sm:$0xf] }
 0x1dc   :  { %100 = vst [vmem:[#allocation3] sm:$0xf] %v97_v26 }
 0x1e3   :  { %v117_v27 = vld [vmem:[#allocation3] sm:$0xf] }
 0x1e4   :  { %118 = vst [vmem:[%s163_s1] sm:$0xf] %v117_v27 }

// kernel: reverse.9
= control target key start
LH: loop header
LB: loop body
LE: loop exit
PB: predicated region body
PF: predicated region fallthrough
CT: control target
= control target key end

     0   :  { %v2_v0 = vlaneseq  ;;  %s130_s0 = inlined_call_operand.vmem [shape: f32[3], index: 0, kind: input, shape index: {}]   ;;  %s131_s1 = inlined_call_operand.vmem [shape: f32[3], index: 1, kind: output, shape index: {}]  }
   0x2   :  { %v3_v1 = vsub.s32 2, %v2_v0 }
   0x4   :  { %4 = vset.pattern.permute.xlu0 %v3_v1 }
   0x5   :  { %v46_v2 = vld [vmem:[#allocation1] sm:$0x1]  ;;  %v22_v3 = vld [vmem:[%s130_s0] sm:$0x1]  ;;  %v61_v10 = vshrl.u32 %v2_v0, 7 }
   0x6   :  { %47 = vst [vmem:[#allocation0] sm:$0x1] %v46_v2  ;;  %23 = vst [vmem:[#allocation1 + $0x1] sm:$0x1] %v22_v3 }
   0x7   :  { %vm62_vm0 = vcmp.lt.s32.totalorder %v61_v10, 1 }
   0xd   :  { %v49_v4 = vld [vmem:[#allocation0 + $0x7] ss:$-1 sm:$0xff]  ;;  %v43_v5 = vld [vmem:[#allocation1 + $0x1] sm:$0x1] }
   0xe   :  { %v50_v6 = vrot.slane %v49_v4, 7  ;;  %45 = vst [vmem:[#allocation0 + $0x8] sm:$0x1] %v43_v5 }
  0x10   :  { %51 = vperm.xlu0 %4, %v50_v6  }
  0x15   :  { %v56_v7 = vld [vmem:[#allocation0 + $0xf] ss:$-1 sm:$0xff] }
  0x16   :  { %v57_v8 = vrot.slane %v56_v7, 7 }
  0x18   :  { %58 = vperm.xlu0 %4, %v57_v8  }
  0x8b   :  { %v52_v9 = vpop.permute.xlu0 %51 }
  0x8c   :  { %53 = vst [vmem:[#allocation2] sm:$0xff] %v52_v9 }
  0x93   :  { %v59_v11 = vpop.permute.xlu0 %58 }
  0x94   :  { %63 = vst.msk [vmem:[#allocation2] sm:$0xff] %vm62_vm0, %v59_v11 }
  0x9b   :  { %v68_v12 = vld [vmem:[#allocation2] sm:$0x1] }
  0x9c   :  { %71 = vst [vmem:[#allocation3] sm:$0x1] %v68_v12 }
  0xa3   :  { %v88_v13 = vld [vmem:[#allocation3] sm:$0x1] }
  0xa4   :  { %89 = vst [vmem:[%s131_s1] sm:$0x1] %v88_v13 }

// kernel: custom-call.73
= control target key start
LH: loop header
LB: loop body
LE: loop exit
PB: predicated region body
PF: predicated region fallthrough
CT: control target
= control target key end

     0   :  { %v300_v3 = vlaneseq  ;;  %v1769_v5 = vmov 0.0   ;;  %s289_s17 = smov [#allocation22]  ;;  %s292_s18 = smov [#allocation23]  ;;  %s2051_s0 = inlined_call_operand.vmem [shape: f32[2,2], index: 0, kind: input, shape index: {}]   ;;  %s2052_s1 = inlined_call_operand.vmem [shape: f32[2,2], index: 1, kind: input, shape index: {}]   ;;  %s2053_s2 = inlined_call_operand.vmem [shape: f32[2,2], index: 2, kind: input, shape index: {}]   ;;  %s2054_s3 = inlined_call_operand.vmem [shape: f32[2,2], index: 3, kind: input, shape index: {}]   ;;  %s2055_s4 = inlined_call_operand.vmem [shape: f32[2], index: 4, kind: output, shape index: {0}]   ;;  %s2056_s5 = inlined_call_operand.vmem [shape: f32[2], index: 5, kind: output, shape index: {1}]   ;;  %s2057_s6 = inlined_call_operand.vmem [shape: f32[2,2], index: 6, kind: output, shape index: {2}]   ;;  %s2058_s7 = inlined_call_operand.vmem [shape: f32[2,2], index: 7, kind: output, shape index: {3}]   ;;  %s2059_s8 = inlined_call_operand.vmem [shape: f32[2,2], index: 8, kind: output, shape index: {4}]   ;;  %s2060_s9 = inlined_call_operand.vmem [shape: f32[2,2], index: 9, kind: output, shape index: {5}]  }
   0x1   :  { %v72_v0 = vld [vmem:[%s2051_s0] sm:$0x3]  ;;  %295 = vst [vmem:[#allocation12] sm:$0xff] %v1769_v5  ;;  %296 = vst [vmem:[#allocation14] sm:$0xff] %v1769_v5  ;;  %s299_s0 = smov [#allocation12]  ;;  %s1467_s19 = smov [#allocation20] }
   0x2   :  { %v135_v1 = vld [vmem:[%s2052_s1] sm:$0x3]  ;;  %73 = vst [vmem:[#allocation1] sm:$0x3] %v72_v0  ;;  %297 = vst [vmem:[#allocation16] sm:$0xff] %v1769_v5  ;;  %v1834_v6 = vand.u32 127, %v300_v3 }
   0x3   :  { %v198_v2 = vld [vmem:[%s2053_s2] sm:$0x3]  ;;  %136 = vst [vmem:[#allocation3] sm:$0x3] %v135_v1  ;;  %298 = vst [vmem:[#allocation18] sm:$0xff] %v1769_v5  ;;  %v1836_v7 = vshrl.u32 %v300_v3, 7 }
   0x4   :  { %199 = vst [vmem:[#allocation5] sm:$0x3] %v198_v2  ;;  %v261_v4 = vld [vmem:[%s2054_s3] sm:$0x3]  ;;  %v302_v6 = vmov %v1834_v6  ;;  %s312_s1 = smov [#allocation18]  ;;  %s283_s2 = smov [#allocation20] }
   0x5   :  { %262 = vst [vmem:[#allocation7] sm:$0x3] %v261_v4  ;;  %v305_v7 = vmov %v1836_v7  ;;  %v315_v6 = vmov %v1834_v6  ;;  %s286_s3 = smov [#allocation21]  ;;  %vm1471_vm2 = vcmp.lt.s32.totalorder %v1834_v6, 2  ;;  %s1484_s20 = smov [#allocation21] }
   0x6   :  { %v318_v7 = vmov %v1836_v7  ;;  %vm309_vm0 = vcmp.eq.s32.totalorder %v305_v7, %v302_v6  ;;  %s1501_s21 = smov [#allocation22]  ;;  %s1518_s22 = smov [#allocation23] }
   0x7   :  { %vm322_vm1 = vcmp.eq.s32.totalorder %v318_v7, %v315_v6  ;;  %v1463_v6 = vmov %v1834_v6  ;;  %v1466_v7 = vmov %v1836_v7 }
   0x8   :  { %v306_v12 = vld [vmem:[%s299_s0] sm:$0x3]  ;;  %vm1476_vm3 = vcmp.eq.s32.totalorder %v1466_v7, %v1463_v6  ;;  %v1514_v6 = vmov %v1834_v6  ;;  %v1483_v7 = vmov %v1836_v7 }
   0x9   :  { %v266_v8 = vld [vmem:[#allocation1] sm:$0x3]  ;;  %v310_v14 = vsel %vm309_vm0, 1.0, %v306_v12  ;;  %v1480_v6 = vmov %v1834_v6  ;;  %v1517_v7 = vmov %v1836_v7 }
   0xa   :  { %v271_v9 = vld [vmem:[#allocation3] sm:$0x3]  ;;  %267 = vst [vmem:[#allocation0] sm:$0x3] %v266_v8  ;;  %v319_v13 = vld [vmem:[%s312_s1] sm:$0x3]  ;;  %v1497_v6 = vmov %v1834_v6  ;;  %v1500_v7 = vmov %v1836_v7  ;;  %vm1527_vm4 = vcmp.eq.s32.totalorder %v1517_v7, %v1514_v6 }
   0xb   :  { %v276_v10 = vld [vmem:[#allocation5] sm:$0x3]  ;;  %272 = vst [vmem:[#allocation2] sm:$0x3] %v271_v9  ;;  %v323_v15 = vsel %vm322_vm1, 1.0, %v319_v13  ;;  %311 = vst [vmem:[%s299_s0] sm:$0x3] %v310_v14 }
   0xc   :  { %277 = vst [vmem:[#allocation4] sm:$0x3] %v276_v10  ;;  %v281_v11 = vld [vmem:[#allocation7] sm:$0x3]  ;;  %324 = vst [vmem:[%s312_s1] sm:$0x3] %v323_v15 }
   0xd   :  { %282 = vst [vmem:[#allocation6] sm:$0x3] %v281_v11 }
  0x11   :  { %v284_v16 = vld [vmem:[#allocation0] sm:$0xff] }
  0x12   :  { %v287_v17 = vld [vmem:[#allocation2] sm:$0xff]  ;;  %285 = vst [vmem:[%s283_s2] sm:$0xff] %v284_v16 }
  0x13   :  { %v290_v18 = vld [vmem:[#allocation4] sm:$0xff]  ;;  %288 = vst [vmem:[%s286_s3] sm:$0xff] %v287_v17 }
  0x14   :  { %291 = vst [vmem:[%s289_s17] sm:$0xff] %v290_v18  ;;  %v293_v19 = vld [vmem:[#allocation6] sm:$0xff] }
  0x15   :  { %294 = vst [vmem:[%s292_s18] sm:$0xff] %v293_v19 }
  0x19   :  { %v1473_v20 = vld [vmem:[%s1467_s19] sm:$0x3] }
  0x1a   :  { %v1490_v21 = vld [vmem:[%s1484_s20] sm:$0x3]  ;;  %v1474_v22 = vsel %vm1471_vm2, %v1473_v20, 0.0 }
  0x1b   :  { %v1491_v23 = vsel %vm1471_vm2, %v1490_v21, 0.0  ;;  %v1507_v24 = vld [vmem:[%s1501_s21] sm:$0x3]  ;;  %v1475_v26 = vmul.f32 %v1474_v22, %v1474_v22 }
  0x1c   :  { %v1524_v25 = vld [vmem:[%s1518_s22] sm:$0x3]  ;;  %v1492_v27 = vmul.f32 %v1491_v23, %v1491_v23  ;;  %v1508_v28 = vsel %vm1471_vm2, %v1507_v24, 0.0 }
  0x1d   :  { %v1525_v29 = vsel %vm1471_vm2, %v1524_v25, 0.0  ;;  %v1509_v30 = vmul.f32 %v1508_v28, %v1508_v28  ;;  %v1477_v33 = vsel %vm1476_vm3, 0.0, %v1475_v26 }
  0x1e   :  { %v1494_v31 = vadd.f32 %v1492_v27, %v1475_v26  ;;  %v1526_v32 = vmul.f32 %v1525_v29, %v1525_v29  ;;  %v1493_v34 = vadd.f32 %v1492_v27, %v1477_v33 }
  0x20   :  { %v1511_v35 = vadd.f32 %v1509_v30, %v1494_v31  ;;  %v1510_v36 = vadd.f32 %v1509_v30, %v1493_v34  ;;  %v1528_v37 = vsel %vm1527_vm4, 0.0, %v1526_v32 }
  0x22   :  { %v1530_v38 = vadd.f32 %v1526_v32, %v1511_v35  ;;  %v1529_v39 = vadd.f32 %v1528_v37, %v1510_v36 }
  0x24   :  { %1531 = vadd.xlane.f32.xlu0 %v1530_v38 }
  0x28   :  { %1539 = vadd.xlane.f32.xlu0 %v1529_v39 }
  0xad   :  { %v1532_v40 = vpop.xlane.xlu0 %1531 }
  0xae   :  { %v1533_v41 = vrot.slane %v1532_v40, 4 }
  0xb0   :  { %v1534_v42 = vadd.f32 %v1533_v41, %v1532_v40 }
  0xb1   :  { %v1540_v43 = vpop.xlane.xlu0 %1539 }
  0xb2   :  { %v1535_v44 = vrot.slane %v1534_v42, 2  ;;  %v1541_v45 = vrot.slane %v1540_v43, 4 }
  0xb4   :  { %v1542_v46 = vadd.f32 %v1541_v45, %v1540_v43  ;;  %v1536_v47 = vadd.f32 %v1535_v44, %v1534_v42 }
  0xb6   :  { %v1543_v48 = vrot.slane %v1542_v46, 2  ;;  %v1537_v50 = vrot.slane %v1536_v47, 1 }
  0xb8   :  { %v1544_v49 = vadd.f32 %v1543_v48, %v1542_v46  ;;  %v1538_v53 = vadd.f32 %v1537_v50, %v1536_v47 }
  0xba   :  { %v1545_v51 = vrot.slane %v1544_v49, 1 }
  0xbc   :  { %v1546_v52 = vadd.f32 %v1545_v51, %v1544_v49 }
  0xbe   :  { %1718 = vpush %v1546_v52 }
  0xbf   :  { %1720 = vpush %v1538_v53 }
  0xef   :  { %s1719_s23 = spop %1718 }
  0xf0   :  { %s1721_s24 = spop %1720 }
  0xf1   :  { %s1549_s25 = smul.f32 1e-10, %s1721_s24 }
  0xf3   :  { %p1550_p0 = scmp.le.f32.partialorder %s1719_s23, %s1549_s25 }
  0xf4   :  { %s1860_s26 = smov (!%p1550_p0), 0  }
  0xf5   :  { %1553 = sbr.rel (%p1550_p0) target bundleno = 927 (0x39f), region = 440 }
  0xfa LB: > { %s1865_s27 = smov 0   ;;  %s1763_s26 = sphi %s1860_s26, %s2061_s26  }
  0xfb LB: >> { %s429_s28 = smov [#allocation20]  ;;  %v433_v6 = vmov %v1834_v6  ;;  %v436_v7 = vmov %v1836_v7  ;;  %s449_s29 = smov [#allocation21]  ;;  %vm752_vm14 = vcmp.eq.s32.totalorder %v1836_v7, 0  ;;  %vm764_vm15 = vcmp.eq.s32.totalorder %v1836_v7, 1  ;;  %s1767_s27 = sphi %s1865_s27, %s428_s27  }
  0xfc   : >> { %v453_v6 = vmov %v1834_v6  ;;  %v456_v7 = vmov %v1836_v7  ;;  %v437_v54 = vld [vmem:[%s429_s28] sm:$0x3]  ;;  %vm440_vm5 = vcmp.eq.s32.totalorder %v436_v7, %v433_v6  ;;  %s469_s30 = smov [#allocation23]  ;;  %s430_s10 = smov [#allocation24] }
  0xfd   : >> { %vm460_vm6 = vcmp.eq.s32.totalorder %v456_v7, %v453_v6  ;;  %v473_v6 = vmov %v1834_v6  ;;  %v476_v7 = vmov %v1836_v7  ;;  %v441_v55 = vsel %vm440_vm5, %v437_v54, 0.0  ;;  %v457_v56 = vld [vmem:[%s449_s29] sm:$0x3]  ;;  %s450_s11 = smov [#allocation25]  ;;  %s470_s12 = smov [#allocation26] }
  0xfe   : >> { %vm480_vm7 = vcmp.eq.s32.totalorder %v476_v7, %v473_v6  ;;  %v442_v57 = vrot.slane %v441_v55, 4  ;;  %v461_v58 = vsel %vm460_vm6, %v457_v56, 0.0  ;;  %v477_v59 = vld [vmem:[%s469_s30] sm:$0x3]  ;;  %s493_s13 = smov [#allocation25]  ;;  %s491_s14 = smov [#allocation24]  ;;  %v542_v6 = vmov %v1834_v6 }
  0xff   : >> { %v462_v60 = vrot.slane %v461_v58, 4  ;;  %v481_v61 = vsel %vm480_vm7, %v477_v59, 0.0  ;;  %s495_s15 = smov [#allocation26]  ;;  %s530_s16 = smov [#allocation27]  ;;  %v545_v7 = vmov %v1836_v7  ;;  %v557_v6 = vmov %v1834_v6 }
 0x100   : >> { %v443_v62 = vadd.f32 %v442_v57, %v441_v55  ;;  %v482_v63 = vrot.slane %v481_v61, 4  ;;  %s532_s0 = smov [#allocation28]  ;;  %s489_s1 = smov [#allocation29]  ;;  %v560_v7 = vmov %v1836_v7  ;;  %vm547_vm12 = vcmp.eq.s32.totalorder %v545_v7, %v542_v6 }
 0x101   : >> { %v463_v0 = vadd.f32 %v462_v60, %v461_v58  ;;  %s490_s2 = smov [#allocation30]  ;;  %s534_s1 = smov %s489_s1  ;;  %vm562_vm13 = vcmp.eq.s32.totalorder %v560_v7, %v557_v6  ;;  %v655_v6 = vmov %v1834_v6  ;;  %v658_v7 = vmov %v1836_v7 }
 0x102   : >> { %v444_v1 = vrot.slane %v443_v62, 2  ;;  %v483_v2 = vadd.f32 %v482_v63, %v481_v61  ;;  %s536_s2 = smov %s490_s2  ;;  %s538_s3 = smov [#allocation29]  ;;  %v669_v6 = vmov %v1834_v6  ;;  %v672_v7 = vmov %v1836_v7 }
 0x103   : >> { %v464_v3 = vrot.slane %v463_v0, 2  ;;  %s553_s17 = smov [#allocation30]  ;;  %s551_s18 = smov [#allocation31]  ;;  %vm662_vm0 = vcmp.eq.s32.totalorder %v658_v7, %v655_v6  ;;  %v628_v6 = vmov %v1834_v6  ;;  %v631_v7 = vmov %v1836_v7 }
 0x104   : >> { %v445_v4 = vadd.f32 %v444_v1, %v443_v62  ;;  %v484_v5 = vrot.slane %v483_v2, 2  ;;  %s568_s19 = smov [#allocation31]  ;;  %s1880_s20 = smov [#allocation20]  ;;  %v642_v6 = vmov %v1834_v6  ;;  %v645_v7 = vmov %v1836_v7 }
 0x105   : >> { %v465_v8 = vadd.f32 %v464_v3, %v463_v0  ;;  %s566_s21 = smov [#allocation32]  ;;  %s1882_s22 = smov [#allocation21]  ;;  %v576_v53 = vld [vmem:[%s1880_s20] sm:$0x3]  ;;  %vm677_vm1 = vcmp.eq.s32.totalorder %v672_v7, %v669_v6  ;;  %vm636_vm3 = vcmp.eq.s32.totalorder %v631_v7, %v628_v6  ;;  %vm649_vm4 = vcmp.eq.s32.totalorder %v645_v7, %v642_v6 }
 0x106   : >> { %v446_v9 = vrot.slane %v445_v4, 1  ;;  %v485_v10 = vadd.f32 %v484_v5, %v483_v2  ;;  %s1884_s23 = smov [#allocation22]  ;;  %s1886_s24 = smov [#allocation23]  ;;  %v577_v54 = vld [vmem:[%s1882_s22] sm:$0x3]  ;;  %vm691_vm5 = vcmp.eq.s32.totalorder %v1834_v6, 0 }
 0x107   : >> { %v466_v11 = vrot.slane %v465_v8, 1  ;;  %s1888_s25 = smov [#allocation12]  ;;  %s1890_s28 = smov [#allocation14]  ;;  %v578_v55 = vld [vmem:[%s1884_s23] sm:$0x3]  ;;  %vm695_vm6 = vcmp.eq.s32.totalorder %v1834_v6, 1 }
 0x108   : >> { %v447_v12 = vadd.f32 %v446_v9, %v445_v4  ;;  %v486_v13 = vrot.slane %v485_v10, 1  ;;  %s1892_s29 = smov [#allocation16]  ;;  %s792_s30 = smov [#allocation31]  ;;  %v579_v56 = vld [vmem:[%s1886_s24] sm:$0x3] }
 0x109   : >> { %v467_v14 = vadd.f32 %v466_v11, %v465_v8  ;;  %v800_v57 = vld [vmem:[%s1888_s25] sm:$0x3]  ;;  %s428_s27 = sadd.s32 1, %s1767_s27  }
 0x10a   : >> { %448 = vst [vmem:[%s430_s10] sm:$0x1] %v447_v12  ;;  %v487_v15 = vadd.f32 %v486_v13, %v485_v10  ;;  %s1896_s10 = smov [#allocation18]  ;;  %v801_v58 = vld [vmem:[%s1890_s28] sm:$0x3]  ;;  %p425_p1 = scmp.ge.s32.totalorder %s428_s27, 3  }
 0x10b   : >> { %468 = vst [vmem:[%s450_s11] sm:$0x1] %v467_v14  ;;  %v802_v59 = vld [vmem:[%s1892_s29] sm:$0x3]  ;;  %s570_s11 = smov [#allocation32]  ;;  %v329_v6 = vmov (%p425_p1), %v1834_v6  ;;  %v332_v7 = vmov (%p425_p1), %v1836_v7 }
 0x10c   : >> { %488 = vst [vmem:[%s470_s12] sm:$0x1] %v487_v15  ;;  %v803_v61 = vld [vmem:[%s1896_s10] sm:$0x3]  ;;  %s794_s12 = smov [#allocation32]  ;;  %v382_v6 = vmov (%p425_p1), %v1834_v6  ;;  %vm344_vm7 = vcmp.eq.s32.totalorder (%p425_p1), %v332_v7, %v329_v6  ;;  %v385_v7 = vmov (%p425_p1), %v1836_v7 }
 0x10d   : > { %v348_v6 = vmov (%p425_p1), %v1834_v6  ;;  %v351_v7 = vmov (%p425_p1), %v1836_v7 }
 0x10e   : > { %v365_v6 = vmov (%p425_p1), %v1834_v6  ;;  %v368_v7 = vmov (%p425_p1), %v1836_v7 }
 0x111   : >> { %v492_v18 = vld [vmem:[%s491_s14] sm:$0xff]  ;;  %s598_s14 = smov [#allocation30] }
 0x112   : >> { %v494_v16 = vld [vmem:[%s493_s13] sm:$0xff]  ;;  %v515_v33 = vand.u32 2147483647, %v492_v18  ;;  %s596_s13 = smov [#allocation29] }
 0x113   : >> { %v498_v17 = vmul.f32 2.0, %v494_v16  ;;  %v496_v19 = vld [vmem:[%s495_s15] sm:$0xff]  ;;  %v516_v36 = vand.u32 2147483647, %v494_v16  ;;  %s1912_s15 = smov [#allocation12] }
 0x114   : >> { %v497_v20 = vsub.f32 %v496_v19, %v492_v18  ;;  %v517_v34 = vand.u32 2147483647, %v496_v19 }
 0x115   : >> { %1745 = vrcp.f32 %v498_v17 }
 0x116   : >> { %v518_v35 = vmin.f32 %v515_v33, %v517_v34 }
 0x118   : >> { %v519_v37 = vmul.f32 1.1920929e-08, %v518_v35 }
 0x11a   : >> { %vm520_vm11 = vcmp.le.f32.partialorder %v516_v36, %v519_v37 }
 0x122   : >> { %v1746_v21 = vpop.eup %1745 }
 0x123   : >> { %v500_v22 = vmul.f32 %v1746_v21, %v497_v20 }
 0x125   : >> { %v502_v23 = vmul.f32 %v500_v22, %v500_v22  ;;  %vm501_vm10 = vcmp.ge.f32.partialorder %v500_v22, 0.0 }
 0x127   : >> { %v503_v24 = vadd.f32 1.0, %v502_v23 }
 0x129   : >> { %1747 = vrsqrt.f32 %v503_v24  ;;  %vm506_vm8 = vcmp.eq.f32.partialorder %v503_v24, inf  ;;  %v509_v26 = vand.u32 2147483648, %v503_v24  ;;  %vm508_vm9 = vcmp.eq.f32.partialorder %v503_v24, 0.0 }
 0x136   : >> { %v1748_v25 = vpop.eup %1747 }
 0x137   : >> { %v505_v27 = vmul.f32 %v1748_v25, %v503_v24 }
 0x139   : >> { %v507_v28 = vsel %vm506_vm8, %v503_v24, %v505_v27  ;;  %vm397_vm8 = vcmp.eq.s32.totalorder (%p425_p1), %v385_v7, %v382_v6 }
 0x13a   : >> { %v510_v29 = vsel %vm508_vm9, %v509_v26, %v507_v28 }
 0x13b   : >> { %v511_v30 = vxor.u32 2147483648, %v510_v29 }
 0x13d   : >> { %v512_v31 = vsel %vm501_vm10, %v510_v29, %v511_v30 }
 0x13e   : >> { %v513_v32 = vadd.f32 %v512_v31, %v500_v22 }
 0x140   : >> { %1749 = vrcp.f32 %v513_v32 }
 0x14d   : >> { %v1750_v38 = vpop.eup %1749 }
 0x14e   : >> { %v521_v39 = vsel %vm520_vm11, 0.0, %v1750_v38 }
 0x14f   : >> { %v522_v40 = vmul.f32 %v521_v39, %v521_v39  ;;  %v526_v41 = vmul.f32 %v521_v39, %v494_v16 }
 0x151   : >> { %v523_v42 = vadd.f32 1.0, %v522_v40  ;;  %v527_v43 = vsub.f32 %v492_v18, %v526_v41  ;;  %v529_v44 = vadd.f32 %v526_v41, %v496_v19 }
 0x153   : >> { %1751 = vrsqrt.f32 %v523_v42  ;;  %531 = vst [vmem:[%s530_s16] sm:$0xff] %v527_v43  ;;  %533 = vst [vmem:[%s532_s0] sm:$0xff] %v529_v44  ;;  %s1914_s16 = smov [#allocation22]  ;;  %s1916_s0 = smov [#allocation23] }
 0x160   : >> { %v1752_v45 = vpop.eup %1751 }
 0x161   : >> { %535 = vst [vmem:[%s534_s1] sm:$0xff] %v1752_v45  ;;  %v525_v46 = vmul.f32 %v1752_v45, %v521_v39  ;;  %s1918_s1 = smov [#allocation20] }
 0x163   : >> { %537 = vst [vmem:[%s536_s2] sm:$0xff] %v525_v46  ;;  %s1920_s2 = smov [#allocation16] }
 0x168   : >> { %v539_v47 = vld [vmem:[%s538_s3] ss:$0 sm:$0xff]  ;;  %s1922_s3 = smov [#allocation14] }
 0x169   : >> { %v548_v48 = vsel %vm547_vm12, %v539_v47, 0.0  ;;  %v597_v27 = vld [vmem:[%s596_s13] ss:$0 sm:$0xff]  ;;  %s768_s13 = smov [#allocation21] }
 0x16a   : >> { %549 = vadd.xlane.f32.xlu0 %v548_v48  ;;  %v554_v49 = vld [vmem:[%s553_s17] ss:$0 sm:$0xff]  ;;  %s1926_s17 = smov [#allocation18] }
 0x16b   : >> { %v563_v50 = vsel %vm562_vm13, %v554_v49, 0.0  ;;  %v599_v28 = vld [vmem:[%s598_s14] ss:$0 sm:$0xff]  ;;  %s745_s14 = smov [#allocation22] }
 0x16e   : >> { %564 = vadd.xlane.f32.xlu0 %v563_v50 }
 0x1f3   : >> { %v550_v51 = vpop.xlane.xlu0 %549 }
 0x1f4   : >> { %552 = vst [vmem:[%s551_s18] sm:$0xff] %v550_v51  ;;  %s1928_s18 = smov [#allocation21] }
 0x1f7   : >> { %v565_v52 = vpop.xlane.xlu0 %564 }
 0x1f8   : >> { %567 = vst [vmem:[%s566_s21] sm:$0xff] %v565_v52  ;;  %s665_s21 = smov [#allocation23] }
 0x1fb   : >> { %v569_v60 = vld [vmem:[%s568_s19] sm:$0xff]  ;;  %s666_s19 = smov [#allocation28] }
 0x1fc   : >> { %v793_v62 = vld [vmem:[%s792_s30] sm:$0xff]  ;;  %v580_v63 = vmul.f32 %v576_v53, %v569_v60  ;;  %v583_v0 = vmul.f32 %v577_v54, %v569_v60  ;;  %v587_v1 = vmul.f32 %v578_v55, %v569_v60  ;;  %v590_v2 = vmul.f32 %v579_v56, %v569_v60  ;;  %s681_s30 = smov [#allocation21] }
 0x1fd   : >> { %v804_v3 = vmul.f32 %v800_v57, %v793_v62  ;;  %v807_v4 = vmul.f32 %v801_v58, %v793_v62  ;;  %v811_v5 = vmul.f32 %v802_v59, %v793_v62  ;;  %v814_v8 = vmul.f32 %v803_v61, %v793_v62 }
 0x1ff   : >> { %v571_v9 = vld [vmem:[%s570_s11] sm:$0xff]  ;;  %s1973_s11 = smov [#allocation23] }
 0x200   : >> { %v795_v10 = vld [vmem:[%s794_s12] sm:$0xff]  ;;  %v581_v11 = vmul.f32 %v578_v55, %v571_v9  ;;  %v584_v12 = vmul.f32 %v579_v56, %v571_v9  ;;  %v586_v13 = vmul.f32 %v576_v53, %v571_v9  ;;  %v589_v14 = vmul.f32 %v577_v54, %v571_v9  ;;  %s744_s12 = smov [#allocation20] }
 0x201   : >> { %v805_v15 = vmul.f32 %v802_v59, %v795_v10  ;;  %v808_v16 = vmul.f32 %v803_v61, %v795_v10  ;;  %v810_v17 = vmul.f32 %v800_v57, %v795_v10  ;;  %v813_v18 = vmul.f32 %v801_v58, %v795_v10  ;;  %v673_v59 = vld [vmem:[%s666_s19] ss:$0 sm:$0xff] }
 0x202   : >> { %v582_v19 = vsub.f32 %v580_v63, %v581_v11  ;;  %v585_v20 = vsub.f32 %v583_v0, %v584_v12  ;;  %v588_v21 = vadd.f32 %v587_v1, %v586_v13  ;;  %v591_v22 = vadd.f32 %v590_v2, %v589_v14 }
 0x203   : >> { %v806_v23 = vsub.f32 %v804_v3, %v805_v15  ;;  %v809_v24 = vsub.f32 %v807_v4, %v808_v16  ;;  %v812_v25 = vadd.f32 %v811_v5, %v810_v17  ;;  %v815_v26 = vadd.f32 %v814_v8, %v813_v18 }
 0x204   : >> { %593 = vst [vmem:[%s1882_s22] sm:$0x3] %v585_v20  ;;  %595 = vst [vmem:[%s1886_s24] sm:$0x3] %v591_v22  ;;  %s625_s22 = smov [#allocation27]  ;;  %s639_s24 = smov [#allocation21] }
 0x205   : >> { %592 = vst [vmem:[%s1880_s20] sm:$0x3] %v582_v19  ;;  %594 = vst [vmem:[%s1884_s23] sm:$0x3] %v588_v21  ;;  %s652_s20 = smov [#allocation22]  ;;  %s624_s23 = smov [#allocation20]  ;;  %v632_v63 = vld [vmem:[%s625_s22] ss:$0 sm:$0xff] }
 0x206   : >> { %816 = vst [vmem:[%s1888_s25] sm:$0x3] %v806_v23  ;;  %817 = vst [vmem:[%s1890_s28] sm:$0x3] %v809_v24  ;;  %s1970_s25 = smov [#allocation22]  ;;  %s1770_s28 = smov 1  }
 0x207   : >> { %818 = vst [vmem:[%s1892_s29] sm:$0x3] %v812_v25  ;;  %819 = vst [vmem:[%s1896_s10] sm:$0x3] %v815_v26  ;;  %s680_s29 = smov [#allocation20]  ;;  %s1771_s10 = smov 127  }
 0x20b   : >> { %v607_v30 = vld [vmem:[%s1916_s0] sm:$0x3] }
 0x20c   : >> { %v606_v29 = vld [vmem:[%s1914_s16] sm:$0x3]  ;;  %v615_v36 = vmul.f32 %v607_v30, %v599_v28  ;;  %v618_v42 = vmul.f32 %v607_v30, %v597_v27 }
 0x20d   : >> { %v604_v31 = vld [vmem:[%s1918_s1] sm:$0x3]  ;;  %v614_v35 = vmul.f32 %v606_v29, %v597_v27  ;;  %v617_v37 = vmul.f32 %v606_v29, %v599_v28 }
 0x20e   : >> { %v822_v32 = vld [vmem:[%s1912_s15] ss:$0 sm:$0xff]  ;;  %v1693_v34 = vld [vmem:[%s1912_s15 + $0x1] ss:$0 sm:$0xff]  ;;  %v608_v48 = vmul.f32 %v604_v31, %v597_v27  ;;  %v611_v49 = vmul.f32 %v604_v31, %v599_v28 }
 0x20f   : >> { %v1692_v33 = vld [vmem:[%s1912_s15 - $0x1] sm:$0x2]  ;;  %v1695_v40 = vld [vmem:[%s1920_s2 + $0x1] sm:$0x1]  ;;  %v616_v47 = vsub.f32 %v614_v35, %v615_v36  ;;  %v619_v53 = vadd.f32 %v618_v42, %v617_v37 }
 0x210   : >> { %v829_v38 = vsel %vm752_vm14, %v822_v32, %v1692_v33  ;;  %v833_v39 = vld [vmem:[%s1920_s2] ss:$0 sm:$0xff]  ;;  %v841_v43 = vsel %vm764_vm15, %v1693_v34, %v1695_v40  ;;  %v1697_v45 = vld [vmem:[%s1922_s3 + $0x1] ss:$0 sm:$0xff] }
 0x211   : >> { %v846_v41 = vld [vmem:[%s1922_s3] ss:$0 sm:$0xff]  ;;  %832 = vst [vmem:[%s1912_s15] sm:$0x3] %v829_v38  ;;  %843 = vst [vmem:[%s1920_s2] sm:$0x3] %v841_v43  ;;  %v1699_v51 = vld [vmem:[%s1926_s17 + $0x1] sm:$0x1] }
 0x212   : >> { %v1696_v44 = vld [vmem:[%s1922_s3 - $0x1] sm:$0x2]  ;;  %1694 = vst [vmem:[%s1912_s15 + $0x1] sm:$0x1] %v833_v39  ;;  %v865_v54 = vsel %vm764_vm15, %v1697_v45, %v1699_v51  ;;  %622 = vst [vmem:[%s1914_s16] sm:$0x3] %v616_v47  ;;  %s769_s15 = smov [#allocation23] }
 0x213   : >> { %v857_v46 = vld [vmem:[%s1926_s17] ss:$0 sm:$0xff]  ;;  %v853_v50 = vsel %vm752_vm14, %v846_v41, %v1696_v44  ;;  %623 = vst [vmem:[%s1916_s0] sm:$0x3] %v619_v53  ;;  %s868_s16 = sadd.s32 (%p425_p1), 1, %s1763_s26   ;;  %s333_s0 = smov (%p425_p1), [#allocation20] }
 0x214   : >> { %v605_v52 = vld [vmem:[%s1928_s18] sm:$0x3]  ;;  %856 = vst [vmem:[%s1922_s3] sm:$0x3] %v853_v50  ;;  %867 = vst [vmem:[%s1926_s17] sm:$0x3] %v865_v54  ;;  %s369_s2 = smov (%p425_p1), [#allocation22]  ;;  %p421_p2 = scmp.ge.s32.totalorder (%p425_p1), %s868_s16, 15 }
 0x215   : >> { %v609_v55 = vmul.f32 %v605_v52, %v599_v28  ;;  %v612_v56 = vmul.f32 %v605_v52, %v597_v27  ;;  %1698 = vst [vmem:[%s1922_s3 + $0x1] sm:$0x1] %v857_v46  ;;  %s386_s3 = smov (%p425_p1), [#allocation23]  ;;  %s2061_s26 = smov (%p425_p1), %s868_s16 }
 0x217   : >> { %v610_v57 = vsub.f32 %v608_v48, %v609_v55  ;;  %v613_v58 = vadd.f32 %v612_v56, %v611_v49 }
 0x219   : >> { %620 = vst [vmem:[%s1918_s1] sm:$0x3] %v610_v57  ;;  %621 = vst [vmem:[%s1928_s18] sm:$0x3] %v613_v58  ;;  %v659_v60 = vld [vmem:[%s652_s20] sm:$0x3]  ;;  %s352_s1 = smov (%p425_p1), [#allocation21] }
 0x21a   : >> { %v663_v61 = vsel %vm662_vm0, 0.0, %v659_v60  ;;  %v674_v62 = vld [vmem:[%s665_s21] sm:$0x3] }
 0x21b   : >> { %664 = vst [vmem:[%s652_s20] sm:$0x3] %v663_v61  ;;  %v678_v0 = vsel %vm677_vm1, %v673_v59, %v674_v62 }
 0x21c   : >> { %679 = vst [vmem:[%s665_s21] sm:$0x3] %v678_v0 }
 0x220   : >> { %v633_v1 = vld [vmem:[%s624_s23] sm:$0x3] }
 0x221   : >> { %v646_v2 = vld [vmem:[%s639_s24] sm:$0x3]  ;;  %v637_v3 = vsel %vm636_vm3, %v632_v63, %v633_v1 }
 0x222   : >> { %v650_v4 = vsel %vm649_vm4, 0.0, %v646_v2  ;;  %638 = vst [vmem:[%s624_s23] sm:$0x3] %v637_v3  ;;  %v718_v5 = vld [vmem:[%s1970_s25] sm:$0x3] }
 0x223   : >> { %651 = vst [vmem:[%s639_s24] sm:$0x3] %v650_v4  ;;  %719 = vrot.lane.b32.xlu0 %v718_v5, %s1770_s28  ;;  %v714_v11 = vld [vmem:[%s1973_s11] sm:$0x3] }
 0x224   : >> { %v735_v12 = vld [vmem:[%s1973_s11] sm:$0x3] }
 0x225   : >> { %v717_v30 = vld [vmem:[%s1970_s25] sm:$0x3] }
 0x229   : >> { %v686_v8 = vld [vmem:[%s680_s29] sm:$0x3] }
 0x22a   : >> { %687 = vrot.lane.b32.xlu1 %v686_v8, %s1770_s28  ;;  %v682_v9 = vld [vmem:[%s681_s30] sm:$0x3] }
 0x22b   : >> { %v703_v10 = vld [vmem:[%s681_s30] sm:$0x3] }
 0x22c   : >> { %v685_v18 = vld [vmem:[%s680_s29] sm:$0x3] }
 0x22e   : >> { %683 = vrot.lane.b32.xlu1 %v682_v9, %s1770_s28 }
 0x232   : >> { %704 = vrot.lane.b32.xlu1 %v703_v10, %s1771_s10 }
 0x236   : >> { %715 = vrot.lane.b32.xlu1 %v714_v11, %s1770_s28 }
 0x23a   : >> { %736 = vrot.lane.b32.xlu1 %v735_v12, %s1771_s10 }
 0x295   : >> { %v720_v20 = vpop.permute.xlu0 %719 }
 0x296   : >> { %v724_v22 = vsel %vm691_vm5, %v718_v5, %v720_v20 }
 0x29c   : >> { %v688_v13 = vpop.permute.xlu1 %687 }
 0x29d   : >> { %v692_v14 = vsel %vm691_vm5, %v686_v8, %v688_v13 }
 0x2a0   : >> { %v684_v15 = vpop.permute.xlu1 %683 }
 0x2a1   : >> { %v696_v16 = vsel %vm695_vm6, %v684_v15, %v692_v14 }
 0x2a2   : >> { %v702_v17 = vsel %vm1471_vm2, %v696_v16, 0.0 }
 0x2a3   : >> { %710 = vst [vmem:[%s680_s29] sm:$0x3] %v702_v17 }
 0x2a4   : >> { %v705_v19 = vpop.permute.xlu1 %704 }
 0x2a5   : >> { %v709_v21 = vsel %vm695_vm6, %v685_v18, %v705_v19 }
 0x2a6   : >> { %711 = vst [vmem:[%s681_s30] sm:$0x3] %v709_v21 }
 0x2a8   : >> { %v716_v23 = vpop.permute.xlu1 %715 }
 0x2a9   : >> { %v728_v24 = vsel %vm695_vm6, %v716_v23, %v724_v22 }
 0x2aa   : >> { %v746_v25 = vld [vmem:[%s744_s12] ss:$0 sm:$0xff]  ;;  %v1685_v27 = vld [vmem:[%s744_s12 + $0x1] ss:$0 sm:$0xff]  ;;  %v734_v29 = vsel %vm1471_vm2, %v728_v24, 0.0 }
 0x2ab   : >> { %v1684_v26 = vld [vmem:[%s744_s12 - $0x1] sm:$0x2]  ;;  %742 = vst [vmem:[%s1970_s25] sm:$0x3] %v734_v29 }
 0x2ac   : >> { %v753_v28 = vsel %vm752_vm14, %v746_v25, %v1684_v26  ;;  %v737_v31 = vpop.permute.xlu1 %736 }
 0x2ad   : >> { %756 = vst [vmem:[%s744_s12] sm:$0x3] %v753_v28  ;;  %v770_v32 = vld [vmem:[%s768_s13] ss:$0 sm:$0xff]  ;;  %v1689_v34 = vld [vmem:[%s768_s13 + $0x1] ss:$0 sm:$0xff]  ;;  %v741_v35 = vsel %vm695_vm6, %v717_v30, %v737_v31 }
 0x2ae   : >> { %v1688_v33 = vld [vmem:[%s768_s13 - $0x1] sm:$0x2]  ;;  %743 = vst [vmem:[%s1973_s11] sm:$0x3] %v741_v35 }
 0x2af   : >> { %v777_v36 = vsel %vm752_vm14, %v770_v32, %v1688_v33 }
 0x2b0   : >> { %780 = vst [vmem:[%s768_s13] sm:$0x3] %v777_v36 }
 0x2b2   : >> { %v757_v37 = vld [vmem:[%s745_s14] ss:$0 sm:$0xff]  ;;  %v1687_v38 = vld [vmem:[%s745_s14 + $0x1] sm:$0x1] }
 0x2b3   : >> { %1686 = vst [vmem:[%s744_s12 + $0x1] sm:$0x1] %v757_v37  ;;  %v765_v39 = vsel %vm764_vm15, %v1685_v27, %v1687_v38 }
 0x2b4   : >> { %767 = vst [vmem:[%s745_s14] sm:$0x3] %v765_v39 }
 0x2b5   : >> { %v781_v40 = vld [vmem:[%s769_s15] ss:$0 sm:$0xff]  ;;  %v1691_v41 = vld [vmem:[%s769_s15 + $0x1] sm:$0x1] }
 0x2b6   : >> { %1690 = vst [vmem:[%s768_s13 + $0x1] sm:$0x1] %v781_v40  ;;  %v789_v42 = vsel %vm764_vm15, %v1689_v34, %v1691_v41 }
 0x2b7   : >> { %791 = vst [vmem:[%s769_s15] sm:$0x3] %v789_v42  ;;  %427 = sbr.rel (!%p425_p1) target bundleno = 251 (0xfb), region = 435 }
 0x2ba   : > { %v339_v43 = vld [vmem:[%s333_s0] sm:$0x3] (%p425_p1) }
 0x2bb   : > { %v340_v45 = vsel (%p425_p1), %vm1471_vm2, %v339_v43, 0.0  ;;  %v375_v47 = vld [vmem:[%s369_s2] sm:$0x3] (%p425_p1) }
 0x2bc   : > { %v341_v49 = vmul.f32 %v340_v45, %v340_v45  ;;  %v376_v51 = vsel %vm1471_vm2, %v375_v47, 0.0 }
 0x2bd   : > { %v358_v44 = vld [vmem:[%s352_s1] sm:$0x3]  ;;  %v377_v53 = vmul.f32 %v376_v51, %v376_v51 }
 0x2be   : > { %v359_v46 = vsel %vm1471_vm2, %v358_v44, 0.0  ;;  %v392_v48 = vld [vmem:[%s386_s3] sm:$0x3]  ;;  %v345_v56 = vsel %vm344_vm7, 0.0, %v341_v49 }
 0x2bf   : > { %v360_v50 = vmul.f32 %v359_v46, %v359_v46  ;;  %v393_v52 = vsel %vm1471_vm2, %v392_v48, 0.0 }
 0x2c0   : > { %v394_v55 = vmul.f32 %v393_v52, %v393_v52 }
 0x2c1   : > { %v362_v54 = vadd.f32 %v360_v50, %v341_v49  ;;  %v361_v57 = vadd.f32 %v360_v50, %v345_v56 }
 0x2c2   : > { %v398_v60 = vsel %vm397_vm8, 0.0, %v394_v55 }
 0x2c3   : > { %v379_v58 = vadd.f32 %v377_v53, %v362_v54  ;;  %v378_v59 = vadd.f32 %v377_v53, %v361_v57 }
 0x2c5   : > { %v400_v61 = vadd.f32 %v394_v55, %v379_v58  ;;  %v399_v62 = vadd.f32 %v398_v60, %v378_v59 }
 0x2c7   : > { %401 = vadd.xlane.f32.xlu0 %v400_v61 }
 0x2cb   : > { %409 = vadd.xlane.f32.xlu0 %v399_v62 }
 0x350   : > { %v402_v63 = vpop.xlane.xlu0 %401 }
 0x351   : > { %v403_v0 = vrot.slane %v402_v63, 4 }
 0x353   : > { %v404_v1 = vadd.f32 %v403_v0, %v402_v63 }
 0x354   : > { %v410_v2 = vpop.xlane.xlu0 %409 }
 0x355   : > { %v405_v3 = vrot.slane %v404_v1, 2  ;;  %v411_v4 = vrot.slane %v410_v2, 4 }
 0x357   : > { %v412_v5 = vadd.f32 %v411_v4, %v410_v2  ;;  %v406_v8 = vadd.f32 %v405_v3, %v404_v1 }
 0x359   : > { %v413_v9 = vrot.slane %v412_v5, 2  ;;  %v407_v11 = vrot.slane %v406_v8, 1 }
 0x35b   : > { %v414_v10 = vadd.f32 %v413_v9, %v412_v5  ;;  %v408_v14 = vadd.f32 %v407_v11, %v406_v8 }
 0x35d   : > { %v415_v12 = vrot.slane %v414_v10, 1 }
 0x35f   : > { %v416_v13 = vadd.f32 %v415_v12, %v414_v10 }
 0x361   : > { %1722 = vpush %v416_v13 }
 0x362   : > { %1724 = vpush %v408_v14 }
 0x392   : > { %s1723_s27 = spop %1722 }
 0x393   : > { %s1725_s17 = spop %1724 }
 0x394   : > { %s419_s18 = smul.f32 1e-10, %s1725_s17 }
 0x396   : > { %p420_p3 = scmp.le.f32.partialorder %s1723_s27, %s419_s18 }
 0x398   : > { %p422_p4 = por %p421_p2, %p420_p3 }
 0x39a   :  { %870 = sbr.rel (!%p422_p4) target bundleno = 250 (0xfa), region = 446 }
 0x39f PF:  { %s871_s19 = smov [#allocation20]  ;;  %v875_v6 = vmov %v1834_v6  ;;  %v878_v7 = vmov %v1836_v7  ;;  %v931_v15 = vld [vmem:[#allocation12] sm:$0x3]  ;;  %v939_v16 = vld [vmem:[#allocation14] sm:$0x3]  ;;  %s891_s20 = smov [#allocation23] }
 0x3a0   :  { %v895_v6 = vmov %v1834_v6  ;;  %v898_v7 = vmov %v1836_v7  ;;  %v879_v17 = vld [vmem:[%s871_s19] sm:$0x3]  ;;  %vm882_vm9 = vcmp.eq.s32.totalorder %v878_v7, %v875_v6  ;;  %934 = vst [vmem:[#allocation13] sm:$0x3] %v931_v15  ;;  %942 = vst [vmem:[#allocation15] sm:$0x3] %v939_v16 }
 0x3a1   :  { %vm902_vm10 = vcmp.eq.s32.totalorder %v898_v7, %v895_v6  ;;  %v947_v18 = vld [vmem:[#allocation16] sm:$0x3]  ;;  %v883_v19 = vsel %vm882_vm9, %v879_v17, 0.0  ;;  %v899_v20 = vld [vmem:[%s891_s20] sm:$0x3]  ;;  %s872_s30 = smov [#allocation8] }
 0x3a2   :  { %950 = vst [vmem:[#allocation17] sm:$0x3] %v947_v18  ;;  %v955_v21 = vld [vmem:[#allocation18] sm:$0x3]  ;;  %v884_v22 = vrot.slane %v883_v19, 4  ;;  %v903_v23 = vsel %vm902_vm10, %v899_v20, 0.0 }
 0x3a3   :  { %958 = vst [vmem:[#allocation19] sm:$0x3] %v955_v21  ;;  %v904_v24 = vrot.slane %v903_v23, 4 }
 0x3a4   :  { %v885_v25 = vadd.f32 %v884_v22, %v883_v19 }
 0x3a5   :  { %v905_v26 = vadd.f32 %v904_v24, %v903_v23 }
 0x3a6   :  { %v886_v27 = vrot.slane %v885_v25, 2 }
 0x3a7   :  { %v906_v28 = vrot.slane %v905_v26, 2  ;;  %v1150_v29 = vld [vmem:[#allocation13] sm:$0x3]  ;;  %v1213_v30 = vld [vmem:[#allocation15] sm:$0x3] }
 0x3a8   :  { %v887_v31 = vadd.f32 %v886_v27, %v885_v25  ;;  %1151 = vst [vmem:[%s2057_s6] sm:$0x3] %v1150_v29  ;;  %1214 = vst [vmem:[%s2058_s7] sm:$0x3] %v1213_v30  ;;  %s892_s6 = smov [#allocation10] }
 0x3a9   :  { %v1276_v6 = vld [vmem:[#allocation17] sm:$0x3]  ;;  %v907_v7 = vadd.f32 %v906_v28, %v905_v26 }
 0x3aa   :  { %1277 = vst [vmem:[%s2059_s8] sm:$0x3] %v1276_v6  ;;  %v1339_v32 = vld [vmem:[#allocation19] sm:$0x3]  ;;  %v888_v33 = vrot.slane %v887_v31, 1 }
 0x3ab   :  { %1340 = vst [vmem:[%s2060_s9] sm:$0x3] %v1339_v32  ;;  %v908_v34 = vrot.slane %v907_v7, 1 }
 0x3ac   :  { %v889_v35 = vadd.f32 %v888_v33, %v887_v31 }
 0x3ad   :  { %v909_v36 = vadd.f32 %v908_v34, %v907_v7 }
 0x3ae   :  { %890 = vst [vmem:[%s872_s30] sm:$0x1] %v889_v35 }
 0x3af   :  { %910 = vst [vmem:[%s892_s6] sm:$0x1] %v909_v36 }
 0x3b5   :  { %v915_v37 = vld [vmem:[#allocation8] sm:$0x1] }
 0x3b6   :  { %918 = vst [vmem:[#allocation9] sm:$0x1] %v915_v37  ;;  %v923_v38 = vld [vmem:[#allocation10] sm:$0x1] }
 0x3b7   :  { %926 = vst [vmem:[#allocation11] sm:$0x1] %v923_v38 }
 0x3bd   :  { %v1022_v39 = vld [vmem:[#allocation9] sm:$0x1] }
 0x3be   :  { %1023 = vst [vmem:[%s2055_s4] sm:$0x1] %v1022_v39  ;;  %v1087_v40 = vld [vmem:[#allocation11] sm:$0x1] }
 0x3bf   :  { %1088 = vst [vmem:[%s2056_s5] sm:$0x1] %v1087_v40 }

// kernel: custom-call.16
= control target key start
LH: loop header
LB: loop body
LE: loop exit
PB: predicated region body
PF: predicated region fallthrough
CT: control target
= control target key end

     0   :  { %v340_v1 = vmov 0.0   ;;  %s360_s11 = smov 0   ;;  %s416_s0 = inlined_call_operand.vmem [shape: f32[3,3], index: 0, kind: input, shape index: {}]   ;;  %s417_s1 = inlined_call_operand.vmem [shape: f32[3,3], index: 1, kind: output, shape index: {0}]   ;;  %s418_s2 = inlined_call_operand.vmem [shape: f32[3], index: 2, kind: output, shape index: {1}]  }
   0x1   :  { %v20_v0 = vld [vmem:[%s416_s0] sm:$0xf]  ;;  %44 = vst [vmem:[#allocation4] sm:$0x1] %v340_v1 }
   0x2   :  { %21 = vst [vmem:[#allocation1] sm:$0xf] %v20_v0 }
   0x9   :  { %v40_v2 = vld [vmem:[#allocation1] sm:$0xf] }
   0xa   :  { %41 = vst [vmem:[#allocation0] sm:$0xf] %v40_v2 }
  0x11   :  { %v42_v3 = vld [vmem:[#allocation0] sm:$0xff] }
  0x12   :  { %43 = vst [vmem:[#allocation2] sm:$0xff] %v42_v3 }
  0x13 LB: > { %v52_v4 = vlaneseq  ;;  %v369_v6 = vstv %s338_s11  ;;  %s79_s0 = scalar_lea.vmem [#allocation2], %s338_s11  ;;  %s115_s12 = smov [#allocation2]  ;;  %v341_v60 = vmov 1.0   ;;  %v150_v61 = vld [vmem:[#allocation4] ss:$0 sm:$0xff]  ;;  %s338_s11 = sphi %s360_s11, %s50_s11  }
  0x14   : > { %s137_s13 = scalar_lea.vmem [#allocation6], %s338_s11  ;;  %s153_s14 = smov [#allocation2] }
  0x15   : > { %v366_v5 = vshrl.u32 %v52_v4, 7  ;;  %v131_v49 = vand.u32 127, %v52_v4  ;;  %s154_s15 = smov [#allocation6] }
  0x17   : > { %vm56_vm0 = vcmp.gt.s32.totalorder %v366_v5, %v369_v6  ;;  %vm57_vm1 = vcmp.lt.s32.totalorder %v366_v5, 3  ;;  %v118_v5 = vmov %v366_v5  ;;  %vm384_vm12 = vcmp.eq.s32.totalorder %v131_v49, %v369_v6 }
  0x18   : > { %vm58_vm2 = vmand %vm56_vm0, %vm57_vm1  ;;  %vm122_vm9 = vcmp.gt.s32.totalorder %v118_v5, %v369_v6  ;;  %vm123_vm10 = vcmp.lt.s32.totalorder %v118_v5, 3  ;;  %v157_v5 = vmov %v366_v5  ;;  %vm183_vm15 = vcmp.gt.s32.totalorder %v131_v49, %v369_v6 }
  0x19   : > { %v51_v7 = vld [vmem:[#allocation2] sm:$0xff]  ;;  %v80_v16 = vld [vmem:[%s79_s0] ss:$0 sm:$0xff]  ;;  %vm124_vm11 = vmand %vm122_vm9, %vm123_vm10  ;;  %vm162_vm13 = vcmp.lt.s32.totalorder %v157_v5, 3  ;;  %v174_v5 = vmov %v366_v5 }
  0x1a   : > { %v59_v8 = vsel %vm58_vm2, %v51_v7, 0.0  ;;  %v81_v17 = vand.u32 2147483647, %v80_v16  ;;  %vm106_vm8 = vcmp.lt.f32.partialorder %v80_v16, 0.0  ;;  %v119_v46 = vld [vmem:[%s115_s12] sm:$0xff]  ;;  %vm191_vm14 = vcmp.ge.s32.totalorder %v174_v5, %v369_v6 }
  0x1b   : > { %v60_v9 = vmul.f32 %v59_v8, %v59_v8  ;;  %v125_v50 = vsel %vm124_vm11, %v119_v46, 0.0  ;;  %v160_v0 = vld [vmem:[%s153_s14] sm:$0xff]  ;;  %s170_s14 = smov %s153_s14  ;;  %vm192_vm0 = vmand %vm384_vm12, %vm191_vm14 }
  0x1c   : > { %v82_v22 = vmax.f32 %v81_v17, 0.0  ;;  %s195_s16 = scalar_lea.vmem %s170_s14, %s338_s11  ;;  %s50_s11 = sadd.s32 1, %s338_s11  }
  0x1d   : > { %v61_v10 = vrot.slane %v60_v9, 4  ;;  %p47_p0 = scmp.ge.s32.totalorder %s50_s11, 3  }
  0x1f   : > { %v62_v11 = vadd.f32 %v61_v10, %v60_v9 }
  0x21   : > { %v63_v12 = vrot.slane %v62_v11, 2 }
  0x23   : > { %v64_v13 = vadd.f32 %v63_v12, %v62_v11 }
  0x25   : > { %v65_v14 = vrot.slane %v64_v13, 1 }
  0x27   : > { %v66_v15 = vadd.f32 %v65_v14, %v64_v13  ;;  %v181_v14 = vld [vmem:[%s170_s14] sm:$0xff] }
  0x29   : > { %322 = vrsqrt.f32 %v66_v15  ;;  %vm69_vm3 = vcmp.eq.f32.partialorder %v66_v15, inf  ;;  %v72_v19 = vand.u32 2147483648, %v66_v15  ;;  %vm71_vm4 = vcmp.eq.f32.partialorder %v66_v15, 0.0 }
  0x36   : > { %v323_v18 = vpop.eup %322 }
  0x37   : > { %v68_v20 = vmul.f32 %v323_v18, %v66_v15 }
  0x39   : > { %v70_v21 = vsel %vm69_vm3, %v66_v15, %v68_v20 }
  0x3a   : > { %v73_v23 = vsel %vm71_vm4, %v72_v19, %v70_v21 }
  0x3b   : > { %v83_v24 = vand.u32 2147483647, %v73_v23 }
  0x3d   : > { %v84_v25 = vmax.f32 %v82_v22, %v83_v24 }
  0x3f   : > { %324 = vrcp.f32 %v84_v25  ;;  %vm96_vm7 = vcmp.eq.f32.partialorder %v84_v25, 0.0 }
  0x4c   : > { %v325_v26 = vpop.eup %324 }
  0x4d   : > { %v86_v27 = vmul.f32 %v325_v26, %v81_v17  ;;  %v89_v28 = vmul.f32 0.0, %v325_v26  ;;  %v93_v29 = vmul.f32 %v325_v26, %v83_v24 }
  0x4f   : > { %v87_v30 = vmul.f32 %v86_v27, %v86_v27  ;;  %v90_v31 = vmul.f32 %v89_v28, %v89_v28  ;;  %v94_v32 = vmul.f32 %v93_v29, %v93_v29 }
  0x51   : > { %v91_v33 = vadd.f32 %v90_v31, %v87_v30 }
  0x53   : > { %v95_v34 = vadd.f32 %v94_v32, %v91_v33 }
  0x55   : > { %326 = vrsqrt.f32 %v95_v34  ;;  %vm99_vm5 = vcmp.eq.f32.partialorder %v95_v34, inf  ;;  %v102_v36 = vand.u32 2147483648, %v95_v34  ;;  %vm101_vm6 = vcmp.eq.f32.partialorder %v95_v34, 0.0 }
  0x62   : > { %v327_v35 = vpop.eup %326 }
  0x63   : > { %v98_v37 = vmul.f32 %v327_v35, %v95_v34 }
  0x65   : > { %v100_v38 = vsel %vm99_vm5, %v95_v34, %v98_v37 }
  0x66   : > { %v103_v39 = vsel %vm101_vm6, %v102_v36, %v100_v38 }
  0x67   : > { %v104_v40 = vmul.f32 %v103_v39, %v84_v25 }
  0x69   : > { %v105_v41 = vsel %vm96_vm7, 0.0, %v104_v40 }
  0x6a   : > { %v107_v42 = vxor.u32 2147483648, %v105_v41 }
  0x6c   : > { %v108_v43 = vsel %vm106_vm8, %v105_v41, %v107_v42 }
  0x6d   : > { %v377_v44 = vsel %vm71_vm4, %v80_v16, %v108_v43  ;;  %328 = vrcp.f32 %v108_v43  ;;  %v109_v47 = vsub.f32 %v108_v43, %v80_v16 }
  0x6e   : > { %v114_v45 = vsub.f32 %v80_v16, %v377_v44 }
  0x70   : > { %330 = vrcp.f32 %v114_v45 }
  0x7a   : > { %v329_v48 = vpop.eup %328 }
  0x7b   : > { %v111_v51 = vmul.f32 %v329_v48, %v109_v47 }
  0x7d   : > { %v331_v52 = vpop.eup %330  ;;  %v113_v56 = vsel %vm71_vm4, 0.0, %v111_v51 }
  0x7e   : > { %v127_v53 = vmul.f32 %v331_v52, %v125_v50  ;;  %v143_v58 = vsel %vm384_vm12, %v113_v56, 0.0 }
  0x80   : > { %v128_v55 = vsel %vm71_vm4, 0.0, %v127_v53 }
  0x81   : > { %v133_v57 = vsel %vm384_vm12, %v128_v55, 0.0 }
  0x82   : > { %134 = vadd.xlane.f32.xlu0 %v133_v57 }
  0x86   : > { %144 = vadd.xlane.f32.xlu0 %v143_v58 }
 0x10b   : > { %v135_v59 = vpop.xlane.xlu0 %134 }
 0x10c   : > { %136 = vst [vmem:[#allocation6] sm:$0xff] %v135_v59 }
 0x10d   : > { %138 = vst [vmem:[%s137_s13] sm:$0x1] %v341_v60 }
 0x10f   : > { %v145_v62 = vpop.xlane.xlu0 %144 }
 0x110   : > { %v151_v63 = vsel %vm384_vm12, %v145_v62, %v150_v61 }
 0x111   : > { %152 = vst [vmem:[#allocation4] sm:$0x1] %v151_v63 }
 0x114   : > { %v159_v1 = vld [vmem:[%s154_s15] sm:$0xff]  ;;  %s171_s15 = smov %s154_s15 }
 0x115   : > { %v161_v2 = vmul.f32 %v160_v0, %v159_v1  ;;  %v179_v13 = vld [vmem:[%s171_s15] sm:$0xff] }
 0x117   : > { %v163_v3 = vsel %vm162_vm13, %v161_v2, 0.0 }
 0x118   : > { %v164_v4 = vrot.slane %v163_v3, 4  ;;  %v215_v6 = vld [vmem:[#allocation4] sm:$0x1] (%p47_p0) }
 0x119   :  { %218 = vst [vmem:[#allocation5] sm:$0x1] (%p47_p0), %v215_v6 }
 0x11a   : > { %v165_v7 = vadd.f32 %v164_v4, %v163_v3 }
 0x11c   : > { %v166_v8 = vrot.slane %v165_v7, 2 }
 0x11e   : > { %v167_v9 = vadd.f32 %v166_v8, %v165_v7 }
 0x120   : > { %v168_v10 = vrot.slane %v167_v9, 1  ;;  %v270_v22 = vld [vmem:[#allocation5] sm:$0x1] (%p47_p0) }
 0x121   :  { %271 = vst [vmem:[%s418_s2] sm:$0x1] (%p47_p0), %v270_v22 }
 0x122   : > { %v169_v11 = vadd.f32 %v168_v10, %v167_v9 }
 0x124   : > { %v175_v12 = vmul.f32 %v169_v11, %v145_v62 }
 0x126   : > { %v180_v15 = vmul.f32 %v179_v13, %v175_v12 }
 0x128   : > { %v184_v16 = vsub.f32 %v181_v14, %v180_v15 }
 0x12a   : > { %v185_v17 = vsel %vm183_vm15, %v184_v16, %v181_v14 }
 0x12b   : > { %v193_v18 = vsel %vm192_vm0, %v179_v13, %v185_v17 }
 0x12c   : > { %194 = vst [vmem:[%s170_s14] sm:$0xff] %v193_v18 }
 0x131   :  { %49 = sbr.rel (!%p47_p0) target bundleno = 19 (0x13), region = 131 }
 0x133   : > { %v196_v19 = vld [vmem:[%s195_s16] ss:$0 sm:$0xff] }
 0x134   : > { %v201_v20 = vsel %vm384_vm12, %v377_v44, %v196_v19 }
 0x135   : > { %202 = vst [vmem:[%s195_s16] sm:$0x1] %v201_v20 }
 0x13c   :  { %v207_v5 = vld [vmem:[#allocation2] sm:$0xf] }
 0x13d   :  { %210 = vst [vmem:[#allocation3] sm:$0xf] %v207_v5 }
 0x144   :  { %v235_v21 = vld [vmem:[#allocation3] sm:$0xf] }
 0x145   :  { %236 = vst [vmem:[%s417_s1] sm:$0xf] %v235_v21 }

// kernel: spatial_gnn_forward.3
= control target key start
LH: loop header
LB: loop body
LE: loop exit
PB: predicated region body
PF: predicated region fallthrough
CT: control target
= control target key end

     0   :  { %vm39_vm0 = vcmask 23552   ;;  %s938_s0 = inlined_call_operand.vmem [shape: f32[64,3], index: 0, kind: input, shape index: {}]   ;;  %s939_s1 = inlined_call_operand.vmem [shape: f32[128,3], index: 1, kind: input, shape index: {}]   ;;  %s940_s2 = inlined_call_operand.vmem [shape: f32[1,128], index: 2, kind: input, shape index: {}]   ;;  %s941_s3 = inlined_call_operand.vmem [shape: f32[3,3], index: 3, kind: input, shape index: {}]   ;;  %s942_s4 = inlined_call_operand.vmem [shape: f32[1,3], index: 4, kind: input, shape index: {}]   ;;  %s943_s5 = inlined_call_operand.vmem [shape: f32[64,3], index: 5, kind: output, shape index: {0}]   ;;  %s944_s6 = inlined_call_operand.hbm [shape: f32[1,1], index: 6, kind: output, shape index: {1}]  }
   0x1   :  { %v31_v0 = vld [vmem:[%s941_s3] sm:$0x7]  ;;  %v24_v2 = vld [vmem:[%s938_s0 + $0x8] sm:$0xff]  ;;  %v25_v3 = vld [vmem:[%s938_s0 + $0x10] sm:$0xff] }
   0x2   :  { %v23_v1 = vld [vmem:[%s938_s0] sm:$0xff]  ;;  %583 = vmatprep.subr.msk.mxu0 %vm39_vm0, %v31_v0  ;;  %v195_v4 = vld [vmem:[%s939_s1 + $0x78] sm:$0xff]  ;;  %v194_v5 = vld [vmem:[%s939_s1 + $0x70] sm:$0xff] }
   0x3   :  { %585 = vmatprep.mubr.msk.f32.mxu0 %vm39_vm0, %v23_v1  ;;  %584 = vmatpush3.xpose.msk.msra.mxu0 %vm39_vm0, %v31_v0  ;;  %v26_v6 = vld [vmem:[%s938_s0 + $0x18] sm:$0xff]  ;;  %v27_v7 = vld [vmem:[%s938_s0 + $0x20] sm:$0xff]  ;;  %v193_v8 = vld [vmem:[%s939_s1 + $0x68] sm:$0xff] }
   0x4   :  { %597 = vmatprep.subr.msk.mxu0 %vm39_vm0, %v195_v4  ;;  %641 = vmatprep.subr.msk.mxu1 %vm39_vm0, %v195_v4 }
   0x5   :  { %657 = vmatpush3.xpose.msk.msra.mxu1 %vm39_vm0, %v195_v4 }
   0x6   :  { %586 = vmatmul.mubr.msk.f32.vlgmr.msra.gmra.mxu0 %vm39_vm0, %v24_v2  ;;  %642 = vmatprep.subr.msk.mxu1 %vm39_vm0, %v194_v5 }
   0x7   :  { %588 = vmatprep.mubr.msk.f32.mxu0 %vm39_vm0, %v25_v3  ;;  %598 = vmatpush3.xpose.msk.msra.mxu0 %vm39_vm0, %v195_v4 }
   0x8   :  { %599 = vmatprep.subr.msk.mxu0 %vm39_vm0, %v194_v5 }
   0x9   :  { %12 = vsyncpa [#allocation3], 0  ;;  %658 = vmatpush3.xpose.msk.msra.mxu1 %vm39_vm0, %v194_v5  ;;  %v28_v9 = vld [vmem:[%s938_s0 + $0x28] sm:$0xff]  ;;  %v29_v10 = vld [vmem:[%s938_s0 + $0x30] sm:$0xff]  ;;  %vm495_vm2 = vcmask 0  }
   0xa   :  { %589 = vmatmul.mubr.msk.f32.gmra.mxu0 %vm39_vm0, %v26_v6  ;;  %643 = vmatprep.subr.msk.mxu1 %vm39_vm0, %v193_v8  ;;  %v192_v11 = vld [vmem:[%s939_s1 + $0x60] sm:$0xff]  ;;  %v30_v12 = vld [vmem:[%s938_s0 + $0x38] sm:$0xff]  ;;  %v190_v14 = vld [vmem:[%s939_s1 + $0x50] sm:$0xff] }
   0xb   :  { %591 = vmatprep.mubr.msk.f32.mxu0 %vm39_vm0, %v27_v7  ;;  %600 = vmatpush3.xpose.msk.msra.mxu0 %vm39_vm0, %v194_v5  ;;  %v191_v13 = vld [vmem:[%s939_s1 + $0x58] sm:$0xff]  ;;  %v189_v15 = vld [vmem:[%s939_s1 + $0x48] sm:$0xff]  ;;  %v188_v16 = vld [vmem:[%s939_s1 + $0x40] sm:$0xff] }
   0xc   :  { %601 = vmatprep.subr.msk.mxu0 %vm39_vm0, %v193_v8  ;;  %v187_v17 = vld [vmem:[%s939_s1 + $0x38] sm:$0xff]  ;;  %v186_v18 = vld [vmem:[%s939_s1 + $0x30] sm:$0xff]  ;;  %v185_v19 = vld [vmem:[%s939_s1 + $0x28] sm:$0xff] }
   0xd   :  { %659 = vmatpush3.xpose.msk.msra.mxu1 %vm39_vm0, %v193_v8  ;;  %v184_v20 = vld [vmem:[%s939_s1 + $0x20] sm:$0xff]  ;;  %v183_v21 = vld [vmem:[%s939_s1 + $0x18] sm:$0xff]  ;;  %v182_v22 = vld [vmem:[%s939_s1 + $0x10] sm:$0xff] }
   0xe   :  { %592 = vmatmul.mubr.msk.f32.gmra.mxu0 %vm39_vm0, %v28_v9  ;;  %644 = vmatprep.subr.msk.mxu1 %vm39_vm0, %v192_v11  ;;  %v181_v23 = vld [vmem:[%s939_s1 + $0x8] sm:$0xff]  ;;  %v180_v24 = vld [vmem:[%s939_s1] sm:$0xff] }
   0xf   :  { %594 = vmatprep.mubr.msk.f32.mxu0 %vm39_vm0, %v29_v10  ;;  %602 = vmatpush3.xpose.msk.msra.mxu0 %vm39_vm0, %v193_v8  ;;  %v515_v25 = vld [vmem:[%s942_s4] ss:$0 sm:$0xff] }
  0x10   :  { %603 = vmatprep.subr.msk.mxu0 %vm39_vm0, %v192_v11  ;;  %v549_v60 = vld [vmem:[%s940_s2] ss:$0 sm:$0xff]  ;;  %s696_s2 = smov [#allocation2]  }
  0x11   :  { %660 = vmatpush3.xpose.msk.msra.mxu1 %vm39_vm0, %v192_v11 }
  0x12   :  { %595 = vmatmul.mubr.msk.f32.gmra.mxu0 %vm39_vm0, %v30_v12  ;;  %645 = vmatprep.subr.msk.mxu1 %vm39_vm0, %v191_v13 }
  0x13   :  { %604 = vmatpush3.xpose.msk.msra.mxu0 %vm39_vm0, %v192_v11 }
  0x14   :  { %605 = vmatprep.subr.msk.mxu0 %vm39_vm0, %v191_v13 }
  0x15   :  { %661 = vmatpush3.xpose.msk.msra.mxu1 %vm39_vm0, %v191_v13 }
  0x16   :  { %646 = vmatprep.subr.msk.mxu1 %vm39_vm0, %v190_v14 }
  0x17   :  { %606 = vmatpush3.xpose.msk.msra.mxu0 %vm39_vm0, %v191_v13 }
  0x18   :  { %607 = vmatprep.subr.msk.mxu0 %vm39_vm0, %v190_v14 }
  0x19   :  { %662 = vmatpush3.xpose.msk.msra.mxu1 %vm39_vm0, %v190_v14 }
  0x1a   :  { %647 = vmatprep.subr.msk.mxu1 %vm39_vm0, %v189_v15 }
  0x1b   :  { %608 = vmatpush3.xpose.msk.msra.mxu0 %vm39_vm0, %v190_v14 }
  0x1c   :  { %609 = vmatprep.subr.msk.mxu0 %vm39_vm0, %v189_v15 }
  0x1d   :  { %663 = vmatpush3.xpose.msk.msra.mxu1 %vm39_vm0, %v189_v15 }
  0x1e   :  { %648 = vmatprep.subr.msk.mxu1 %vm39_vm0, %v188_v16 }
  0x1f   :  { %610 = vmatpush3.xpose.msk.msra.mxu0 %vm39_vm0, %v189_v15 }
  0x20   :  { %611 = vmatprep.subr.msk.mxu0 %vm39_vm0, %v188_v16 }
  0x21   :  { %664 = vmatpush3.xpose.msk.msra.mxu1 %vm39_vm0, %v188_v16 }
  0x22   :  { %649 = vmatprep.subr.msk.mxu1 %vm39_vm0, %v187_v17 }
  0x23   :  { %612 = vmatpush3.xpose.msk.msra.mxu0 %vm39_vm0, %v188_v16 }
  0x24   :  { %613 = vmatprep.subr.msk.mxu0 %vm39_vm0, %v187_v17 }
  0x25   :  { %665 = vmatpush3.xpose.msk.msra.mxu1 %vm39_vm0, %v187_v17 }
  0x26   :  { %650 = vmatprep.subr.msk.mxu1 %vm39_vm0, %v186_v18 }
  0x27   :  { %614 = vmatpush3.xpose.msk.msra.mxu0 %vm39_vm0, %v187_v17 }
  0x28   :  { %615 = vmatprep.subr.msk.mxu0 %vm39_vm0, %v186_v18 }
  0x29   :  { %666 = vmatpush3.xpose.msk.msra.mxu1 %vm39_vm0, %v186_v18 }
  0x2a   :  { %651 = vmatprep.subr.msk.mxu1 %vm39_vm0, %v185_v19 }
  0x2b   :  { %616 = vmatpush3.xpose.msk.msra.mxu0 %vm39_vm0, %v186_v18 }
  0x2c   :  { %617 = vmatprep.subr.msk.mxu0 %vm39_vm0, %v185_v19 }
  0x2d   :  { %667 = vmatpush3.xpose.msk.msra.mxu1 %vm39_vm0, %v185_v19 }
  0x2e   :  { %652 = vmatprep.subr.msk.mxu1 %vm39_vm0, %v184_v20 }
  0x2f   :  { %618 = vmatpush3.xpose.msk.msra.mxu0 %vm39_vm0, %v185_v19 }
  0x30   :  { %619 = vmatprep.subr.msk.mxu0 %vm39_vm0, %v184_v20 }
  0x31   :  { %668 = vmatpush3.xpose.msk.msra.mxu1 %vm39_vm0, %v184_v20 }
  0x32   :  { %653 = vmatprep.subr.msk.mxu1 %vm39_vm0, %v183_v21 }
  0x33   :  { %620 = vmatpush3.xpose.msk.msra.mxu0 %vm39_vm0, %v184_v20 }
  0x34   :  { %621 = vmatprep.subr.msk.mxu0 %vm39_vm0, %v183_v21 }
  0x35   :  { %669 = vmatpush3.xpose.msk.msra.mxu1 %vm39_vm0, %v183_v21 }
  0x36   :  { %654 = vmatprep.subr.msk.mxu1 %vm39_vm0, %v182_v22 }
  0x37   :  { %622 = vmatpush3.xpose.msk.msra.mxu0 %vm39_vm0, %v183_v21 }
  0x38   :  { %623 = vmatprep.subr.msk.mxu0 %vm39_vm0, %v182_v22 }
  0x39   :  { %670 = vmatpush3.xpose.msk.msra.mxu1 %vm39_vm0, %v182_v22 }
  0x3a   :  { %655 = vmatprep.subr.msk.mxu1 %vm39_vm0, %v181_v23 }
  0x3b   :  { %624 = vmatpush3.xpose.msk.msra.mxu0 %vm39_vm0, %v182_v22 }
  0x3c   :  { %625 = vmatprep.subr.msk.mxu0 %vm39_vm0, %v181_v23 }
  0x3d   :  { %671 = vmatpush3.xpose.msk.msra.mxu1 %vm39_vm0, %v181_v23 }
  0x3e   :  { %656 = vmatprep.subr.msk.mxu1 %vm39_vm0, %v180_v24 }
  0x3f   :  { %626 = vmatpush3.xpose.msk.msra.mxu0 %vm39_vm0, %v181_v23 }
  0x40   :  { %627 = vmatprep.subr.msk.mxu0 %vm39_vm0, %v180_v24 }
  0x41   :  { %672 = vmatpush3.xpose.msk.msra.mxu1 %vm39_vm0, %v180_v24 }
  0x43   :  { %628 = vmatpush3.xpose.msk.msra.mxu0 %vm39_vm0, %v180_v24 }
  0xc6   :  { %v587_v26 = vpop.f32.mrf.mxu0 }
  0xc7   :  { %v139_v27 = vadd.f32 %v587_v26, %v515_v25 }
  0xc8   :  { %v133_v28 = vpop.f32.mrf.mxu0 }
  0xc9   :  { %173 = vst.msk [vmem:[%s943_s5 + $0x8] sm:$0xff] %vm39_vm0, %v139_v27  ;;  %v134_v29 = vadd.f32 %v515_v25, %v133_v28  ;;  %v374_v30 = vmul.f32 %v139_v27, %v139_v27 }
  0xca   :  { %v590_v31 = vpop.f32.mrf.mxu0 }
  0xcb   :  { %172 = vst.msk [vmem:[%s943_s5] sm:$0xff] %vm39_vm0, %v134_v29  ;;  %v149_v32 = vadd.f32 %v590_v31, %v515_v25  ;;  %629 = vmatprep.mubr.msk.f32.mxu0 %vm39_vm0, %v134_v29  ;;  %v384_v33 = vsel %vm39_vm0, %v374_v30, 0.0  ;;  %v373_v35 = vmul.f32 %v134_v29, %v134_v29 }
  0xcc   :  { %385 = vadd.xlane.f32.xlu0 %v384_v33  ;;  %v143_v34 = vpop.f32.mrf.mxu0  ;;  %630 = vmatmul.mubr.msk.f32.vlgmr.msra.gmra.mxu0 %vm39_vm0, %v139_v27 }
  0xcd   :  { %175 = vst.msk [vmem:[%s943_s5 + $0x18] sm:$0xff] %vm39_vm0, %v149_v32  ;;  %v144_v36 = vadd.f32 %v515_v25, %v143_v34  ;;  %v376_v37 = vmul.f32 %v149_v32, %v149_v32  ;;  %v381_v43 = vsel %vm39_vm0, %v373_v35, 0.0 }
  0xce   :  { %v593_v38 = vpop.f32.mrf.mxu0 }
  0xcf   :  { %174 = vst.msk [vmem:[%s943_s5 + $0x10] sm:$0xff] %vm39_vm0, %v144_v36  ;;  %v159_v39 = vadd.f32 %v593_v38, %v515_v25  ;;  %632 = vmatprep.mubr.msk.f32.mxu1 %vm39_vm0, %v144_v36  ;;  %v390_v40 = vsel %vm39_vm0, %v376_v37, 0.0  ;;  %v375_v41 = vmul.f32 %v144_v36, %v144_v36 }
  0xd0   :  { %391 = vadd.xlane.f32.xlu1 %v390_v40  ;;  %v153_v42 = vpop.f32.mrf.mxu0  ;;  %633 = vmatmul.mubr.msk.f32.vlgmr.msra.gmra.mxu1 %vm39_vm0, %v149_v32 }
  0xd1   :  { %177 = vst.msk [vmem:[%s943_s5 + $0x28] sm:$0xff] %vm39_vm0, %v159_v39  ;;  %v154_v44 = vadd.f32 %v515_v25, %v153_v42  ;;  %382 = vadd.xlane.f32.xlu0 %v381_v43  ;;  %v387_v47 = vsel %vm39_vm0, %v375_v41, 0.0  ;;  %v378_v49 = vmul.f32 %v159_v39, %v159_v39 }
  0xd2   :  { %v596_v45 = vpop.f32.mrf.mxu0 }
  0xd3   :  { %176 = vst.msk [vmem:[%s943_s5 + $0x20] sm:$0xff] %vm39_vm0, %v154_v44  ;;  %v169_v46 = vadd.f32 %v596_v45, %v515_v25  ;;  %635 = vmatprep.mubr.msk.f32.mxu1 %vm39_vm0, %v154_v44  ;;  %v377_v48 = vmul.f32 %v154_v44, %v154_v44  ;;  %v396_v53 = vsel %vm39_vm0, %v378_v49, 0.0 }
  0xd4   :  { %v163_v50 = vpop.f32.mrf.mxu0  ;;  %388 = vadd.xlane.f32.xlu1 %v387_v47  ;;  %636 = vmatmul.mubr.msk.f32.gmra.mxu1 %vm39_vm0, %v159_v39 }
  0xd5   :  { %179 = vst.msk [vmem:[%s943_s5 + $0x38] sm:$0xff] %vm39_vm0, %v169_v46  ;;  %v164_v51 = vadd.f32 %v515_v25, %v163_v50  ;;  %v393_v52 = vsel %vm39_vm0, %v377_v48, 0.0  ;;  %v380_v55 = vmul.f32 %v169_v46, %v169_v46 }
  0xd6   :  { %394 = vadd.xlane.f32.xlu0 %v393_v52 }
  0xd7   :  { %178 = vst.msk [vmem:[%s943_s5 + $0x30] sm:$0xff] %vm39_vm0, %v164_v51  ;;  %638 = vmatprep.mubr.msk.f32.mxu1 %vm39_vm0, %v164_v51  ;;  %v379_v54 = vmul.f32 %v164_v51, %v164_v51  ;;  %v402_v57 = vsel %vm39_vm0, %v380_v55, 0.0  ;;  %v473_v51 = vlaneseq  ;;  %s505_s5 = sshll.u32 %s696_s2, 4  ;;  %s506_s5 = int_to_ptr.vmem [resolvable:$true] %s505_s5 }
  0xd8   :  { %397 = vadd.xlane.f32.xlu1 %v396_v53  ;;  %639 = vmatmul.mubr.msk.f32.gmra.mxu1 %vm39_vm0, %v169_v46  ;;  %s674_s12 = scalar_lea.vmem %s506_s5, 16  ;;  %s678_s13 = scalar_lea.vmem %s506_s5, 32 }
  0xd9   :  { %v399_v56 = vsel %vm39_vm0, %v379_v54, 0.0  ;;  %v474_v54 = vand.u32 127, %v473_v51  ;;  %p675_p0 = scmp.ne.s32.totalorder %s506_s5, %s674_s12  ;;  %p679_p1 = scmp.lt.s32.totalorder %s506_s5, %s506_s5 }
  0xda   :  { %400 = vadd.xlane.f32.xlu0 %v399_v56  ;;  %p680_p2 = scmp.lt.s32.totalorder %s678_s13, %s674_s12 }
  0xdb   :  { %vm475_vm1 = vcmp.lt.s32.totalorder %v474_v54, 64 }
  0xdc   :  { %403 = vadd.xlane.f32.xlu1 %v402_v57  ;;  %p681_p3 = por %p680_p2, %p679_p1 }
  0xde   :  { %p682_p4 = pnand %p681_p3, %p675_p0 }
 0x155   :  { %v386_v59 = vpop.xlane.xlu0 %385 }
 0x156   :  { %v413_v0 = vadd.f32 %v549_v60, %v386_v59 }
 0x159   :  { %v392_v58 = vpop.xlane.xlu1 %391 }
 0x15a   :  { %v383_v62 = vpop.xlane.xlu0 %382  ;;  %v415_v8 = vadd.f32 %v549_v60, %v392_v58 }
 0x15b   :  { %v412_v3 = vadd.f32 %v549_v60, %v383_v62 }
 0x15d   :  { %v389_v61 = vpop.xlane.xlu1 %388 }
 0x15e   :  { %v414_v14 = vadd.f32 %v549_v60, %v389_v61 }
 0x15f   :  { %v395_v12 = vpop.xlane.xlu0 %394 }
 0x160   :  { %v416_v25 = vadd.f32 %v549_v60, %v395_v12 }
 0x161   :  { %v398_v6 = vpop.xlane.xlu1 %397 }
 0x162   :  { %v417_v19 = vadd.f32 %v549_v60, %v398_v6 }
 0x163   :  { %v401_v29 = vpop.xlane.xlu0 %400 }
 0x164   :  { %v418_v36 = vadd.f32 %v549_v60, %v401_v29 }
 0x165   :  { %v404_v23 = vpop.xlane.xlu1 %403 }
 0x166   :  { %v419_v31 = vadd.f32 %v549_v60, %v404_v23 }
 0x18c   :  { %v631_v63 = vpop.f32.mrf.mxu0 }
 0x18d   :  { %v421_v1 = vmul.f32 2.0, %v631_v63 }
 0x18e   :  { %v334_v2 = vpop.f32.mrf.mxu0 }
 0x18f   :  { %v420_v4 = vmul.f32 2.0, %v334_v2  ;;  %v429_v5 = vsub.f32 %v413_v0, %v421_v1 }
 0x190   :  { %v634_v7 = vpop.f32.mrf.mxu1 }
 0x191   :  { %v428_v9 = vsub.f32 %v412_v3, %v420_v4  ;;  %v423_v10 = vmul.f32 2.0, %v634_v7  ;;  %v437_v11 = vmax.f32 %v429_v5, 0.0 }
 0x192   :  { %v344_v13 = vpop.f32.mrf.mxu1 }
 0x193   :  { %v422_v15 = vmul.f32 2.0, %v344_v13  ;;  %446 = vmin.xlane.f32.xlu1 %v437_v11  ;;  %v436_v16 = vmax.f32 %v428_v9, 0.0  ;;  %v431_v17 = vsub.f32 %v415_v8, %v423_v10 }
 0x194   :  { %v637_v18 = vpop.f32.mrf.mxu1 }
 0x195   :  { %v425_v20 = vmul.f32 2.0, %v637_v18  ;;  %444 = vmin.xlane.f32.xlu0 %v436_v16  ;;  %v439_v21 = vmax.f32 %v431_v17, 0.0  ;;  %v430_v22 = vsub.f32 %v414_v14, %v422_v15 }
 0x196   :  { %v354_v24 = vpop.f32.mrf.mxu1 }
 0x197   :  { %v424_v26 = vmul.f32 2.0, %v354_v24  ;;  %450 = vmin.xlane.f32.xlu1 %v439_v21  ;;  %v438_v27 = vmax.f32 %v430_v22, 0.0  ;;  %v433_v28 = vsub.f32 %v417_v19, %v425_v20 }
 0x198   :  { %v640_v30 = vpop.f32.mrf.mxu1 }
 0x199   :  { %v427_v32 = vmul.f32 2.0, %v640_v30  ;;  %448 = vmin.xlane.f32.xlu0 %v438_v27  ;;  %v441_v33 = vmax.f32 %v433_v28, 0.0  ;;  %v432_v34 = vsub.f32 %v416_v25, %v424_v26 }
 0x19a   :  { %v364_v35 = vpop.f32.mrf.mxu1 }
 0x19b   :  { %v426_v37 = vmul.f32 2.0, %v364_v35  ;;  %454 = vmin.xlane.f32.xlu1 %v441_v33  ;;  %v440_v38 = vmax.f32 %v432_v34, 0.0  ;;  %v435_v39 = vsub.f32 %v419_v31, %v427_v32  ;;  %v461_v44 = vmin.f32 %v437_v11, %v441_v33 }
 0x19d   :  { %v434_v40 = vsub.f32 %v418_v36, %v426_v37  ;;  %452 = vmin.xlane.f32.xlu0 %v440_v38  ;;  %v443_v41 = vmax.f32 %v435_v39, 0.0  ;;  %v460_v42 = vmin.f32 %v436_v16, %v440_v38 }
 0x19f   :  { %458 = vmin.xlane.f32.xlu1 %v443_v41  ;;  %v442_v43 = vmax.f32 %v434_v40, 0.0  ;;  %v463_v45 = vmin.f32 %v439_v21, %v443_v41  ;;  %v464_v47 = vmin.f32 %v460_v42, %v461_v44 }
 0x1a1   :  { %v462_v46 = vmin.f32 %v438_v27, %v442_v43  ;;  %456 = vmin.xlane.f32.xlu0 %v442_v43 }
 0x1a3   :  { %v465_v48 = vmin.f32 %v462_v46, %v463_v45 }
 0x1a5   :  { %v466_v49 = vmin.f32 %v464_v47, %v465_v48 }
 0x1a7   :  { %v467_v50 = vrot.slane %v466_v49, 4 }
 0x1a9   :  { %v468_v52 = vmin.f32 %v466_v49, %v467_v50 }
 0x1ab   :  { %v469_v53 = vrot.slane %v468_v52, 2 }
 0x1ad   :  { %v470_v55 = vmin.f32 %v468_v52, %v469_v53 }
 0x1af   :  { %v471_v56 = vrot.slane %v470_v55, 1 }
 0x1b1   :  { %v472_v57 = vmin.f32 %v470_v55, %v471_v56 }
 0x1b3   :  { %v476_v58 = vsel %vm475_vm1, %v472_v57, 0.0 }
 0x1b4   :  { %491 = vadd.xlane.f32.xlu0 %v476_v58 }
 0x21c   :  { %v447_v59 = vpop.xlane.xlu1 %446 }
 0x21e   :  { %v445_v60 = vpop.xlane.xlu0 %444 }
 0x21f   :  { %v477_v62 = vadd.f32 %v447_v59, %v445_v60 }
 0x220   :  { %v451_v61 = vpop.xlane.xlu1 %450 }
 0x222   :  { %v449_v63 = vpop.xlane.xlu0 %448 }
 0x223   :  { %v478_v0 = vadd.f32 %v477_v62, %v449_v63 }
 0x224   :  { %v455_v2 = vpop.xlane.xlu1 %454 }
 0x225   :  { %v479_v1 = vadd.f32 %v478_v0, %v451_v61 }
 0x226   :  { %v453_v3 = vpop.xlane.xlu0 %452 }
 0x227   :  { %v480_v4 = vadd.f32 %v479_v1, %v453_v3 }
 0x228   :  { %v459_v8 = vpop.xlane.xlu1 %458 }
 0x229   :  { %v481_v5 = vadd.f32 %v480_v4, %v455_v2 }
 0x22a   :  { %v457_v6 = vpop.xlane.xlu0 %456 }
 0x22b   :  { %v482_v7 = vadd.f32 %v481_v5, %v457_v6 }
 0x22d   :  { %v483_v9 = vadd.f32 %v482_v7, %v459_v8 }
 0x22f   :  { %v484_v10 = vrot.slane %v483_v9, 4 }
 0x231   :  { %v485_v11 = vadd.f32 %v484_v10, %v483_v9 }
 0x233   :  { %v486_v12 = vrot.slane %v485_v11, 2 }
 0x235   :  { %v487_v13 = vadd.f32 %v486_v12, %v485_v11 }
 0x237   :  { %v488_v14 = vrot.slane %v487_v13, 1 }
 0x239   :  { %v489_v15 = vadd.f32 %v488_v14, %v487_v13 }
 0x23b   :  { %v490_v17 = vmul.f32 0.015625, %v489_v15 }
 0x23d   :  { %v492_v16 = vpop.xlane.xlu0 %491 }
 0x23e   :  { %v493_v18 = vmul.f32 0.015625, %v492_v16 }
 0x240   :  { %v494_v19 = vadd.f32 %v493_v18, %v490_v17 }
 0x242   :  { %496 = vst.msk [vmem:[#allocation2] sm:$0x1] %vm495_vm2, %v494_v19 }
 0x243   :  { %685 = shalt.err (!%p682_p4)
}
 0x244   :  { %508 = dma.vmem_to_hbm [thread:$0]  %s506_s5, 16, %s944_s6, [#allocation3]  }
 0x245   :  { %694 = dma.done.wait [#allocation3], 16  }
 0x246   :  { %695 = vsyncadd [#allocation3], 4294967280 }
 0x247   :  { %514 = vsyncpa [#allocation3], 1 }

</bundles_post_ra>
